<compile_context>
chip_gen: v5e
topology: v5e:2x2
jax: 0.10.0
libtpu: 0.0.40
codegen_flags: <defaults>
</compile_context>

<pallas_src>
import functools
import math

import jax
import jax.numpy as jnp
import numpy as np
from jax.experimental import pallas as pl
from jax.experimental.pallas import tpu as pltpu

# ---------------- small, self-consistent config ----------------
BATCH = 2
IN_CHANS = 3
IMG_SIZE = 16
PATCH = 4
GRID = IMG_SIZE // PATCH            # 4
NUM_PATCHES = GRID * GRID           # 16
SEQ = 1 + NUM_PATCHES               # 17
EMBED = SEQ                         # 17 (required: attention (B,S,S) @ diffusion_kernel (D,D))
HEADS = 1                           # must divide EMBED
HEAD_DIM = EMBED // HEADS
DEPTH = 2
FFN_DIM = 32                        # TODO(synk): nn.TransformerEncoderLayer default dim_feedforward=2048, scaled down
NUM_CLASSES = 3
EPS = 1e-5
PATCH_DIM = IN_CHANS * PATCH * PATCH            # 48
assert HEADS == 1, "fused kernel written for the single-head config implied by embed_dim=17"

# ---------------- TPU-friendly padded sizes (zero padding, numerically inert) ----------------
EP = 128        # feature / lane dim (17 -> 128)
FP = 128        # FFN hidden (32 -> 128)
KP = 128        # flattened patch vector (48 -> 128)
CP = 128        # classes (3 -> 128)
SEQ_PAD = 24    # token rows (17 -> 24, multiple of 8 sublanes)


# ---------------- the single fused Pallas kernel ----------------
def _vit_fused_kernel(patches_ref, patch_w_ref, add_ref,
                      wqkv_ref, bqkv_ref, wo_ref, bo_ref,
                      ln1w_ref, ln1b_ref, w1_ref, b1_ref, w2_ref, b2_ref,
                      ln2w_ref, ln2b_ref,
                      dqkv_w_ref, dqkv_b_ref, kd_ref, fcw_ref, fcb_ref,
                      out_ref):
    f32 = jnp.float32
    lane = jax.lax.broadcasted_iota(jnp.int32, (1, EP), 1)
    feat_mask = (lane < EMBED).astype(f32)           # zero out padded feature lanes in LayerNorm
    inv_d = f32(1.0 / EMBED)

    def mm(a, b):
        return jnp.dot(a, b, preferred_element_type=jnp.float32)

    def layer_norm(x, w, b):                         # biased variance (PyTorch LayerNorm)
        mean = jnp.sum(x, axis=-1, keepdims=True) * inv_d
        xc = (x - mean) * feat_mask
        var = jnp.sum(xc * xc, axis=-1, keepdims=True) * inv_d
        return xc * jax.lax.rsqrt(var + EPS) * w + b

    # ---- patch embedding + cls token + positional embedding (folded into `add`) ----
    patch_w = patch_w_ref[...]
    add = add_ref[...]                               # row0: cls+pos0, rows1..16: pos+patch_bias
    xs = [mm(patches_ref[b], patch_w) + add for b in range(BATCH)]   # per image: (SEQ_PAD, EP)

    # ---- transformer encoder layers (batch_first=False quirk: attention over the image axis) ----
    attn_scale = f32(1.0 / math.sqrt(HEAD_DIM))
    for d in range(DEPTH):
        wqkv, bqkv = wqkv_ref[d], bqkv_ref[d]
        wo, bo = wo_ref[d], bo_ref[d]
        ln1w, ln1b = ln1w_ref[d], ln1b_ref[d]
        w1, b1, w2, b2 = w1_ref[d], b1_ref[d], w2_ref[d], b2_ref[d]
        ln2w, ln2b = ln2w_ref[d], ln2b_ref[d]

        qs, ks, vs = [], [], []
        for b in range(BATCH):
            qkv = mm(xs[b], wqkv) + bqkv                             # fused QKV matmul
            qs.append(qkv[:, 0:EP])
            ks.append(qkv[:, EP:2 * EP])
            vs.append(qkv[:, 2 * EP:3 * EP])

        # scores[l][m]: per-token dot products across the BATCH ("sequence") axis — pure VPU/XLU
        s = [[jnp.sum(qs[l] * ks[m], axis=-1, keepdims=True) * attn_scale
              for m in range(BATCH)] for l in range(BATCH)]

        new_xs = []
        for l in range(BATCH):
            mx = s[l][0]
            for m in range(1, BATCH):
                mx = jnp.maximum(mx, s[l][m])
            es = [jnp.exp(s[l][m] - mx) for m in range(BATCH)]
            den = es[0]
            for m in range(1, BATCH):
                den = den + es[m]
            inv = pl.reciprocal(den, approx=True)
            o = (es[0] * inv) * vs[0]
            for m in range(1, BATCH):
                o = o + (es[m] * inv) * vs[m]
            attn_out = mm(o, wo) + bo
            h = layer_norm(xs[l] + attn_out, ln1w, ln1b)
            ff = jnp.maximum(mm(h, w1) + b1, 0.0)                    # default activation = relu
            ff = mm(ff, w2) + b2
            new_xs.append(layer_norm(h + ff, ln2w, ln2b))
        xs = new_xs

    # ---- diffusion kernel attention + classifier head ----
    key_mask = jax.lax.broadcasted_iota(jnp.int32, (SEQ_PAD, SEQ_PAD), 1) < SEQ
    dqkv_w, dqkv_b = dqkv_w_ref[...], dqkv_b_ref[...]
    kd = kd_ref[...]
    fcw, fcb = fcw_ref[...], fcb_ref[...]
    dscale = f32(1.0 / math.sqrt(EMBED))
    for b in range(BATCH):
        qkv = mm(xs[b], dqkv_w) + dqkv_b                             # fused QKV matmul
        q, k, v = qkv[:, 0:EP], qkv[:, EP:2 * EP], qkv[:, 2 * EP:3 * EP]
        sc = jax.lax.dot_general(q, k, (((1,), (1,)), ((), ())),     # q @ k^T without a transpose
                                 preferred_element_type=jnp.float32) * dscale
        sc = jnp.where(key_mask, sc, f32(-1e30))                     # mask padded token columns
        sc = sc - jnp.max(sc, axis=-1, keepdims=True)
        e = jnp.exp(sc)
        p = e * pl.reciprocal(jnp.sum(e, axis=-1, keepdims=True), approx=True)
        att = mm(p, kd)                                              # (S,S) @ (D,D), S == D
        ob = mm(att, v)                                              # (SEQ_PAD, EP)
        logits = mm(ob[0:1, :], fcw) + fcb                           # cls token -> classes
        out_ref[pl.ds(b, 1), :] = logits


def _full_spec(a):
    nd = a.ndim
    return pl.BlockSpec(a.shape, lambda i, nd=nd: (0,) * nd)


_ARG_ORDER = ("patch_w", "add",
              "wqkv", "bqkv", "wo", "bo",
              "ln1w", "ln1b", "w1", "b1", "w2", "b2", "ln2w", "ln2b",
              "dqkv_w", "dqkv_b", "kd", "fcw", "fcb")


def vit_forward(packed, x_img):
    """Full forward pass: layout-only prep in XLA, all compute in one pallas_call."""
    B = x_img.shape[0]
    # Conv2d(kernel=stride=PATCH) == per-patch matmul; extraction is pure layout.
    patches = (x_img.reshape(B, IN_CHANS, GRID, PATCH, GRID, PATCH)
               .transpose(0, 2, 4, 1, 3, 5)
               .reshape(B, NUM_PATCHES, PATCH_DIM))
    pe = jnp.zeros((B, SEQ_PAD, KP), jnp.float32)
    pe = pe.at[:, 1:SEQ, :PATCH_DIM].set(patches)    # row 0 is the cls slot (patch vector = 0)

    args = (pe,) + tuple(packed[k] for k in _ARG_ORDER)
    out = pl.pallas_call(
        _vit_fused_kernel,
        grid=(1,),
        out_shape=jax.ShapeDtypeStruct((B, CP), jnp.float32),
        in_specs=[_full_spec(a) for a in args],
        out_specs=pl.BlockSpec((B, CP), lambda i: (0, 0)),
        compiler_params=pltpu.CompilerParams(dimension_semantics=("arbitrary",)),
    )(*args)
    return out[:, :NUM_CLASSES]


# ---------------- parameter packing: pad once to lane-dense shapes, fuse QKV ----------------
def pack_params(p):
    def pad2(w, rows, cols):
        w = jnp.asarray(w, jnp.float32)
        return jnp.pad(w, ((0, rows - w.shape[0]), (0, cols - w.shape[1])))

    def padb(b, cols):
        b = jnp.asarray(b, jnp.float32).reshape(1, -1)
        return jnp.pad(b, ((0, 0), (0, cols - b.shape[1])))

    def qkv_w(d):
        return jnp.concatenate([pad2(d["wq"], EP, EP), pad2(d["wk"], EP, EP),
                                pad2(d["wv"], EP, EP)], axis=1)

    def qkv_b(d):
        return jnp.concatenate([padb(d["bq"], EP), padb(d["bk"], EP), padb(d["bv"], EP)], axis=1)

    layers = p["layers"]
    stack = lambda fn: jnp.stack([fn(lp) for lp in layers])

    # Fold cls token, positional embedding and the patch-embed bias into one additive term.
    add = jnp.zeros((SEQ_PAD, EP), jnp.float32)
    add = add.at[0, :EMBED].set(p["cls_token"][0, 0] + p["pos_embed"][0, 0])
    add = add.at[1:SEQ, :EMBED].set(p["pos_embed"][0, 1:] + p["patch_b"][None, :])

    return dict(
        patch_w=pad2(p["patch_w"], KP, EP),
        add=add,
        wqkv=stack(qkv_w), bqkv=stack(qkv_b),
        wo=stack(lambda lp: pad2(lp["wo"], EP, EP)),
        bo=stack(lambda lp: padb(lp["bo"], EP)),
        ln1w=stack(lambda lp: padb(lp["ln1_w"], EP)),
        ln1b=stack(lambda lp: padb(lp["ln1_b"], EP)),
        w1=stack(lambda lp: pad2(lp["w1"], EP, FP)),
        b1=stack(lambda lp: padb(lp["b1"], FP)),
        w2=stack(lambda lp: pad2(lp["w2"], FP, EP)),
        b2=stack(lambda lp: padb(lp["b2"], EP)),
        ln2w=stack(lambda lp: padb(lp["ln2_w"], EP)),
        ln2b=stack(lambda lp: padb(lp["ln2_b"], EP)),
        dqkv_w=qkv_w(p["diff"]), dqkv_b=qkv_b(p["diff"]),
        kd=pad2(p["diff"]["kernel"], SEQ_PAD, SEQ_PAD),
        fcw=pad2(p["fc_w"], EP, CP),
        fcb=padb(p["fc_b"], CP),
    )


# ---------------- pure-JAX reference (for validation) ----------------
def reference_forward(params, x_img):
    def lin(x, w, b):
        return x @ w + b

    def ln(x, w, b):
        mu = x.mean(-1, keepdims=True)
        var = ((x - mu) ** 2).mean(-1, keepdims=True)
        return (x - mu) / jnp.sqrt(var + EPS) * w + b

    B = x_img.shape[0]
    patches = (x_img.reshape(B, IN_CHANS, GRID, PATCH, GRID, PATCH)
               .transpose(0, 2, 4, 1, 3, 5)
               .reshape(B * NUM_PATCHES, -1))
    x = lin(patches, params["patch_w"], params["patch_b"]).reshape(B, NUM_PATCHES, EMBED)
    x = jnp.concatenate([jnp.broadcast_to(params["cls_token"], (B, 1, EMBED)), x],
                        axis=1) + params["pos_embed"]
    for lp in params["layers"]:
        L, N, E = x.shape
        x2 = x.reshape(L * N, E)
        q = lin(x2, lp["wq"], lp["bq"]).reshape(L, N, HEADS, HEAD_DIM)
        k = lin(x2, lp["wk"], lp["bk"]).reshape(L, N, HEADS, HEAD_DIM)
        v = lin(x2, lp["wv"], lp["bv"]).reshape(L, N, HEADS, HEAD_DIM)
        s = jnp.einsum("lnhd,mnhd->nhlm", q, k) / math.sqrt(HEAD_DIM)
        p = jax.nn.softmax(s, axis=-1)
        o = jnp.einsum("nhlm,mnhd->lnhd", p, v).reshape(L * N, E)
        attn = lin(o, lp["wo"], lp["bo"])
        h = ln(x2 + attn, lp["ln1_w"], lp["ln1_b"])
        ff = lin(jax.nn.relu(lin(h, lp["w1"], lp["b1"])), lp["w2"], lp["b2"])
        h = ln(h + ff, lp["ln2_w"], lp["ln2_b"])
        x = h.reshape(L, N, E)
    dp = params["diff"]
    q = lin(x, dp["wq"], dp["bq"])
    k = lin(x, dp["wk"], dp["bk"])
    v = lin(x, dp["wv"], dp["bv"])
    att = jax.nn.softmax(jnp.einsum("bsd,btd->bst", q, k) / math.sqrt(EMBED), axis=-1)
    att = jnp.einsum("bst,tu->bsu", att, dp["kernel"])
    x = jnp.einsum("bst,btd->bsd", att, v)
    return lin(x[:, 0], params["fc_w"], params["fc_b"])


# ---------------- deterministic parameter init ----------------
def init_params(key):
    keys = iter(jax.random.split(key, 64))

    def nrm(shape, scale=0.02):
        return (scale * jax.random.normal(next(keys), shape)).astype(jnp.float32)

    def ones(shape):
        return jnp.ones(shape, jnp.float32)

    def zeros(shape):
        return jnp.zeros(shape, jnp.float32)

    layers = []
    for _ in range(DEPTH):
        layers.append(dict(
            wq=nrm((EMBED, EMBED)), bq=nrm((EMBED,)),
            wk=nrm((EMBED, EMBED)), bk=nrm((EMBED,)),
            wv=nrm((EMBED, EMBED)), bv=nrm((EMBED,)),
            wo=nrm((EMBED, EMBED)), bo=nrm((EMBED,)),
            ln1_w=ones((EMBED,)), ln1_b=zeros((EMBED,)),
            w1=nrm((EMBED, FFN_DIM)), b1=nrm((FFN_DIM,)),
            w2=nrm((FFN_DIM, EMBED)), b2=nrm((EMBED,)),
            ln2_w=ones((EMBED,)), ln2_b=zeros((EMBED,)),
        ))
    return dict(
        patch_w=nrm((PATCH_DIM, EMBED)),
        patch_b=nrm((EMBED,)),
        cls_token=nrm((1, 1, EMBED)),          # module inits to zeros; random is semantically identical
        pos_embed=nrm((1, SEQ, EMBED)),
        layers=layers,
        diff=dict(
            wq=nrm((EMBED, EMBED)), bq=nrm((EMBED,)),
            wk=nrm((EMBED, EMBED)), bk=nrm((EMBED,)),
            wv=nrm((EMBED, EMBED)), bv=nrm((EMBED,)),
            kernel=nrm((EMBED, EMBED), scale=1.0),
        ),
        fc_w=nrm((EMBED, NUM_CLASSES)),
        fc_b=nrm((NUM_CLASSES,)),
    )


if __name__ == "__main__":
    root = jax.random.PRNGKey(0)
    kp, kx = jax.random.split(root)
    params = init_params(kp)
    packed = pack_params(params)                     # pad/fuse weights once
    x = jax.random.normal(kx, (BATCH, IN_CHANS, IMG_SIZE, IMG_SIZE), dtype=jnp.float32)

    fwd = jax.jit(vit_forward)
    out = jax.block_until_ready(fwd(packed, x))

    ref = jax.block_until_ready(jax.jit(reference_forward)(params, x))
    np.testing.assert_allclose(np.asarray(out), np.asarray(ref), rtol=5e-3, atol=5e-3)
    assert out.shape == (BATCH, NUM_CLASSES)

    print("KERNEL_OK")
</pallas_src>

<mosaic_0001>
module attributes {stable_mosaic.version = 11 : i64} {
  func.func @_vit_fused_kernel(%arg0: i32, %arg1: memref<2x24x128xf32, #tpu.memory_space<vmem>>, %arg2: memref<128x128xf32, #tpu.memory_space<vmem>>, %arg3: memref<24x128xf32, #tpu.memory_space<vmem>>, %arg4: memref<2x128x384xf32, #tpu.memory_space<vmem>>, %arg5: memref<2x1x384xf32, #tpu.memory_space<vmem>>, %arg6: memref<2x128x128xf32, #tpu.memory_space<vmem>>, %arg7: memref<2x1x128xf32, #tpu.memory_space<vmem>>, %arg8: memref<2x1x128xf32, #tpu.memory_space<vmem>>, %arg9: memref<2x1x128xf32, #tpu.memory_space<vmem>>, %arg10: memref<2x128x128xf32, #tpu.memory_space<vmem>>, %arg11: memref<2x1x128xf32, #tpu.memory_space<vmem>>, %arg12: memref<2x128x128xf32, #tpu.memory_space<vmem>>, %arg13: memref<2x1x128xf32, #tpu.memory_space<vmem>>, %arg14: memref<2x1x128xf32, #tpu.memory_space<vmem>>, %arg15: memref<2x1x128xf32, #tpu.memory_space<vmem>>, %arg16: memref<128x384xf32, #tpu.memory_space<vmem>>, %arg17: memref<1x384xf32, #tpu.memory_space<vmem>>, %arg18: memref<24x24xf32, #tpu.memory_space<vmem>>, %arg19: memref<128x128xf32, #tpu.memory_space<vmem>>, %arg20: memref<1x128xf32, #tpu.memory_space<vmem>>, %arg21: memref<2x128xf32, #tpu.memory_space<vmem>>) attributes {dimension_semantics = [#tpu.dimension_semantics<arbitrary>], iteration_bounds = array<i64: 1>, scalar_prefetch = 0 : i64, scratch_operands = 0 : i64, tpu.core_type = #tpu.core_type<tc>, window_params = [{pipeline_mode = #tpu.pipeline_mode<synchronous>, transform_indices = @transform_0, window_bounds = array<i64: 2, 24, 128>}, {pipeline_mode = #tpu.pipeline_mode<synchronous>, transform_indices = @transform_1, window_bounds = array<i64: 128, 128>}, {pipeline_mode = #tpu.pipeline_mode<synchronous>, transform_indices = @transform_2, window_bounds = array<i64: 24, 128>}, {pipeline_mode = #tpu.pipeline_mode<synchronous>, transform_indices = @transform_3, window_bounds = array<i64: 2, 128, 384>}, {pipeline_mode = #tpu.pipeline_mode<synchronous>, transform_indices = @transform_4, window_bounds = array<i64: 2, 1, 384>}, {pipeline_mode = #tpu.pipeline_mode<synchronous>, transform_indices = @transform_5, window_bounds = array<i64: 2, 128, 128>}, {pipeline_mode = #tpu.pipeline_mode<synchronous>, transform_indices = @transform_6, window_bounds = array<i64: 2, 1, 128>}, {pipeline_mode = #tpu.pipeline_mode<synchronous>, transform_indices = @transform_7, window_bounds = array<i64: 2, 1, 128>}, {pipeline_mode = #tpu.pipeline_mode<synchronous>, transform_indices = @transform_8, window_bounds = array<i64: 2, 1, 128>}, {pipeline_mode = #tpu.pipeline_mode<synchronous>, transform_indices = @transform_9, window_bounds = array<i64: 2, 128, 128>}, {pipeline_mode = #tpu.pipeline_mode<synchronous>, transform_indices = @transform_10, window_bounds = array<i64: 2, 1, 128>}, {pipeline_mode = #tpu.pipeline_mode<synchronous>, transform_indices = @transform_11, window_bounds = array<i64: 2, 128, 128>}, {pipeline_mode = #tpu.pipeline_mode<synchronous>, transform_indices = @transform_12, window_bounds = array<i64: 2, 1, 128>}, {pipeline_mode = #tpu.pipeline_mode<synchronous>, transform_indices = @transform_13, window_bounds = array<i64: 2, 1, 128>}, {pipeline_mode = #tpu.pipeline_mode<synchronous>, transform_indices = @transform_14, window_bounds = array<i64: 2, 1, 128>}, {pipeline_mode = #tpu.pipeline_mode<synchronous>, transform_indices = @transform_15, window_bounds = array<i64: 128, 384>}, {pipeline_mode = #tpu.pipeline_mode<synchronous>, transform_indices = @transform_16, window_bounds = array<i64: 1, 384>}, {pipeline_mode = #tpu.pipeline_mode<synchronous>, transform_indices = @transform_17, window_bounds = array<i64: 24, 24>}, {pipeline_mode = #tpu.pipeline_mode<synchronous>, transform_indices = @transform_18, window_bounds = array<i64: 128, 128>}, {pipeline_mode = #tpu.pipeline_mode<synchronous>, transform_indices = @transform_19, window_bounds = array<i64: 1, 128>}, {pipeline_mode = #tpu.pipeline_mode<synchronous>, transform_indices = @transform_20, window_bounds = array<i64: 2, 128>}]} {
    %0 = tpu.iota {dimensions = array<i32: 1>} : vector<1x128xi32>
    %c17_i32 = arith.constant 17 : i32
    %1 = vector.broadcast %c17_i32 : i32 to vector<1x128xi32>
    %2 = arith.cmpi slt, %0, %1 : vector<1x128xi32>
    %3 = arith.extui %2 : vector<1x128xi1> to vector<1x128xi32>
    %4 = arith.sitofp %3 : vector<1x128xi32> to vector<1x128xf32>
    %c0 = arith.constant 0 : index
    %c0_0 = arith.constant 0 : index
    %5 = vector.load %arg2[%c0, %c0_0] : memref<128x128xf32, #tpu.memory_space<vmem>>, vector<128x128xf32>
    %c0_1 = arith.constant 0 : index
    %c0_2 = arith.constant 0 : index
    %6 = vector.load %arg3[%c0_1, %c0_2] : memref<24x128xf32, #tpu.memory_space<vmem>>, vector<24x128xf32>
    %c0_3 = arith.constant 0 : index
    %c0_4 = arith.constant 0 : index
    %c0_5 = arith.constant 0 : index
    %7 = vector.load %arg1[%c0_3, %c0_4, %c0_5] : memref<2x24x128xf32, #tpu.memory_space<vmem>>, vector<1x24x128xf32>
    %8 = vector.shape_cast %7 : vector<1x24x128xf32> to vector<24x128xf32>
    %cst = arith.constant dense<0.000000e+00> : vector<24x128xf32>
    %9 = tpu.matmul %8, %5, %cst {dimension_numbers = #tpu.dot_dimension_numbers<[1], [0], [0], [1], [0, 0, 1, 1], [], []>} : vector<24x128xf32>, vector<128x128xf32>, vector<24x128xf32> -> vector<24x128xf32>
    %10 = arith.addf %9, %6 : vector<24x128xf32>
    %c1 = arith.constant 1 : index
    %c0_6 = arith.constant 0 : index
    %c0_7 = arith.constant 0 : index
    %11 = vector.load %arg1[%c1, %c0_6, %c0_7] : memref<2x24x128xf32, #tpu.memory_space<vmem>>, vector<1x24x128xf32>
    %12 = vector.shape_cast %11 : vector<1x24x128xf32> to vector<24x128xf32>
    %cst_8 = arith.constant dense<0.000000e+00> : vector<24x128xf32>
    %13 = tpu.matmul %12, %5, %cst_8 {dimension_numbers = #tpu.dot_dimension_numbers<[1], [0], [0], [1], [0, 0, 1, 1], [], []>} : vector<24x128xf32>, vector<128x128xf32>, vector<24x128xf32> -> vector<24x128xf32>
    %14 = arith.addf %13, %6 : vector<24x128xf32>
    %c0_9 = arith.constant 0 : index
    %c0_10 = arith.constant 0 : index
    %c0_11 = arith.constant 0 : index
    %15 = vector.load %arg4[%c0_9, %c0_10, %c0_11] : memref<2x128x384xf32, #tpu.memory_space<vmem>>, vector<1x128x384xf32>
    %16 = vector.shape_cast %15 : vector<1x128x384xf32> to vector<128x384xf32>
    %c0_12 = arith.constant 0 : index
    %c0_13 = arith.constant 0 : index
    %c0_14 = arith.constant 0 : index
    %17 = vector.load %arg5[%c0_12, %c0_13, %c0_14] : memref<2x1x384xf32, #tpu.memory_space<vmem>>, vector<1x1x384xf32>
    %18 = vector.shape_cast %17 : vector<1x1x384xf32> to vector<1x384xf32>
    %c0_15 = arith.constant 0 : index
    %c0_16 = arith.constant 0 : index
    %c0_17 = arith.constant 0 : index
    %19 = vector.load %arg6[%c0_15, %c0_16, %c0_17] : memref<2x128x128xf32, #tpu.memory_space<vmem>>, vector<1x128x128xf32>
    %20 = vector.shape_cast %19 : vector<1x128x128xf32> to vector<128x128xf32>
    %c0_18 = arith.constant 0 : index
    %c0_19 = arith.constant 0 : index
    %c0_20 = arith.constant 0 : index
    %21 = vector.load %arg7[%c0_18, %c0_19, %c0_20] : memref<2x1x128xf32, #tpu.memory_space<vmem>>, vector<1x1x128xf32>
    %22 = vector.shape_cast %21 : vector<1x1x128xf32> to vector<1x128xf32>
    %c0_21 = arith.constant 0 : index
    %c0_22 = arith.constant 0 : index
    %c0_23 = arith.constant 0 : index
    %23 = vector.load %arg8[%c0_21, %c0_22, %c0_23] : memref<2x1x128xf32, #tpu.memory_space<vmem>>, vector<1x1x128xf32>
    %24 = vector.shape_cast %23 : vector<1x1x128xf32> to vector<1x128xf32>
    %c0_24 = arith.constant 0 : index
    %c0_25 = arith.constant 0 : index
    %c0_26 = arith.constant 0 : index
    %25 = vector.load %arg9[%c0_24, %c0_25, %c0_26] : memref<2x1x128xf32, #tpu.memory_space<vmem>>, vector<1x1x128xf32>
    %26 = vector.shape_cast %25 : vector<1x1x128xf32> to vector<1x128xf32>
    %c0_27 = arith.constant 0 : index
    %c0_28 = arith.constant 0 : index
    %c0_29 = arith.constant 0 : index
    %27 = vector.load %arg10[%c0_27, %c0_28, %c0_29] : memref<2x128x128xf32, #tpu.memory_space<vmem>>, vector<1x128x128xf32>
    %28 = vector.shape_cast %27 : vector<1x128x128xf32> to vector<128x128xf32>
    %c0_30 = arith.constant 0 : index
    %c0_31 = arith.constant 0 : index
    %c0_32 = arith.constant 0 : index
    %29 = vector.load %arg11[%c0_30, %c0_31, %c0_32] : memref<2x1x128xf32, #tpu.memory_space<vmem>>, vector<1x1x128xf32>
    %30 = vector.shape_cast %29 : vector<1x1x128xf32> to vector<1x128xf32>
    %c0_33 = arith.constant 0 : index
    %c0_34 = arith.constant 0 : index
    %c0_35 = arith.constant 0 : index
    %31 = vector.load %arg12[%c0_33, %c0_34, %c0_35] : memref<2x128x128xf32, #tpu.memory_space<vmem>>, vector<1x128x128xf32>
    %32 = vector.shape_cast %31 : vector<1x128x128xf32> to vector<128x128xf32>
    %c0_36 = arith.constant 0 : index
    %c0_37 = arith.constant 0 : index
    %c0_38 = arith.constant 0 : index
    %33 = vector.load %arg13[%c0_36, %c0_37, %c0_38] : memref<2x1x128xf32, #tpu.memory_space<vmem>>, vector<1x1x128xf32>
    %34 = vector.shape_cast %33 : vector<1x1x128xf32> to vector<1x128xf32>
    %c0_39 = arith.constant 0 : index
    %c0_40 = arith.constant 0 : index
    %c0_41 = arith.constant 0 : index
    %35 = vector.load %arg14[%c0_39, %c0_40, %c0_41] : memref<2x1x128xf32, #tpu.memory_space<vmem>>, vector<1x1x128xf32>
    %36 = vector.shape_cast %35 : vector<1x1x128xf32> to vector<1x128xf32>
    %c0_42 = arith.constant 0 : index
    %c0_43 = arith.constant 0 : index
    %c0_44 = arith.constant 0 : index
    %37 = vector.load %arg15[%c0_42, %c0_43, %c0_44] : memref<2x1x128xf32, #tpu.memory_space<vmem>>, vector<1x1x128xf32>
    %38 = vector.shape_cast %37 : vector<1x1x128xf32> to vector<1x128xf32>
    %cst_45 = arith.constant dense<0.000000e+00> : vector<24x384xf32>
    %39 = tpu.matmul %10, %16, %cst_45 {dimension_numbers = #tpu.dot_dimension_numbers<[1], [0], [0], [1], [0, 0, 1, 1], [], []>} : vector<24x128xf32>, vector<128x384xf32>, vector<24x384xf32> -> vector<24x384xf32>
    %40 = vector.broadcast %18 : vector<1x384xf32> to vector<24x384xf32>
    %41 = arith.addf %39, %40 : vector<24x384xf32>
    %42 = vector.extract_strided_slice %41 {offsets = [0, 0], sizes = [24, 128], strides = [1, 1]} : vector<24x384xf32> to vector<24x128xf32>
    %43 = vector.extract_strided_slice %41 {offsets = [0, 128], sizes = [24, 128], strides = [1, 1]} : vector<24x384xf32> to vector<24x128xf32>
    %44 = vector.extract_strided_slice %41 {offsets = [0, 256], sizes = [24, 128], strides = [1, 1]} : vector<24x384xf32> to vector<24x128xf32>
    %cst_46 = arith.constant dense<0.000000e+00> : vector<24x384xf32>
    %45 = tpu.matmul %14, %16, %cst_46 {dimension_numbers = #tpu.dot_dimension_numbers<[1], [0], [0], [1], [0, 0, 1, 1], [], []>} : vector<24x128xf32>, vector<128x384xf32>, vector<24x384xf32> -> vector<24x384xf32>
    %46 = vector.broadcast %18 : vector<1x384xf32> to vector<24x384xf32>
    %47 = arith.addf %45, %46 : vector<24x384xf32>
    %48 = vector.extract_strided_slice %47 {offsets = [0, 0], sizes = [24, 128], strides = [1, 1]} : vector<24x384xf32> to vector<24x128xf32>
    %49 = vector.extract_strided_slice %47 {offsets = [0, 128], sizes = [24, 128], strides = [1, 1]} : vector<24x384xf32> to vector<24x128xf32>
    %50 = vector.extract_strided_slice %47 {offsets = [0, 256], sizes = [24, 128], strides = [1, 1]} : vector<24x384xf32> to vector<24x128xf32>
    %51 = arith.mulf %42, %43 : vector<24x128xf32>
    %cst_47 = arith.constant dense<0.000000e+00> : vector<24xf32>
    %52 = vector.multi_reduction <add>, %51, %cst_47 [1] : vector<24x128xf32> to vector<24xf32>
    %53 = vector.shape_cast %52 : vector<24xf32> to vector<24x1xf32>
    %cst_48 = arith.constant 0.242535621 : f32
    %54 = vector.broadcast %cst_48 : f32 to vector<24x1xf32>
    %55 = arith.mulf %53, %54 : vector<24x1xf32>
    %56 = arith.mulf %42, %49 : vector<24x128xf32>
    %cst_49 = arith.constant dense<0.000000e+00> : vector<24xf32>
    %57 = vector.multi_reduction <add>, %56, %cst_49 [1] : vector<24x128xf32> to vector<24xf32>
    %58 = vector.shape_cast %57 : vector<24xf32> to vector<24x1xf32>
    %cst_50 = arith.constant 0.242535621 : f32
    %59 = vector.broadcast %cst_50 : f32 to vector<24x1xf32>
    %60 = arith.mulf %58, %59 : vector<24x1xf32>
    %61 = arith.mulf %48, %43 : vector<24x128xf32>
    %cst_51 = arith.constant dense<0.000000e+00> : vector<24xf32>
    %62 = vector.multi_reduction <add>, %61, %cst_51 [1] : vector<24x128xf32> to vector<24xf32>
    %63 = vector.shape_cast %62 : vector<24xf32> to vector<24x1xf32>
    %cst_52 = arith.constant 0.242535621 : f32
    %64 = vector.broadcast %cst_52 : f32 to vector<24x1xf32>
    %65 = arith.mulf %63, %64 : vector<24x1xf32>
    %66 = arith.mulf %48, %49 : vector<24x128xf32>
    %cst_53 = arith.constant dense<0.000000e+00> : vector<24xf32>
    %67 = vector.multi_reduction <add>, %66, %cst_53 [1] : vector<24x128xf32> to vector<24xf32>
    %68 = vector.shape_cast %67 : vector<24xf32> to vector<24x1xf32>
    %cst_54 = arith.constant 0.242535621 : f32
    %69 = vector.broadcast %cst_54 : f32 to vector<24x1xf32>
    %70 = arith.mulf %68, %69 : vector<24x1xf32>
    %71 = arith.maximumf %55, %60 : vector<24x1xf32>
    %72 = arith.subf %55, %71 : vector<24x1xf32>
    %73 = math.exp %72 : vector<24x1xf32>
    %74 = arith.subf %60, %71 : vector<24x1xf32>
    %75 = math.exp %74 : vector<24x1xf32>
    %76 = arith.addf %73, %75 : vector<24x1xf32>
    %77 = tpu.reciprocal %76 {approx = true} : vector<24x1xf32> -> vector<24x1xf32>
    %78 = arith.mulf %73, %77 : vector<24x1xf32>
    %79 = vector.broadcast %78 : vector<24x1xf32> to vector<24x128xf32>
    %80 = arith.mulf %79, %44 : vector<24x128xf32>
    %81 = arith.mulf %75, %77 : vector<24x1xf32>
    %82 = vector.broadcast %81 : vector<24x1xf32> to vector<24x128xf32>
    %83 = arith.mulf %82, %50 : vector<24x128xf32>
    %84 = arith.addf %80, %83 : vector<24x128xf32>
    %cst_55 = arith.constant dense<0.000000e+00> : vector<24x128xf32>
    %85 = tpu.matmul %84, %20, %cst_55 {dimension_numbers = #tpu.dot_dimension_numbers<[1], [0], [0], [1], [0, 0, 1, 1], [], []>} : vector<24x128xf32>, vector<128x128xf32>, vector<24x128xf32> -> vector<24x128xf32>
    %86 = vector.broadcast %22 : vector<1x128xf32> to vector<24x128xf32>
    %87 = arith.addf %85, %86 : vector<24x128xf32>
    %88 = arith.addf %10, %87 : vector<24x128xf32>
    %cst_56 = arith.constant dense<0.000000e+00> : vector<24xf32>
    %89 = vector.multi_reduction <add>, %88, %cst_56 [1] : vector<24x128xf32> to vector<24xf32>
    %90 = vector.shape_cast %89 : vector<24xf32> to vector<24x1xf32>
    %cst_57 = arith.constant 0.0588235296 : f32
    %91 = vector.broadcast %cst_57 : f32 to vector<24x1xf32>
    %92 = arith.mulf %90, %91 : vector<24x1xf32>
    %93 = vector.broadcast %92 : vector<24x1xf32> to vector<24x128xf32>
    %94 = arith.subf %88, %93 : vector<24x128xf32>
    %95 = vector.broadcast %4 : vector<1x128xf32> to vector<24x128xf32>
    %96 = arith.mulf %94, %95 : vector<24x128xf32>
    %97 = arith.mulf %96, %96 : vector<24x128xf32>
    %cst_58 = arith.constant dense<0.000000e+00> : vector<24xf32>
    %98 = vector.multi_reduction <add>, %97, %cst_58 [1] : vector<24x128xf32> to vector<24xf32>
    %99 = vector.shape_cast %98 : vector<24xf32> to vector<24x1xf32>
    %cst_59 = arith.constant 0.0588235296 : f32
    %100 = vector.broadcast %cst_59 : f32 to vector<24x1xf32>
    %101 = arith.mulf %99, %100 : vector<24x1xf32>
    %cst_60 = arith.constant 9.99999974E-6 : f32
    %102 = vector.broadcast %cst_60 : f32 to vector<24x1xf32>
    %103 = arith.addf %101, %102 : vector<24x1xf32>
    %104 = math.rsqrt %103 : vector<24x1xf32>
    %105 = vector.broadcast %104 : vector<24x1xf32> to vector<24x128xf32>
    %106 = arith.mulf %96, %105 : vector<24x128xf32>
    %107 = vector.broadcast %24 : vector<1x128xf32> to vector<24x128xf32>
    %108 = arith.mulf %106, %107 : vector<24x128xf32>
    %109 = vector.broadcast %26 : vector<1x128xf32> to vector<24x128xf32>
    %110 = arith.addf %108, %109 : vector<24x128xf32>
    %cst_61 = arith.constant dense<0.000000e+00> : vector<24x128xf32>
    %111 = tpu.matmul %110, %28, %cst_61 {dimension_numbers = #tpu.dot_dimension_numbers<[1], [0], [0], [1], [0, 0, 1, 1], [], []>} : vector<24x128xf32>, vector<128x128xf32>, vector<24x128xf32> -> vector<24x128xf32>
    %112 = vector.broadcast %30 : vector<1x128xf32> to vector<24x128xf32>
    %113 = arith.addf %111, %112 : vector<24x128xf32>
    %cst_62 = arith.constant 0.000000e+00 : f32
    %114 = vector.broadcast %cst_62 : f32 to vector<24x128xf32>
    %115 = arith.maximumf %113, %114 : vector<24x128xf32>
    %cst_63 = arith.constant dense<0.000000e+00> : vector<24x128xf32>
    %116 = tpu.matmul %115, %32, %cst_63 {dimension_numbers = #tpu.dot_dimension_numbers<[1], [0], [0], [1], [0, 0, 1, 1], [], []>} : vector<24x128xf32>, vector<128x128xf32>, vector<24x128xf32> -> vector<24x128xf32>
    %117 = vector.broadcast %34 : vector<1x128xf32> to vector<24x128xf32>
    %118 = arith.addf %116, %117 : vector<24x128xf32>
    %119 = arith.addf %110, %118 : vector<24x128xf32>
    %cst_64 = arith.constant dense<0.000000e+00> : vector<24xf32>
    %120 = vector.multi_reduction <add>, %119, %cst_64 [1] : vector<24x128xf32> to vector<24xf32>
    %121 = vector.shape_cast %120 : vector<24xf32> to vector<24x1xf32>
    %cst_65 = arith.constant 0.0588235296 : f32
    %122 = vector.broadcast %cst_65 : f32 to vector<24x1xf32>
    %123 = arith.mulf %121, %122 : vector<24x1xf32>
    %124 = vector.broadcast %123 : vector<24x1xf32> to vector<24x128xf32>
    %125 = arith.subf %119, %124 : vector<24x128xf32>
    %126 = vector.broadcast %4 : vector<1x128xf32> to vector<24x128xf32>
    %127 = arith.mulf %125, %126 : vector<24x128xf32>
    %128 = arith.mulf %127, %127 : vector<24x128xf32>
    %cst_66 = arith.constant dense<0.000000e+00> : vector<24xf32>
    %129 = vector.multi_reduction <add>, %128, %cst_66 [1] : vector<24x128xf32> to vector<24xf32>
    %130 = vector.shape_cast %129 : vector<24xf32> to vector<24x1xf32>
    %cst_67 = arith.constant 0.0588235296 : f32
    %131 = vector.broadcast %cst_67 : f32 to vector<24x1xf32>
    %132 = arith.mulf %130, %131 : vector<24x1xf32>
    %cst_68 = arith.constant 9.99999974E-6 : f32
    %133 = vector.broadcast %cst_68 : f32 to vector<24x1xf32>
    %134 = arith.addf %132, %133 : vector<24x1xf32>
    %135 = math.rsqrt %134 : vector<24x1xf32>
    %136 = vector.broadcast %135 : vector<24x1xf32> to vector<24x128xf32>
    %137 = arith.mulf %127, %136 : vector<24x128xf32>
    %138 = vector.broadcast %36 : vector<1x128xf32> to vector<24x128xf32>
    %139 = arith.mulf %137, %138 : vector<24x128xf32>
    %140 = vector.broadcast %38 : vector<1x128xf32> to vector<24x128xf32>
    %141 = arith.addf %139, %140 : vector<24x128xf32>
    %142 = arith.maximumf %65, %70 : vector<24x1xf32>
    %143 = arith.subf %65, %142 : vector<24x1xf32>
    %144 = math.exp %143 : vector<24x1xf32>
    %145 = arith.subf %70, %142 : vector<24x1xf32>
    %146 = math.exp %145 : vector<24x1xf32>
    %147 = arith.addf %144, %146 : vector<24x1xf32>
    %148 = tpu.reciprocal %147 {approx = true} : vector<24x1xf32> -> vector<24x1xf32>
    %149 = arith.mulf %144, %148 : vector<24x1xf32>
    %150 = vector.broadcast %149 : vector<24x1xf32> to vector<24x128xf32>
    %151 = arith.mulf %150, %44 : vector<24x128xf32>
    %152 = arith.mulf %146, %148 : vector<24x1xf32>
    %153 = vector.broadcast %152 : vector<24x1xf32> to vector<24x128xf32>
    %154 = arith.mulf %153, %50 : vector<24x128xf32>
    %155 = arith.addf %151, %154 : vector<24x128xf32>
    %cst_69 = arith.constant dense<0.000000e+00> : vector<24x128xf32>
    %156 = tpu.matmul %155, %20, %cst_69 {dimension_numbers = #tpu.dot_dimension_numbers<[1], [0], [0], [1], [0, 0, 1, 1], [], []>} : vector<24x128xf32>, vector<128x128xf32>, vector<24x128xf32> -> vector<24x128xf32>
    %157 = vector.broadcast %22 : vector<1x128xf32> to vector<24x128xf32>
    %158 = arith.addf %156, %157 : vector<24x128xf32>
    %159 = arith.addf %14, %158 : vector<24x128xf32>
    %cst_70 = arith.constant dense<0.000000e+00> : vector<24xf32>
    %160 = vector.multi_reduction <add>, %159, %cst_70 [1] : vector<24x128xf32> to vector<24xf32>
    %161 = vector.shape_cast %160 : vector<24xf32> to vector<24x1xf32>
    %cst_71 = arith.constant 0.0588235296 : f32
    %162 = vector.broadcast %cst_71 : f32 to vector<24x1xf32>
    %163 = arith.mulf %161, %162 : vector<24x1xf32>
    %164 = vector.broadcast %163 : vector<24x1xf32> to vector<24x128xf32>
    %165 = arith.subf %159, %164 : vector<24x128xf32>
    %166 = vector.broadcast %4 : vector<1x128xf32> to vector<24x128xf32>
    %167 = arith.mulf %165, %166 : vector<24x128xf32>
    %168 = arith.mulf %167, %167 : vector<24x128xf32>
    %cst_72 = arith.constant dense<0.000000e+00> : vector<24xf32>
    %169 = vector.multi_reduction <add>, %168, %cst_72 [1] : vector<24x128xf32> to vector<24xf32>
    %170 = vector.shape_cast %169 : vector<24xf32> to vector<24x1xf32>
    %cst_73 = arith.constant 0.0588235296 : f32
    %171 = vector.broadcast %cst_73 : f32 to vector<24x1xf32>
    %172 = arith.mulf %170, %171 : vector<24x1xf32>
    %cst_74 = arith.constant 9.99999974E-6 : f32
    %173 = vector.broadcast %cst_74 : f32 to vector<24x1xf32>
    %174 = arith.addf %172, %173 : vector<24x1xf32>
    %175 = math.rsqrt %174 : vector<24x1xf32>
    %176 = vector.broadcast %175 : vector<24x1xf32> to vector<24x128xf32>
    %177 = arith.mulf %167, %176 : vector<24x128xf32>
    %178 = vector.broadcast %24 : vector<1x128xf32> to vector<24x128xf32>
    %179 = arith.mulf %177, %178 : vector<24x128xf32>
    %180 = vector.broadcast %26 : vector<1x128xf32> to vector<24x128xf32>
    %181 = arith.addf %179, %180 : vector<24x128xf32>
    %cst_75 = arith.constant dense<0.000000e+00> : vector<24x128xf32>
    %182 = tpu.matmul %181, %28, %cst_75 {dimension_numbers = #tpu.dot_dimension_numbers<[1], [0], [0], [1], [0, 0, 1, 1], [], []>} : vector<24x128xf32>, vector<128x128xf32>, vector<24x128xf32> -> vector<24x128xf32>
    %183 = vector.broadcast %30 : vector<1x128xf32> to vector<24x128xf32>
    %184 = arith.addf %182, %183 : vector<24x128xf32>
    %cst_76 = arith.constant 0.000000e+00 : f32
    %185 = vector.broadcast %cst_76 : f32 to vector<24x128xf32>
    %186 = arith.maximumf %184, %185 : vector<24x128xf32>
    %cst_77 = arith.constant dense<0.000000e+00> : vector<24x128xf32>
    %187 = tpu.matmul %186, %32, %cst_77 {dimension_numbers = #tpu.dot_dimension_numbers<[1], [0], [0], [1], [0, 0, 1, 1], [], []>} : vector<24x128xf32>, vector<128x128xf32>, vector<24x128xf32> -> vector<24x128xf32>
    %188 = vector.broadcast %34 : vector<1x128xf32> to vector<24x128xf32>
    %189 = arith.addf %187, %188 : vector<24x128xf32>
    %190 = arith.addf %181, %189 : vector<24x128xf32>
    %cst_78 = arith.constant dense<0.000000e+00> : vector<24xf32>
    %191 = vector.multi_reduction <add>, %190, %cst_78 [1] : vector<24x128xf32> to vector<24xf32>
    %192 = vector.shape_cast %191 : vector<24xf32> to vector<24x1xf32>
    %cst_79 = arith.constant 0.0588235296 : f32
    %193 = vector.broadcast %cst_79 : f32 to vector<24x1xf32>
    %194 = arith.mulf %192, %193 : vector<24x1xf32>
    %195 = vector.broadcast %194 : vector<24x1xf32> to vector<24x128xf32>
    %196 = arith.subf %190, %195 : vector<24x128xf32>
    %197 = vector.broadcast %4 : vector<1x128xf32> to vector<24x128xf32>
    %198 = arith.mulf %196, %197 : vector<24x128xf32>
    %199 = arith.mulf %198, %198 : vector<24x128xf32>
    %cst_80 = arith.constant dense<0.000000e+00> : vector<24xf32>
    %200 = vector.multi_reduction <add>, %199, %cst_80 [1] : vector<24x128xf32> to vector<24xf32>
    %201 = vector.shape_cast %200 : vector<24xf32> to vector<24x1xf32>
    %cst_81 = arith.constant 0.0588235296 : f32
    %202 = vector.broadcast %cst_81 : f32 to vector<24x1xf32>
    %203 = arith.mulf %201, %202 : vector<24x1xf32>
    %cst_82 = arith.constant 9.99999974E-6 : f32
    %204 = vector.broadcast %cst_82 : f32 to vector<24x1xf32>
    %205 = arith.addf %203, %204 : vector<24x1xf32>
    %206 = math.rsqrt %205 : vector<24x1xf32>
    %207 = vector.broadcast %206 : vector<24x1xf32> to vector<24x128xf32>
    %208 = arith.mulf %198, %207 : vector<24x128xf32>
    %209 = vector.broadcast %36 : vector<1x128xf32> to vector<24x128xf32>
    %210 = arith.mulf %208, %209 : vector<24x128xf32>
    %211 = vector.broadcast %38 : vector<1x128xf32> to vector<24x128xf32>
    %212 = arith.addf %210, %211 : vector<24x128xf32>
    %c1_83 = arith.constant 1 : index
    %c0_84 = arith.constant 0 : index
    %c0_85 = arith.constant 0 : index
    %213 = vector.load %arg4[%c1_83, %c0_84, %c0_85] : memref<2x128x384xf32, #tpu.memory_space<vmem>>, vector<1x128x384xf32>
    %214 = vector.shape_cast %213 : vector<1x128x384xf32> to vector<128x384xf32>
    %c1_86 = arith.constant 1 : index
    %c0_87 = arith.constant 0 : index
    %c0_88 = arith.constant 0 : index
    %215 = vector.load %arg5[%c1_86, %c0_87, %c0_88] : memref<2x1x384xf32, #tpu.memory_space<vmem>>, vector<1x1x384xf32>
    %216 = vector.shape_cast %215 : vector<1x1x384xf32> to vector<1x384xf32>
    %c1_89 = arith.constant 1 : index
    %c0_90 = arith.constant 0 : index
    %c0_91 = arith.constant 0 : index
    %217 = vector.load %arg6[%c1_89, %c0_90, %c0_91] : memref<2x128x128xf32, #tpu.memory_space<vmem>>, vector<1x128x128xf32>
    %218 = vector.shape_cast %217 : vector<1x128x128xf32> to vector<128x128xf32>
    %c1_92 = arith.constant 1 : index
    %c0_93 = arith.constant 0 : index
    %c0_94 = arith.constant 0 : index
    %219 = vector.load %arg7[%c1_92, %c0_93, %c0_94] : memref<2x1x128xf32, #tpu.memory_space<vmem>>, vector<1x1x128xf32>
    %220 = vector.shape_cast %219 : vector<1x1x128xf32> to vector<1x128xf32>
    %c1_95 = arith.constant 1 : index
    %c0_96 = arith.constant 0 : index
    %c0_97 = arith.constant 0 : index
    %221 = vector.load %arg8[%c1_95, %c0_96, %c0_97] : memref<2x1x128xf32, #tpu.memory_space<vmem>>, vector<1x1x128xf32>
    %222 = vector.shape_cast %221 : vector<1x1x128xf32> to vector<1x128xf32>
    %c1_98 = arith.constant 1 : index
    %c0_99 = arith.constant 0 : index
    %c0_100 = arith.constant 0 : index
    %223 = vector.load %arg9[%c1_98, %c0_99, %c0_100] : memref<2x1x128xf32, #tpu.memory_space<vmem>>, vector<1x1x128xf32>
    %224 = vector.shape_cast %223 : vector<1x1x128xf32> to vector<1x128xf32>
    %c1_101 = arith.constant 1 : index
    %c0_102 = arith.constant 0 : index
    %c0_103 = arith.constant 0 : index
    %225 = vector.load %arg10[%c1_101, %c0_102, %c0_103] : memref<2x128x128xf32, #tpu.memory_space<vmem>>, vector<1x128x128xf32>
    %226 = vector.shape_cast %225 : vector<1x128x128xf32> to vector<128x128xf32>
    %c1_104 = arith.constant 1 : index
    %c0_105 = arith.constant 0 : index
    %c0_106 = arith.constant 0 : index
    %227 = vector.load %arg11[%c1_104, %c0_105, %c0_106] : memref<2x1x128xf32, #tpu.memory_space<vmem>>, vector<1x1x128xf32>
    %228 = vector.shape_cast %227 : vector<1x1x128xf32> to vector<1x128xf32>
    %c1_107 = arith.constant 1 : index
    %c0_108 = arith.constant 0 : index
    %c0_109 = arith.constant 0 : index
    %229 = vector.load %arg12[%c1_107, %c0_108, %c0_109] : memref<2x128x128xf32, #tpu.memory_space<vmem>>, vector<1x128x128xf32>
    %230 = vector.shape_cast %229 : vector<1x128x128xf32> to vector<128x128xf32>
    %c1_110 = arith.constant 1 : index
    %c0_111 = arith.constant 0 : index
    %c0_112 = arith.constant 0 : index
    %231 = vector.load %arg13[%c1_110, %c0_111, %c0_112] : memref<2x1x128xf32, #tpu.memory_space<vmem>>, vector<1x1x128xf32>
    %232 = vector.shape_cast %231 : vector<1x1x128xf32> to vector<1x128xf32>
    %c1_113 = arith.constant 1 : index
    %c0_114 = arith.constant 0 : index
    %c0_115 = arith.constant 0 : index
    %233 = vector.load %arg14[%c1_113, %c0_114, %c0_115] : memref<2x1x128xf32, #tpu.memory_space<vmem>>, vector<1x1x128xf32>
    %234 = vector.shape_cast %233 : vector<1x1x128xf32> to vector<1x128xf32>
    %c1_116 = arith.constant 1 : index
    %c0_117 = arith.constant 0 : index
    %c0_118 = arith.constant 0 : index
    %235 = vector.load %arg15[%c1_116, %c0_117, %c0_118] : memref<2x1x128xf32, #tpu.memory_space<vmem>>, vector<1x1x128xf32>
    %236 = vector.shape_cast %235 : vector<1x1x128xf32> to vector<1x128xf32>
    %cst_119 = arith.constant dense<0.000000e+00> : vector<24x384xf32>
    %237 = tpu.matmul %141, %214, %cst_119 {dimension_numbers = #tpu.dot_dimension_numbers<[1], [0], [0], [1], [0, 0, 1, 1], [], []>} : vector<24x128xf32>, vector<128x384xf32>, vector<24x384xf32> -> vector<24x384xf32>
    %238 = vector.broadcast %216 : vector<1x384xf32> to vector<24x384xf32>
    %239 = arith.addf %237, %238 : vector<24x384xf32>
    %240 = vector.extract_strided_slice %239 {offsets = [0, 0], sizes = [24, 128], strides = [1, 1]} : vector<24x384xf32> to vector<24x128xf32>
    %241 = vector.extract_strided_slice %239 {offsets = [0, 128], sizes = [24, 128], strides = [1, 1]} : vector<24x384xf32> to vector<24x128xf32>
    %242 = vector.extract_strided_slice %239 {offsets = [0, 256], sizes = [24, 128], strides = [1, 1]} : vector<24x384xf32> to vector<24x128xf32>
    %cst_120 = arith.constant dense<0.000000e+00> : vector<24x384xf32>
    %243 = tpu.matmul %212, %214, %cst_120 {dimension_numbers = #tpu.dot_dimension_numbers<[1], [0], [0], [1], [0, 0, 1, 1], [], []>} : vector<24x128xf32>, vector<128x384xf32>, vector<24x384xf32> -> vector<24x384xf32>
    %244 = vector.broadcast %216 : vector<1x384xf32> to vector<24x384xf32>
    %245 = arith.addf %243, %244 : vector<24x384xf32>
    %246 = vector.extract_strided_slice %245 {offsets = [0, 0], sizes = [24, 128], strides = [1, 1]} : vector<24x384xf32> to vector<24x128xf32>
    %247 = vector.extract_strided_slice %245 {offsets = [0, 128], sizes = [24, 128], strides = [1, 1]} : vector<24x384xf32> to vector<24x128xf32>
    %248 = vector.extract_strided_slice %245 {offsets = [0, 256], sizes = [24, 128], strides = [1, 1]} : vector<24x384xf32> to vector<24x128xf32>
    %249 = arith.mulf %240, %241 : vector<24x128xf32>
    %cst_121 = arith.constant dense<0.000000e+00> : vector<24xf32>
    %250 = vector.multi_reduction <add>, %249, %cst_121 [1] : vector<24x128xf32> to vector<24xf32>
    %251 = vector.shape_cast %250 : vector<24xf32> to vector<24x1xf32>
    %cst_122 = arith.constant 0.242535621 : f32
    %252 = vector.broadcast %cst_122 : f32 to vector<24x1xf32>
    %253 = arith.mulf %251, %252 : vector<24x1xf32>
    %254 = arith.mulf %240, %247 : vector<24x128xf32>
    %cst_123 = arith.constant dense<0.000000e+00> : vector<24xf32>
    %255 = vector.multi_reduction <add>, %254, %cst_123 [1] : vector<24x128xf32> to vector<24xf32>
    %256 = vector.shape_cast %255 : vector<24xf32> to vector<24x1xf32>
    %cst_124 = arith.constant 0.242535621 : f32
    %257 = vector.broadcast %cst_124 : f32 to vector<24x1xf32>
    %258 = arith.mulf %256, %257 : vector<24x1xf32>
    %259 = arith.mulf %246, %241 : vector<24x128xf32>
    %cst_125 = arith.constant dense<0.000000e+00> : vector<24xf32>
    %260 = vector.multi_reduction <add>, %259, %cst_125 [1] : vector<24x128xf32> to vector<24xf32>
    %261 = vector.shape_cast %260 : vector<24xf32> to vector<24x1xf32>
    %cst_126 = arith.constant 0.242535621 : f32
    %262 = vector.broadcast %cst_126 : f32 to vector<24x1xf32>
    %263 = arith.mulf %261, %262 : vector<24x1xf32>
    %264 = arith.mulf %246, %247 : vector<24x128xf32>
    %cst_127 = arith.constant dense<0.000000e+00> : vector<24xf32>
    %265 = vector.multi_reduction <add>, %264, %cst_127 [1] : vector<24x128xf32> to vector<24xf32>
    %266 = vector.shape_cast %265 : vector<24xf32> to vector<24x1xf32>
    %cst_128 = arith.constant 0.242535621 : f32
    %267 = vector.broadcast %cst_128 : f32 to vector<24x1xf32>
    %268 = arith.mulf %266, %267 : vector<24x1xf32>
    %269 = arith.maximumf %253, %258 : vector<24x1xf32>
    %270 = arith.subf %253, %269 : vector<24x1xf32>
    %271 = math.exp %270 : vector<24x1xf32>
    %272 = arith.subf %258, %269 : vector<24x1xf32>
    %273 = math.exp %272 : vector<24x1xf32>
    %274 = arith.addf %271, %273 : vector<24x1xf32>
    %275 = tpu.reciprocal %274 {approx = true} : vector<24x1xf32> -> vector<24x1xf32>
    %276 = arith.mulf %271, %275 : vector<24x1xf32>
    %277 = vector.broadcast %276 : vector<24x1xf32> to vector<24x128xf32>
    %278 = arith.mulf %277, %242 : vector<24x128xf32>
    %279 = arith.mulf %273, %275 : vector<24x1xf32>
    %280 = vector.broadcast %279 : vector<24x1xf32> to vector<24x128xf32>
    %281 = arith.mulf %280, %248 : vector<24x128xf32>
    %282 = arith.addf %278, %281 : vector<24x128xf32>
    %cst_129 = arith.constant dense<0.000000e+00> : vector<24x128xf32>
    %283 = tpu.matmul %282, %218, %cst_129 {dimension_numbers = #tpu.dot_dimension_numbers<[1], [0], [0], [1], [0, 0, 1, 1], [], []>} : vector<24x128xf32>, vector<128x128xf32>, vector<24x128xf32> -> vector<24x128xf32>
    %284 = vector.broadcast %220 : vector<1x128xf32> to vector<24x128xf32>
    %285 = arith.addf %283, %284 : vector<24x128xf32>
    %286 = arith.addf %141, %285 : vector<24x128xf32>
    %cst_130 = arith.constant dense<0.000000e+00> : vector<24xf32>
    %287 = vector.multi_reduction <add>, %286, %cst_130 [1] : vector<24x128xf32> to vector<24xf32>
    %288 = vector.shape_cast %287 : vector<24xf32> to vector<24x1xf32>
    %cst_131 = arith.constant 0.0588235296 : f32
    %289 = vector.broadcast %cst_131 : f32 to vector<24x1xf32>
    %290 = arith.mulf %288, %289 : vector<24x1xf32>
    %291 = vector.broadcast %290 : vector<24x1xf32> to vector<24x128xf32>
    %292 = arith.subf %286, %291 : vector<24x128xf32>
    %293 = vector.broadcast %4 : vector<1x128xf32> to vector<24x128xf32>
    %294 = arith.mulf %292, %293 : vector<24x128xf32>
    %295 = arith.mulf %294, %294 : vector<24x128xf32>
    %cst_132 = arith.constant dense<0.000000e+00> : vector<24xf32>
    %296 = vector.multi_reduction <add>, %295, %cst_132 [1] : vector<24x128xf32> to vector<24xf32>
    %297 = vector.shape_cast %296 : vector<24xf32> to vector<24x1xf32>
    %cst_133 = arith.constant 0.0588235296 : f32
    %298 = vector.broadcast %cst_133 : f32 to vector<24x1xf32>
    %299 = arith.mulf %297, %298 : vector<24x1xf32>
    %cst_134 = arith.constant 9.99999974E-6 : f32
    %300 = vector.broadcast %cst_134 : f32 to vector<24x1xf32>
    %301 = arith.addf %299, %300 : vector<24x1xf32>
    %302 = math.rsqrt %301 : vector<24x1xf32>
    %303 = vector.broadcast %302 : vector<24x1xf32> to vector<24x128xf32>
    %304 = arith.mulf %294, %303 : vector<24x128xf32>
    %305 = vector.broadcast %222 : vector<1x128xf32> to vector<24x128xf32>
    %306 = arith.mulf %304, %305 : vector<24x128xf32>
    %307 = vector.broadcast %224 : vector<1x128xf32> to vector<24x128xf32>
    %308 = arith.addf %306, %307 : vector<24x128xf32>
    %cst_135 = arith.constant dense<0.000000e+00> : vector<24x128xf32>
    %309 = tpu.matmul %308, %226, %cst_135 {dimension_numbers = #tpu.dot_dimension_numbers<[1], [0], [0], [1], [0, 0, 1, 1], [], []>} : vector<24x128xf32>, vector<128x128xf32>, vector<24x128xf32> -> vector<24x128xf32>
    %310 = vector.broadcast %228 : vector<1x128xf32> to vector<24x128xf32>
    %311 = arith.addf %309, %310 : vector<24x128xf32>
    %cst_136 = arith.constant 0.000000e+00 : f32
    %312 = vector.broadcast %cst_136 : f32 to vector<24x128xf32>
    %313 = arith.maximumf %311, %312 : vector<24x128xf32>
    %cst_137 = arith.constant dense<0.000000e+00> : vector<24x128xf32>
    %314 = tpu.matmul %313, %230, %cst_137 {dimension_numbers = #tpu.dot_dimension_numbers<[1], [0], [0], [1], [0, 0, 1, 1], [], []>} : vector<24x128xf32>, vector<128x128xf32>, vector<24x128xf32> -> vector<24x128xf32>
    %315 = vector.broadcast %232 : vector<1x128xf32> to vector<24x128xf32>
    %316 = arith.addf %314, %315 : vector<24x128xf32>
    %317 = arith.addf %308, %316 : vector<24x128xf32>
    %cst_138 = arith.constant dense<0.000000e+00> : vector<24xf32>
    %318 = vector.multi_reduction <add>, %317, %cst_138 [1] : vector<24x128xf32> to vector<24xf32>
    %319 = vector.shape_cast %318 : vector<24xf32> to vector<24x1xf32>
    %cst_139 = arith.constant 0.0588235296 : f32
    %320 = vector.broadcast %cst_139 : f32 to vector<24x1xf32>
    %321 = arith.mulf %319, %320 : vector<24x1xf32>
    %322 = vector.broadcast %321 : vector<24x1xf32> to vector<24x128xf32>
    %323 = arith.subf %317, %322 : vector<24x128xf32>
    %324 = vector.broadcast %4 : vector<1x128xf32> to vector<24x128xf32>
    %325 = arith.mulf %323, %324 : vector<24x128xf32>
    %326 = arith.mulf %325, %325 : vector<24x128xf32>
    %cst_140 = arith.constant dense<0.000000e+00> : vector<24xf32>
    %327 = vector.multi_reduction <add>, %326, %cst_140 [1] : vector<24x128xf32> to vector<24xf32>
    %328 = vector.shape_cast %327 : vector<24xf32> to vector<24x1xf32>
    %cst_141 = arith.constant 0.0588235296 : f32
    %329 = vector.broadcast %cst_141 : f32 to vector<24x1xf32>
    %330 = arith.mulf %328, %329 : vector<24x1xf32>
    %cst_142 = arith.constant 9.99999974E-6 : f32
    %331 = vector.broadcast %cst_142 : f32 to vector<24x1xf32>
    %332 = arith.addf %330, %331 : vector<24x1xf32>
    %333 = math.rsqrt %332 : vector<24x1xf32>
    %334 = vector.broadcast %333 : vector<24x1xf32> to vector<24x128xf32>
    %335 = arith.mulf %325, %334 : vector<24x128xf32>
    %336 = vector.broadcast %234 : vector<1x128xf32> to vector<24x128xf32>
    %337 = arith.mulf %335, %336 : vector<24x128xf32>
    %338 = vector.broadcast %236 : vector<1x128xf32> to vector<24x128xf32>
    %339 = arith.addf %337, %338 : vector<24x128xf32>
    %340 = arith.maximumf %263, %268 : vector<24x1xf32>
    %341 = arith.subf %263, %340 : vector<24x1xf32>
    %342 = math.exp %341 : vector<24x1xf32>
    %343 = arith.subf %268, %340 : vector<24x1xf32>
    %344 = math.exp %343 : vector<24x1xf32>
    %345 = arith.addf %342, %344 : vector<24x1xf32>
    %346 = tpu.reciprocal %345 {approx = true} : vector<24x1xf32> -> vector<24x1xf32>
    %347 = arith.mulf %342, %346 : vector<24x1xf32>
    %348 = vector.broadcast %347 : vector<24x1xf32> to vector<24x128xf32>
    %349 = arith.mulf %348, %242 : vector<24x128xf32>
    %350 = arith.mulf %344, %346 : vector<24x1xf32>
    %351 = vector.broadcast %350 : vector<24x1xf32> to vector<24x128xf32>
    %352 = arith.mulf %351, %248 : vector<24x128xf32>
    %353 = arith.addf %349, %352 : vector<24x128xf32>
    %cst_143 = arith.constant dense<0.000000e+00> : vector<24x128xf32>
    %354 = tpu.matmul %353, %218, %cst_143 {dimension_numbers = #tpu.dot_dimension_numbers<[1], [0], [0], [1], [0, 0, 1, 1], [], []>} : vector<24x128xf32>, vector<128x128xf32>, vector<24x128xf32> -> vector<24x128xf32>
    %355 = vector.broadcast %220 : vector<1x128xf32> to vector<24x128xf32>
    %356 = arith.addf %354, %355 : vector<24x128xf32>
    %357 = arith.addf %212, %356 : vector<24x128xf32>
    %cst_144 = arith.constant dense<0.000000e+00> : vector<24xf32>
    %358 = vector.multi_reduction <add>, %357, %cst_144 [1] : vector<24x128xf32> to vector<24xf32>
    %359 = vector.shape_cast %358 : vector<24xf32> to vector<24x1xf32>
    %cst_145 = arith.constant 0.0588235296 : f32
    %360 = vector.broadcast %cst_145 : f32 to vector<24x1xf32>
    %361 = arith.mulf %359, %360 : vector<24x1xf32>
    %362 = vector.broadcast %361 : vector<24x1xf32> to vector<24x128xf32>
    %363 = arith.subf %357, %362 : vector<24x128xf32>
    %364 = vector.broadcast %4 : vector<1x128xf32> to vector<24x128xf32>
    %365 = arith.mulf %363, %364 : vector<24x128xf32>
    %366 = arith.mulf %365, %365 : vector<24x128xf32>
    %cst_146 = arith.constant dense<0.000000e+00> : vector<24xf32>
    %367 = vector.multi_reduction <add>, %366, %cst_146 [1] : vector<24x128xf32> to vector<24xf32>
    %368 = vector.shape_cast %367 : vector<24xf32> to vector<24x1xf32>
    %cst_147 = arith.constant 0.0588235296 : f32
    %369 = vector.broadcast %cst_147 : f32 to vector<24x1xf32>
    %370 = arith.mulf %368, %369 : vector<24x1xf32>
    %cst_148 = arith.constant 9.99999974E-6 : f32
    %371 = vector.broadcast %cst_148 : f32 to vector<24x1xf32>
    %372 = arith.addf %370, %371 : vector<24x1xf32>
    %373 = math.rsqrt %372 : vector<24x1xf32>
    %374 = vector.broadcast %373 : vector<24x1xf32> to vector<24x128xf32>
    %375 = arith.mulf %365, %374 : vector<24x128xf32>
    %376 = vector.broadcast %222 : vector<1x128xf32> to vector<24x128xf32>
    %377 = arith.mulf %375, %376 : vector<24x128xf32>
    %378 = vector.broadcast %224 : vector<1x128xf32> to vector<24x128xf32>
    %379 = arith.addf %377, %378 : vector<24x128xf32>
    %cst_149 = arith.constant dense<0.000000e+00> : vector<24x128xf32>
    %380 = tpu.matmul %379, %226, %cst_149 {dimension_numbers = #tpu.dot_dimension_numbers<[1], [0], [0], [1], [0, 0, 1, 1], [], []>} : vector<24x128xf32>, vector<128x128xf32>, vector<24x128xf32> -> vector<24x128xf32>
    %381 = vector.broadcast %228 : vector<1x128xf32> to vector<24x128xf32>
    %382 = arith.addf %380, %381 : vector<24x128xf32>
    %cst_150 = arith.constant 0.000000e+00 : f32
    %383 = vector.broadcast %cst_150 : f32 to vector<24x128xf32>
    %384 = arith.maximumf %382, %383 : vector<24x128xf32>
    %cst_151 = arith.constant dense<0.000000e+00> : vector<24x128xf32>
    %385 = tpu.matmul %384, %230, %cst_151 {dimension_numbers = #tpu.dot_dimension_numbers<[1], [0], [0], [1], [0, 0, 1, 1], [], []>} : vector<24x128xf32>, vector<128x128xf32>, vector<24x128xf32> -> vector<24x128xf32>
    %386 = vector.broadcast %232 : vector<1x128xf32> to vector<24x128xf32>
    %387 = arith.addf %385, %386 : vector<24x128xf32>
    %388 = arith.addf %379, %387 : vector<24x128xf32>
    %cst_152 = arith.constant dense<0.000000e+00> : vector<24xf32>
    %389 = vector.multi_reduction <add>, %388, %cst_152 [1] : vector<24x128xf32> to vector<24xf32>
    %390 = vector.shape_cast %389 : vector<24xf32> to vector<24x1xf32>
    %cst_153 = arith.constant 0.0588235296 : f32
    %391 = vector.broadcast %cst_153 : f32 to vector<24x1xf32>
    %392 = arith.mulf %390, %391 : vector<24x1xf32>
    %393 = vector.broadcast %392 : vector<24x1xf32> to vector<24x128xf32>
    %394 = arith.subf %388, %393 : vector<24x128xf32>
    %395 = vector.broadcast %4 : vector<1x128xf32> to vector<24x128xf32>
    %396 = arith.mulf %394, %395 : vector<24x128xf32>
    %397 = arith.mulf %396, %396 : vector<24x128xf32>
    %cst_154 = arith.constant dense<0.000000e+00> : vector<24xf32>
    %398 = vector.multi_reduction <add>, %397, %cst_154 [1] : vector<24x128xf32> to vector<24xf32>
    %399 = vector.shape_cast %398 : vector<24xf32> to vector<24x1xf32>
    %cst_155 = arith.constant 0.0588235296 : f32
    %400 = vector.broadcast %cst_155 : f32 to vector<24x1xf32>
    %401 = arith.mulf %399, %400 : vector<24x1xf32>
    %cst_156 = arith.constant 9.99999974E-6 : f32
    %402 = vector.broadcast %cst_156 : f32 to vector<24x1xf32>
    %403 = arith.addf %401, %402 : vector<24x1xf32>
    %404 = math.rsqrt %403 : vector<24x1xf32>
    %405 = vector.broadcast %404 : vector<24x1xf32> to vector<24x128xf32>
    %406 = arith.mulf %396, %405 : vector<24x128xf32>
    %407 = vector.broadcast %234 : vector<1x128xf32> to vector<24x128xf32>
    %408 = arith.mulf %406, %407 : vector<24x128xf32>
    %409 = vector.broadcast %236 : vector<1x128xf32> to vector<24x128xf32>
    %410 = arith.addf %408, %409 : vector<24x128xf32>
    %411 = tpu.iota {dimensions = array<i32: 1>} : vector<24x24xi32>
    %c17_i32_157 = arith.constant 17 : i32
    %412 = vector.broadcast %c17_i32_157 : i32 to vector<24x24xi32>
    %413 = arith.cmpi slt, %411, %412 : vector<24x24xi32>
    %c0_158 = arith.constant 0 : index
    %c0_159 = arith.constant 0 : index
    %414 = vector.load %arg16[%c0_158, %c0_159] : memref<128x384xf32, #tpu.memory_space<vmem>>, vector<128x384xf32>
    %c0_160 = arith.constant 0 : index
    %c0_161 = arith.constant 0 : index
    %415 = vector.load %arg17[%c0_160, %c0_161] : memref<1x384xf32, #tpu.memory_space<vmem>>, vector<1x384xf32>
    %c0_162 = arith.constant 0 : index
    %c0_163 = arith.constant 0 : index
    %416 = vector.load %arg18[%c0_162, %c0_163] : memref<24x24xf32, #tpu.memory_space<vmem>>, vector<24x24xf32>
    %c0_164 = arith.constant 0 : index
    %c0_165 = arith.constant 0 : index
    %417 = vector.load %arg19[%c0_164, %c0_165] : memref<128x128xf32, #tpu.memory_space<vmem>>, vector<128x128xf32>
    %c0_166 = arith.constant 0 : index
    %c0_167 = arith.constant 0 : index
    %418 = vector.load %arg20[%c0_166, %c0_167] : memref<1x128xf32, #tpu.memory_space<vmem>>, vector<1x128xf32>
    %cst_168 = arith.constant dense<0.000000e+00> : vector<24x384xf32>
    %419 = tpu.matmul %339, %414, %cst_168 {dimension_numbers = #tpu.dot_dimension_numbers<[1], [0], [0], [1], [0, 0, 1, 1], [], []>} : vector<24x128xf32>, vector<128x384xf32>, vector<24x384xf32> -> vector<24x384xf32>
    %420 = vector.broadcast %415 : vector<1x384xf32> to vector<24x384xf32>
    %421 = arith.addf %419, %420 : vector<24x384xf32>
    %422 = vector.extract_strided_slice %421 {offsets = [0, 0], sizes = [24, 128], strides = [1, 1]} : vector<24x384xf32> to vector<24x128xf32>
    %423 = vector.extract_strided_slice %421 {offsets = [0, 128], sizes = [24, 128], strides = [1, 1]} : vector<24x384xf32> to vector<24x128xf32>
    %424 = vector.extract_strided_slice %421 {offsets = [0, 256], sizes = [24, 128], strides = [1, 1]} : vector<24x384xf32> to vector<24x128xf32>
    %cst_169 = arith.constant dense<0.000000e+00> : vector<24x24xf32>
    %425 = tpu.matmul %422, %423, %cst_169 {dimension_numbers = #tpu.dot_dimension_numbers<[1], [1], [0], [0], [0, 0, 1, 0], [], []>} : vector<24x128xf32>, vector<24x128xf32>, vector<24x24xf32> -> vector<24x24xf32>
    %cst_170 = arith.constant 0.242535621 : f32
    %426 = vector.broadcast %cst_170 : f32 to vector<24x24xf32>
    %427 = arith.mulf %425, %426 : vector<24x24xf32>
    %cst_171 = arith.constant -1.000000e+30 : f32
    %428 = vector.broadcast %cst_171 : f32 to vector<24x24xf32>
    %429 = arith.select %413, %427, %428 : vector<24x24xi1>, vector<24x24xf32>
    %cst_172 = arith.constant dense<0xFF800000> : vector<24xf32>
    %430 = vector.multi_reduction <maximumf>, %429, %cst_172 [1] : vector<24x24xf32> to vector<24xf32>
    %431 = vector.shape_cast %430 : vector<24xf32> to vector<24x1xf32>
    %432 = vector.broadcast %431 : vector<24x1xf32> to vector<24x24xf32>
    %433 = arith.subf %429, %432 : vector<24x24xf32>
    %434 = math.exp %433 : vector<24x24xf32>
    %cst_173 = arith.constant dense<0.000000e+00> : vector<24xf32>
    %435 = vector.multi_reduction <add>, %434, %cst_173 [1] : vector<24x24xf32> to vector<24xf32>
    %436 = vector.shape_cast %435 : vector<24xf32> to vector<24x1xf32>
    %437 = tpu.reciprocal %436 {approx = true} : vector<24x1xf32> -> vector<24x1xf32>
    %438 = vector.broadcast %437 : vector<24x1xf32> to vector<24x24xf32>
    %439 = arith.mulf %434, %438 : vector<24x24xf32>
    %cst_174 = arith.constant dense<0.000000e+00> : vector<24x24xf32>
    %440 = tpu.matmul %439, %416, %cst_174 {dimension_numbers = #tpu.dot_dimension_numbers<[1], [0], [0], [1], [0, 0, 1, 1], [], []>} : vector<24x24xf32>, vector<24x24xf32>, vector<24x24xf32> -> vector<24x24xf32>
    %cst_175 = arith.constant dense<0.000000e+00> : vector<24x128xf32>
    %441 = tpu.matmul %440, %424, %cst_175 {dimension_numbers = #tpu.dot_dimension_numbers<[1], [0], [0], [1], [0, 0, 1, 1], [], []>} : vector<24x24xf32>, vector<24x128xf32>, vector<24x128xf32> -> vector<24x128xf32>
    %442 = vector.extract_strided_slice %441 {offsets = [0, 0], sizes = [1, 128], strides = [1, 1]} : vector<24x128xf32> to vector<1x128xf32>
    %cst_176 = arith.constant dense<0.000000e+00> : vector<1x128xf32>
    %443 = tpu.matmul %442, %417, %cst_176 {dimension_numbers = #tpu.dot_dimension_numbers<[1], [0], [0], [1], [0, 0, 1, 1], [], []>} : vector<1x128xf32>, vector<128x128xf32>, vector<1x128xf32> -> vector<1x128xf32>
    %444 = arith.addf %443, %418 : vector<1x128xf32>
    %c0_177 = arith.constant 0 : index
    %c0_178 = arith.constant 0 : index
    %445 = vector.load %arg21[%c0_177, %c0_178] : memref<2x128xf32, #tpu.memory_space<vmem>>, vector<1x128xf32>
    tpu.vector_store %arg21[%c0_177, %c0_178], %444 {strides = array<i32>} : memref<2x128xf32, #tpu.memory_space<vmem>>, vector<1x128xf32>,
    %cst_179 = arith.constant dense<0.000000e+00> : vector<24x384xf32>
    %446 = tpu.matmul %410, %414, %cst_179 {dimension_numbers = #tpu.dot_dimension_numbers<[1], [0], [0], [1], [0, 0, 1, 1], [], []>} : vector<24x128xf32>, vector<128x384xf32>, vector<24x384xf32> -> vector<24x384xf32>
    %447 = vector.broadcast %415 : vector<1x384xf32> to vector<24x384xf32>
    %448 = arith.addf %446, %447 : vector<24x384xf32>
    %449 = vector.extract_strided_slice %448 {offsets = [0, 0], sizes = [24, 128], strides = [1, 1]} : vector<24x384xf32> to vector<24x128xf32>
    %450 = vector.extract_strided_slice %448 {offsets = [0, 128], sizes = [24, 128], strides = [1, 1]} : vector<24x384xf32> to vector<24x128xf32>
    %451 = vector.extract_strided_slice %448 {offsets = [0, 256], sizes = [24, 128], strides = [1, 1]} : vector<24x384xf32> to vector<24x128xf32>
    %cst_180 = arith.constant dense<0.000000e+00> : vector<24x24xf32>
    %452 = tpu.matmul %449, %450, %cst_180 {dimension_numbers = #tpu.dot_dimension_numbers<[1], [1], [0], [0], [0, 0, 1, 0], [], []>} : vector<24x128xf32>, vector<24x128xf32>, vector<24x24xf32> -> vector<24x24xf32>
    %cst_181 = arith.constant 0.242535621 : f32
    %453 = vector.broadcast %cst_181 : f32 to vector<24x24xf32>
    %454 = arith.mulf %452, %453 : vector<24x24xf32>
    %cst_182 = arith.constant -1.000000e+30 : f32
    %455 = vector.broadcast %cst_182 : f32 to vector<24x24xf32>
    %456 = arith.select %413, %454, %455 : vector<24x24xi1>, vector<24x24xf32>
    %cst_183 = arith.constant dense<0xFF800000> : vector<24xf32>
    %457 = vector.multi_reduction <maximumf>, %456, %cst_183 [1] : vector<24x24xf32> to vector<24xf32>
    %458 = vector.shape_cast %457 : vector<24xf32> to vector<24x1xf32>
    %459 = vector.broadcast %458 : vector<24x1xf32> to vector<24x24xf32>
    %460 = arith.subf %456, %459 : vector<24x24xf32>
    %461 = math.exp %460 : vector<24x24xf32>
    %cst_184 = arith.constant dense<0.000000e+00> : vector<24xf32>
    %462 = vector.multi_reduction <add>, %461, %cst_184 [1] : vector<24x24xf32> to vector<24xf32>
    %463 = vector.shape_cast %462 : vector<24xf32> to vector<24x1xf32>
    %464 = tpu.reciprocal %463 {approx = true} : vector<24x1xf32> -> vector<24x1xf32>
    %465 = vector.broadcast %464 : vector<24x1xf32> to vector<24x24xf32>
    %466 = arith.mulf %461, %465 : vector<24x24xf32>
    %cst_185 = arith.constant dense<0.000000e+00> : vector<24x24xf32>
    %467 = tpu.matmul %466, %416, %cst_185 {dimension_numbers = #tpu.dot_dimension_numbers<[1], [0], [0], [1], [0, 0, 1, 1], [], []>} : vector<24x24xf32>, vector<24x24xf32>, vector<24x24xf32> -> vector<24x24xf32>
    %cst_186 = arith.constant dense<0.000000e+00> : vector<24x128xf32>
    %468 = tpu.matmul %467, %451, %cst_186 {dimension_numbers = #tpu.dot_dimension_numbers<[1], [0], [0], [1], [0, 0, 1, 1], [], []>} : vector<24x24xf32>, vector<24x128xf32>, vector<24x128xf32> -> vector<24x128xf32>
    %469 = vector.extract_strided_slice %468 {offsets = [0, 0], sizes = [1, 128], strides = [1, 1]} : vector<24x128xf32> to vector<1x128xf32>
    %cst_187 = arith.constant dense<0.000000e+00> : vector<1x128xf32>
    %470 = tpu.matmul %469, %417, %cst_187 {dimension_numbers = #tpu.dot_dimension_numbers<[1], [0], [0], [1], [0, 0, 1, 1], [], []>} : vector<1x128xf32>, vector<128x128xf32>, vector<1x128xf32> -> vector<1x128xf32>
    %471 = arith.addf %470, %418 : vector<1x128xf32>
    %c1_188 = arith.constant 1 : index
    %c0_189 = arith.constant 0 : index
    %472 = vector.load %arg21[%c1_188, %c0_189] : memref<2x128xf32, #tpu.memory_space<vmem>>, vector<1x128xf32>
    tpu.vector_store %arg21[%c1_188, %c0_189], %471 {strides = array<i32>} : memref<2x128xf32, #tpu.memory_space<vmem>>, vector<1x128xf32>,
    return
  }
  func.func @transform_0(%arg0: i32) -> (i32, i32, i32) {
    %c0_i32 = arith.constant 0 : i32
    %c0_i32_0 = arith.constant 0 : i32
    %c0_i32_1 = arith.constant 0 : i32
    %c0_i32_2 = arith.constant 0 : i32
    return %c0_i32, %c0_i32_0, %c0_i32_1 : i32, i32, i32
  }
  func.func @transform_1(%arg0: i32) -> (i32, i32) {
    %c0_i32 = arith.constant 0 : i32
    %c0_i32_0 = arith.constant 0 : i32
    %c0_i32_1 = arith.constant 0 : i32
    return %c0_i32, %c0_i32_0 : i32, i32
  }
  func.func @transform_2(%arg0: i32) -> (i32, i32) {
    %c0_i32 = arith.constant 0 : i32
    %c0_i32_0 = arith.constant 0 : i32
    %c0_i32_1 = arith.constant 0 : i32
    return %c0_i32, %c0_i32_0 : i32, i32
  }
  func.func @transform_3(%arg0: i32) -> (i32, i32, i32) {
    %c0_i32 = arith.constant 0 : i32
    %c0_i32_0 = arith.constant 0 : i32
    %c0_i32_1 = arith.constant 0 : i32
    %c0_i32_2 = arith.constant 0 : i32
    return %c0_i32, %c0_i32_0, %c0_i32_1 : i32, i32, i32
  }
  func.func @transform_4(%arg0: i32) -> (i32, i32, i32) {
    %c0_i32 = arith.constant 0 : i32
    %c0_i32_0 = arith.constant 0 : i32
    %c0_i32_1 = arith.constant 0 : i32
    %c0_i32_2 = arith.constant 0 : i32
    return %c0_i32, %c0_i32_0, %c0_i32_1 : i32, i32, i32
  }
  func.func @transform_5(%arg0: i32) -> (i32, i32, i32) {
    %c0_i32 = arith.constant 0 : i32
    %c0_i32_0 = arith.constant 0 : i32
    %c0_i32_1 = arith.constant 0 : i32
    %c0_i32_2 = arith.constant 0 : i32
    return %c0_i32, %c0_i32_0, %c0_i32_1 : i32, i32, i32
  }
  func.func @transform_6(%arg0: i32) -> (i32, i32, i32) {
    %c0_i32 = arith.constant 0 : i32
    %c0_i32_0 = arith.constant 0 : i32
    %c0_i32_1 = arith.constant 0 : i32
    %c0_i32_2 = arith.constant 0 : i32
    return %c0_i32, %c0_i32_0, %c0_i32_1 : i32, i32, i32
  }
  func.func @transform_7(%arg0: i32) -> (i32, i32, i32) {
    %c0_i32 = arith.constant 0 : i32
    %c0_i32_0 = arith.constant 0 : i32
    %c0_i32_1 = arith.constant 0 : i32
    %c0_i32_2 = arith.constant 0 : i32
    return %c0_i32, %c0_i32_0, %c0_i32_1 : i32, i32, i32
  }
  func.func @transform_8(%arg0: i32) -> (i32, i32, i32) {
    %c0_i32 = arith.constant 0 : i32
    %c0_i32_0 = arith.constant 0 : i32
    %c0_i32_1 = arith.constant 0 : i32
    %c0_i32_2 = arith.constant 0 : i32
    return %c0_i32, %c0_i32_0, %c0_i32_1 : i32, i32, i32
  }
  func.func @transform_9(%arg0: i32) -> (i32, i32, i32) {
    %c0_i32 = arith.constant 0 : i32
    %c0_i32_0 = arith.constant 0 : i32
    %c0_i32_1 = arith.constant 0 : i32
    %c0_i32_2 = arith.constant 0 : i32
    return %c0_i32, %c0_i32_0, %c0_i32_1 : i32, i32, i32
  }
  func.func @transform_10(%arg0: i32) -> (i32, i32, i32) {
    %c0_i32 = arith.constant 0 : i32
    %c0_i32_0 = arith.constant 0 : i32
    %c0_i32_1 = arith.constant 0 : i32
    %c0_i32_2 = arith.constant 0 : i32
    return %c0_i32, %c0_i32_0, %c0_i32_1 : i32, i32, i32
  }
  func.func @transform_11(%arg0: i32) -> (i32, i32, i32) {
    %c0_i32 = arith.constant 0 : i32
    %c0_i32_0 = arith.constant 0 : i32
    %c0_i32_1 = arith.constant 0 : i32
    %c0_i32_2 = arith.constant 0 : i32
    return %c0_i32, %c0_i32_0, %c0_i32_1 : i32, i32, i32
  }
  func.func @transform_12(%arg0: i32) -> (i32, i32, i32) {
    %c0_i32 = arith.constant 0 : i32
    %c0_i32_0 = arith.constant 0 : i32
    %c0_i32_1 = arith.constant 0 : i32
    %c0_i32_2 = arith.constant 0 : i32
    return %c0_i32, %c0_i32_0, %c0_i32_1 : i32, i32, i32
  }
  func.func @transform_13(%arg0: i32) -> (i32, i32, i32) {
    %c0_i32 = arith.constant 0 : i32
    %c0_i32_0 = arith.constant 0 : i32
    %c0_i32_1 = arith.constant 0 : i32
    %c0_i32_2 = arith.constant 0 : i32
    return %c0_i32, %c0_i32_0, %c0_i32_1 : i32, i32, i32
  }
  func.func @transform_14(%arg0: i32) -> (i32, i32, i32) {
    %c0_i32 = arith.constant 0 : i32
    %c0_i32_0 = arith.constant 0 : i32
    %c0_i32_1 = arith.constant 0 : i32
    %c0_i32_2 = arith.constant 0 : i32
    return %c0_i32, %c0_i32_0, %c0_i32_1 : i32, i32, i32
  }
  func.func @transform_15(%arg0: i32) -> (i32, i32) {
    %c0_i32 = arith.constant 0 : i32
    %c0_i32_0 = arith.constant 0 : i32
    %c0_i32_1 = arith.constant 0 : i32
    return %c0_i32, %c0_i32_0 : i32, i32
  }
  func.func @transform_16(%arg0: i32) -> (i32, i32) {
    %c0_i32 = arith.constant 0 : i32
    %c0_i32_0 = arith.constant 0 : i32
    %c0_i32_1 = arith.constant 0 : i32
    return %c0_i32, %c0_i32_0 : i32, i32
  }
  func.func @transform_17(%arg0: i32) -> (i32, i32) {
    %c0_i32 = arith.constant 0 : i32
    %c0_i32_0 = arith.constant 0 : i32
    %c0_i32_1 = arith.constant 0 : i32
    return %c0_i32, %c0_i32_0 : i32, i32
  }
  func.func @transform_18(%arg0: i32) -> (i32, i32) {
    %c0_i32 = arith.constant 0 : i32
    %c0_i32_0 = arith.constant 0 : i32
    %c0_i32_1 = arith.constant 0 : i32
    return %c0_i32, %c0_i32_0 : i32, i32
  }
  func.func @transform_19(%arg0: i32) -> (i32, i32) {
    %c0_i32 = arith.constant 0 : i32
    %c0_i32_0 = arith.constant 0 : i32
    %c0_i32_1 = arith.constant 0 : i32
    return %c0_i32, %c0_i32_0 : i32, i32
  }
  func.func @transform_20(%arg0: i32) -> (i32, i32) {
    %c0_i32 = arith.constant 0 : i32
    %c0_i32_0 = arith.constant 0 : i32
    %c0_i32_1 = arith.constant 0 : i32
    return %c0_i32, %c0_i32_0 : i32, i32
  }
}

</mosaic_0001>

<bundles_post_ra>
// kernel: vit_forward.1
= control target key start
LH: loop header
LB: loop body
LE: loop exit
PB: predicated region body
PF: predicated region fallthrough
CT: control target
= control target key end

     0   :  { %s4617_s0 = inlined_call_operand.vmem [shape: f32[2,24,128], index: 0, kind: input, shape index: {}]   ;;  %s4618_s1 = inlined_call_operand.hbm [shape: f32[128,128], index: 1, kind: input, shape index: {}]   ;;  %s4619_s2 = inlined_call_operand.vmem [shape: f32[24,128], index: 2, kind: input, shape index: {}]   ;;  %s4620_s3 = inlined_call_operand.vmem [shape: f32[2,128,384], index: 3, kind: input, shape index: {}]   ;;  %s4621_s4 = inlined_call_operand.vmem [shape: f32[2,1,384], index: 4, kind: input, shape index: {}]   ;;  %s4622_s5 = inlined_call_operand.vmem [shape: f32[2,128,128], index: 5, kind: input, shape index: {}]   ;;  %s4623_s6 = inlined_call_operand.vmem [shape: f32[2,1,128], index: 6, kind: input, shape index: {}]   ;;  %s4624_s7 = inlined_call_operand.vmem [shape: f32[2,1,128], index: 7, kind: input, shape index: {}]   ;;  %s4625_s8 = inlined_call_operand.vmem [shape: f32[2,1,128], index: 8, kind: input, shape index: {}]   ;;  %s4626_s9 = inlined_call_operand.vmem [shape: f32[2,128,128], index: 9, kind: input, shape index: {}]   ;;  %s4627_s10 = inlined_call_operand.vmem [shape: f32[2,1,128], index: 10, kind: input, shape index: {}]   ;;  %s4628_s11 = inlined_call_operand.hbm [shape: f32[2,128,128], index: 11, kind: input, shape index: {}]   ;;  %s4629_s12 = inlined_call_operand.vmem [shape: f32[2,1,128], index: 12, kind: input, shape index: {}]   ;;  %s4630_s13 = inlined_call_operand.vmem [shape: f32[2,1,128], index: 13, kind: input, shape index: {}]   ;;  %s4631_s14 = inlined_call_operand.vmem [shape: f32[2,1,128], index: 14, kind: input, shape index: {}]   ;;  %s4632_s15 = inlined_call_operand.vmem [shape: f32[128,384], index: 15, kind: input, shape index: {}]   ;;  %s4633_s16 = inlined_call_operand.vmem [shape: f32[1,384], index: 16, kind: input, shape index: {}]   ;;  %s4634_s17 = inlined_call_operand.vmem [shape: f32[24,24], index: 17, kind: input, shape index: {}]   ;;  %s4635_s18 = inlined_call_operand.hbm [shape: f32[128,128], index: 18, kind: input, shape index: {}]   ;;  %s4636_s19 = inlined_call_operand.vmem [shape: f32[1,128], index: 19, kind: input, shape index: {}]   ;;  %s4637_s20 = inlined_call_operand.hbm [shape: f32[2,128], index: 20, kind: output, shape index: {}]  }
   0x1   :  { %4659 = sst [smem:[#allocation28_spill]] %s4617_s0 }
   0x2   :  { %4660 = sst [smem:[#allocation29_spill]] %s4618_s1 }
   0x3   :  { %4661 = sst [smem:[#allocation30_spill]] %s4619_s2 }
   0x4   :  { %4662 = sst [smem:[#allocation31_spill]] %s4620_s3 }
   0x5   :  { %4663 = sst [smem:[#allocation32_spill]] %s4621_s4 }
   0x6   :  { %4664 = sst [smem:[#allocation33_spill]] %s4637_s20 }
   0x7   :  { %25 = vsyncpa [#allocation3], 0 }
   0x8   :  { %26 = vsyncpa [#allocation6], 0 }
   0x9   :  { %27 = vsyncpa [#allocation4], 0  ;;  %s65_s23 = sshll.u32 %s4628_s11, 4  ;;  %s2878_s24 = smov [#allocation5]   ;;  %s66_s23 = int_to_ptr.hbm [resolvable:$true] %s65_s23 }
   0xa   :  { %s67_s2 = sshll.u32 %s2878_s24, 4  ;;  %s4665_s26 = sld [smem:[#allocation29_spill]]  ;;  %s68_s2 = int_to_ptr.vmem [resolvable:$true] %s67_s2 }
   0xb   :  { %s2879_s28 = smov 128   ;;  %s2880_s4 = smov 8  }
   0xc   :  { %73 = dma.hbm_to_vmem [thread:$0]  %s66_s23, 4096, %s68_s2, [#allocation6], %s2879_s28, %s2879_s28, %s2880_s4  }
   0xd   :  { %s2881_s29 = smov [#allocation2]   ;;  %s90_s20 = sshll.u32 %s4635_s18, 4  ;;  %s91_s20 = int_to_ptr.hbm [resolvable:$true] %s90_s20 }
   0xe   :  { %s36_s30 = sshll.u32 %s2881_s29, 4  ;;  %s2882_s11 = smov [#allocation7]   ;;  %s37_s30 = int_to_ptr.vmem [resolvable:$true] %s36_s30 }
   0xf   :  { %s92_s1 = sshll.u32 %s2882_s11, 4  ;;  %s93_s1 = int_to_ptr.vmem [resolvable:$true] %s92_s1 }
  0x10   :  { %s34_s27 = sshll.u32 %s4665_s26, 4  ;;  %s35_s27 = int_to_ptr.hbm [resolvable:$true] %s34_s27 }
  0x11   :  { %42 = dma.hbm_to_vmem [thread:$0]  %s35_s27, 2048, %s37_s30, [#allocation3], %s2879_s28, %s2879_s28, %s2880_s4  }
  0x12   :  { %98 = dma.hbm_to_vmem [thread:$0]  %s91_s20, 2048, %s93_s1, [#allocation6], %s2879_s28, %s2879_s28, %s2880_s4  }
  0x13   :  { %2872 = dma.done.wait [#allocation3], 2048  }
  0x14   :  { %2873 = vsyncadd [#allocation3], 4294965248 }
  0x15   :  { %2874 = dma.done.wait [#allocation6], 6144  }
  0x16   :  { %2875 = vsyncadd [#allocation6], 4294961152  ;;  %v133_v0 = vld [vmem:[#allocation2 + $0x78] sm:$0xff]  ;;  %v132_v1 = vld [vmem:[#allocation2 + $0x70] sm:$0xff]  ;;  %s4666_s22 = sld [smem:[#allocation31_spill]] }
  0x17   :  { %140 = vmatpush.msra.mxu0 %v133_v0  ;;  %170 = vmatpush.msra.mxu1 %v133_v0  ;;  %v131_v2 = vld [vmem:[#allocation2 + $0x68] sm:$0xff]  ;;  %v130_v3 = vld [vmem:[#allocation2 + $0x60] sm:$0xff]  ;;  %v129_v4 = vld [vmem:[#allocation2 + $0x58] sm:$0xff]  ;;  %s4667_s0 = sld [smem:[#allocation28_spill]] }
  0x18   :  { %v128_v5 = vld [vmem:[#allocation2 + $0x50] sm:$0xff]  ;;  %v127_v6 = vld [vmem:[#allocation2 + $0x48] sm:$0xff]  ;;  %v126_v7 = vld [vmem:[#allocation2 + $0x40] sm:$0xff]  ;;  %s4668_s29 = sld [smem:[#allocation30_spill]] }
  0x19   :  { %141 = vmatpush.msra.mxu0 %v132_v1  ;;  %171 = vmatpush.msra.mxu1 %v132_v1  ;;  %v125_v8 = vld [vmem:[#allocation2 + $0x38] sm:$0xff]  ;;  %v124_v9 = vld [vmem:[#allocation2 + $0x30] sm:$0xff]  ;;  %v123_v14 = vld [vmem:[#allocation2 + $0x28] sm:$0xff]  ;;  %s4669_s23 = sld [smem:[#allocation32_spill]] }
  0x1a   :  { %v122_v17 = vld [vmem:[#allocation2 + $0x20] sm:$0xff]  ;;  %v121_v20 = vld [vmem:[#allocation2 + $0x18] sm:$0xff]  ;;  %v120_v23 = vld [vmem:[#allocation2 + $0x10] sm:$0xff]  ;;  %s4702_s18 = sld [smem:[#allocation33_spill]] }
  0x1b   :  { %142 = vmatpush.msra.mxu0 %v131_v2  ;;  %172 = vmatpush.msra.mxu1 %v131_v2  ;;  %v119_v26 = vld [vmem:[#allocation2 + $0x8] sm:$0xff]  ;;  %v118_v29 = vld [vmem:[#allocation2] sm:$0xff] }
  0x1c   :  { %v241_v10 = vld [vmem:[%s4666_s22 + $0x168] sm:$0xff]  ;;  %v3005_v11 = vld [vmem:[%s4666_s22 + $0x170] sm:$0xff]  ;;  %v3013_v13 = vld [vmem:[%s4666_s22 + $0x158] sm:$0xff] }
  0x1d   :  { %143 = vmatpush.msra.mxu0 %v130_v3  ;;  %173 = vmatpush.msra.mxu1 %v130_v3  ;;  %v238_v12 = vld [vmem:[%s4666_s22 + $0x150] sm:$0xff]  ;;  %v3019_v15 = vld [vmem:[%s4666_s22 + $0x138] sm:$0xff]  ;;  %v3024_v16 = vld [vmem:[%s4666_s22 + $0x140] sm:$0xff] }
  0x1e   :  { %307 = vmatpush.msra.mxu2 %v241_v10  ;;  %333 = vmatpush.msra.mxu3 %v3005_v11  ;;  %v232_v18 = vld [vmem:[%s4666_s22 + $0x120] sm:$0xff]  ;;  %v3033_v19 = vld [vmem:[%s4666_s22 + $0x128] sm:$0xff]  ;;  %v3045_v22 = vld [vmem:[%s4666_s22 + $0x110] sm:$0xff] }
  0x1f   :  { %144 = vmatpush.msra.mxu0 %v129_v4  ;;  %174 = vmatpush.msra.mxu1 %v129_v4  ;;  %v3040_v21 = vld [vmem:[%s4666_s22 + $0x108] sm:$0xff]  ;;  %v3051_v24 = vld [vmem:[%s4666_s22 + $0xf0] sm:$0xff]  ;;  %v3056_v25 = vld [vmem:[%s4666_s22 + $0xf8] sm:$0xff] }
  0x20   :  { %308 = vmatpush.msra.mxu2 %v238_v12  ;;  %334 = vmatpush.msra.mxu3 %v3013_v13  ;;  %v3063_v27 = vld [vmem:[%s4666_s22 + $0xd8] sm:$0xff]  ;;  %v3068_v28 = vld [vmem:[%s4666_s22 + $0xe0] sm:$0xff]  ;;  %v3093_v34 = vld [vmem:[%s4666_s22 + $0xc8] sm:$0xff] }
  0x21   :  { %145 = vmatpush.msra.mxu0 %v128_v5  ;;  %175 = vmatpush.msra.mxu1 %v128_v5  ;;  %v137_v30 = vld [vmem:[%s4667_s0] sm:$0xff]  ;;  %v2508_v31 = vld [vmem:[%s4667_s0 + $0x18] sm:$0xff]  ;;  %v3104_v36 = vld [vmem:[%s4666_s22 + $0xa8] sm:$0xff] }
  0x22   :  { %309 = vmatpush.msra.mxu2 %v3019_v15  ;;  %335 = vmatpush.msra.mxu3 %v3024_v16  ;;  %v3081_v32 = vld [vmem:[%s4666_s22 + $0x178] sm:$0xff]  ;;  %v3088_v33 = vld [vmem:[%s4666_s22 + $0xc0] sm:$0xff]  ;;  %v3109_v37 = vld [vmem:[%s4666_s22 + $0xb0] sm:$0xff] }
  0x23   :  { %146 = vmatpush.msra.mxu0 %v127_v6  ;;  %176 = vmatpush.msra.mxu1 %v127_v6  ;;  %v3098_v35 = vld [vmem:[%s4666_s22 + $0x160] sm:$0xff]  ;;  %v3114_v38 = vld [vmem:[%s4666_s22 + $0x148] sm:$0xff]  ;;  %v3122_v39 = vld [vmem:[%s4666_s22 + $0x90] sm:$0xff] }
  0x24   :  { %310 = vmatpush.msra.mxu2 %v232_v18  ;;  %336 = vmatpush.msra.mxu3 %v3033_v19  ;;  %v3127_v40 = vld [vmem:[%s4666_s22 + $0x98] sm:$0xff]  ;;  %v3132_v41 = vld [vmem:[%s4666_s22 + $0x130] sm:$0xff]  ;;  %v138_v42 = vld [vmem:[%s4667_s0 + $0x8] sm:$0xff] }
  0x25   :  { %147 = vmatpush.msra.mxu0 %v126_v7  ;;  %177 = vmatpush.msra.mxu1 %v126_v7  ;;  %v2509_v43 = vld [vmem:[%s4667_s0 + $0x20] sm:$0xff]  ;;  %v3147_v44 = vld [vmem:[%s4666_s22 + $0x118] sm:$0xff]  ;;  %v3172_v49 = vld [vmem:[%s4666_s22 + $0x68] sm:$0xff] }
  0x26   :  { %311 = vmatpush.msra.mxu2 %v3040_v21  ;;  %337 = vmatpush.msra.mxu3 %v3045_v22  ;;  %v211_v45 = vld [vmem:[%s4666_s22 + $0x78] sm:$0xff]  ;;  %v3158_v46 = vld [vmem:[%s4666_s22 + $0x80] sm:$0xff]  ;;  %v3177_v50 = vld [vmem:[%s4666_s22 + $0xe8] sm:$0xff] }
  0x27   :  { %148 = vmatpush.msra.mxu0 %v125_v8  ;;  %178 = vmatpush.msra.mxu1 %v125_v8  ;;  %v3163_v47 = vld [vmem:[%s4666_s22 + $0x100] sm:$0xff]  ;;  %v205_v51 = vld [vmem:[%s4666_s22 + $0x48] sm:$0xff]  ;;  %v3188_v52 = vld [vmem:[%s4666_s22 + $0x50] sm:$0xff] }
  0x28   :  { %312 = vmatpush.msra.mxu2 %v3051_v24  ;;  %338 = vmatpush.msra.mxu3 %v3056_v25  ;;  %v208_v48 = vld [vmem:[%s4666_s22 + $0x60] sm:$0xff]  ;;  %v222_v53 = vld [vmem:[%s4666_s22 + $0xd0] sm:$0xff]  ;;  %v2510_v56 = vld [vmem:[%s4667_s0 + $0x28] sm:$0xff] }
  0x29   :  { %149 = vmatpush.msra.mxu0 %v124_v9  ;;  %179 = vmatpush.msra.mxu1 %v124_v9  ;;  %v202_v54 = vld [vmem:[%s4666_s22 + $0x30] sm:$0xff]  ;;  %v219_v57 = vld [vmem:[%s4666_s22 + $0xb8] sm:$0xff]  ;;  %v216_v60 = vld [vmem:[%s4666_s22 + $0xa0] sm:$0xff] }
  0x2a   :  { %313 = vmatpush.msra.mxu2 %v3063_v27  ;;  %339 = vmatpush.msra.mxu3 %v3068_v28  ;;  %v139_v55 = vld [vmem:[%s4667_s0 + $0x10] sm:$0xff]  ;;  %v203_v58 = vld [vmem:[%s4666_s22 + $0x38] sm:$0xff]  ;;  %v200_v61 = vld [vmem:[%s4666_s22 + $0x20] sm:$0xff] }
  0x2b   :  { %150 = vmatpush.msra.mxu0 %v123_v14  ;;  %180 = vmatpush.msra.mxu1 %v123_v14  ;;  %v199_v59 = vld [vmem:[%s4666_s22 + $0x18] sm:$0xff]  ;;  %v196_v62 = vld [vmem:[%s4666_s22] sm:$0xff]  ;;  %v213_v63 = vld [vmem:[%s4666_s22 + $0x88] sm:$0xff] }
  0x2c   :  { %314 = vmatpush.msra.mxu2 %v3088_v33  ;;  %340 = vmatpush.msra.mxu3 %v3093_v34  ;;  %v197_v0 = vld [vmem:[%s4666_s22 + $0x8] sm:$0xff]  ;;  %v210_v1 = vld [vmem:[%s4666_s22 + $0x70] sm:$0xff]  ;;  %v207_v2 = vld [vmem:[%s4666_s22 + $0x58] sm:$0xff] }
  0x2d   :  { %151 = vmatpush.msra.mxu0 %v122_v17  ;;  %181 = vmatpush.msra.mxu1 %v122_v17  ;;  %v204_v3 = vld [vmem:[%s4666_s22 + $0x40] sm:$0xff]  ;;  %v201_v4 = vld [vmem:[%s4666_s22 + $0x28] sm:$0xff]  ;;  %v198_v5 = vld [vmem:[%s4666_s22 + $0x10] sm:$0xff] }
  0x2e   :  { %315 = vmatpush.msra.mxu2 %v3104_v36  ;;  %341 = vmatpush.msra.mxu3 %v3109_v37  ;;  %v134_v6 = vld [vmem:[%s4668_s29] sm:$0xff] }
  0x2f   :  { %152 = vmatpush.msra.mxu0 %v121_v20  ;;  %182 = vmatpush.msra.mxu1 %v121_v20 }
  0x30   :  { %316 = vmatpush.msra.mxu2 %v3122_v39  ;;  %342 = vmatpush.msra.mxu3 %v3127_v40 }
  0x31   :  { %153 = vmatpush.msra.mxu0 %v120_v23  ;;  %183 = vmatpush.msra.mxu1 %v120_v23 }
  0x32   :  { %317 = vmatpush.msra.mxu2 %v211_v45  ;;  %343 = vmatpush.msra.mxu3 %v3158_v46 }
  0x33   :  { %154 = vmatpush.msra.mxu0 %v119_v26  ;;  %184 = vmatpush.msra.mxu1 %v119_v26 }
  0x34   :  { %318 = vmatpush.msra.mxu2 %v208_v48  ;;  %344 = vmatpush.msra.mxu3 %v3172_v49 }
  0x35   :  { %155 = vmatpush.msra.mxu0 %v118_v29  ;;  %185 = vmatpush.msra.mxu1 %v118_v29 }
  0x36   :  { %156 = vmatmul.f32.vlgmr.msra.gmra.mxu0 %v137_v30  ;;  %186 = vmatmul.f32.vlgmr.msra.gmra.mxu1 %v2508_v31 }
  0x37   :  { %359 = vmatpush.msrb.mxu0 %v3081_v32  ;;  %385 = vmatpush.msrb.mxu1 %v241_v10 }
  0x38   :  { %319 = vmatpush.msra.mxu2 %v205_v51  ;;  %345 = vmatpush.msra.mxu3 %v3188_v52 }
  0x39   :  { %360 = vmatpush.msrb.mxu0 %v3098_v35  ;;  %386 = vmatpush.msrb.mxu1 %v238_v12 }
  0x3a   :  { %320 = vmatpush.msra.mxu2 %v202_v54  ;;  %346 = vmatpush.msra.mxu3 %v203_v58 }
  0x3b   :  { %361 = vmatpush.msrb.mxu0 %v3114_v38  ;;  %387 = vmatpush.msrb.mxu1 %v3019_v15 }
  0x3c   :  { %321 = vmatpush.msra.mxu2 %v199_v59  ;;  %347 = vmatpush.msra.mxu3 %v200_v61 }
  0x3d   :  { %362 = vmatpush.msrb.mxu0 %v3132_v41  ;;  %388 = vmatpush.msrb.mxu1 %v232_v18 }
  0x3e   :  { %159 = vmatmul.f32.gmra.mxu0 %v138_v42  ;;  %189 = vmatmul.f32.gmra.mxu1 %v2509_v43 }
  0x3f   :  { %363 = vmatpush.msrb.mxu0 %v3147_v44  ;;  %389 = vmatpush.msrb.mxu1 %v3040_v21  ;;  %v3311_v21 = vld [vmem:[%s4669_s23] sm:$0x7] }
  0x40   :  { %322 = vmatpush.msra.mxu2 %v196_v62  ;;  %348 = vmatpush.msra.mxu3 %v197_v0  ;;  %v302_v23 = vperm.slane %v3311_v21, 1 }
  0x41   :  { %364 = vmatpush.msrb.mxu0 %v3163_v47  ;;  %390 = vmatpush.msrb.mxu1 %v3051_v24 }
  0x42   :  { %411 = vmatpush.msrb.mxu2 %v3005_v11  ;;  %437 = vmatpush.msrb.mxu3 %v3081_v32  ;;  %v135_v11 = vld [vmem:[%s4668_s29 + $0x8] sm:$0xff] }
  0x43   :  { %365 = vmatpush.msrb.mxu0 %v3177_v50  ;;  %391 = vmatpush.msrb.mxu1 %v3063_v27 }
  0x44   :  { %412 = vmatpush.msrb.mxu2 %v3013_v13  ;;  %438 = vmatpush.msrb.mxu3 %v3098_v35 }
  0x45   :  { %366 = vmatpush.msrb.mxu0 %v222_v53  ;;  %392 = vmatpush.msrb.mxu1 %v3088_v33 }
  0x46   :  { %162 = vmatmul.f32.gmra.mxu0 %v139_v55  ;;  %192 = vmatmul.f32.gmra.mxu1 %v2510_v56 }
  0x47   :  { %367 = vmatpush.msrb.mxu0 %v219_v57  ;;  %393 = vmatpush.msrb.mxu1 %v3104_v36 }
  0x48   :  { %413 = vmatpush.msrb.mxu2 %v3024_v16  ;;  %439 = vmatpush.msrb.mxu3 %v3114_v38  ;;  %v136_v16 = vld [vmem:[%s4668_s29 + $0x10] sm:$0xff] }
  0x49   :  { %368 = vmatpush.msrb.mxu0 %v216_v60  ;;  %394 = vmatpush.msrb.mxu1 %v3122_v39 }
  0x4a   :  { %414 = vmatpush.msrb.mxu2 %v3033_v19  ;;  %440 = vmatpush.msrb.mxu3 %v3132_v41 }
  0x4b   :  { %369 = vmatpush.msrb.mxu0 %v213_v63  ;;  %395 = vmatpush.msrb.mxu1 %v211_v45 }
  0x4c   :  { %415 = vmatpush.msrb.mxu2 %v3045_v22  ;;  %441 = vmatpush.msrb.mxu3 %v3147_v44  ;;  %v301_v22 = vperm.slane %v3311_v21, 0 }
  0x4d   :  { %370 = vmatpush.msrb.mxu0 %v210_v1  ;;  %396 = vmatpush.msrb.mxu1 %v208_v48 }
  0x4e   :  { %416 = vmatpush.msrb.mxu2 %v3056_v25  ;;  %442 = vmatpush.msrb.mxu3 %v3163_v47 }
  0x4f   :  { %371 = vmatpush.msrb.mxu0 %v207_v2  ;;  %397 = vmatpush.msrb.mxu1 %v205_v51 }
  0x50   :  { %417 = vmatpush.msrb.mxu2 %v3068_v28  ;;  %443 = vmatpush.msrb.mxu3 %v3177_v50 }
  0x51   :  { %372 = vmatpush.msrb.mxu0 %v204_v3  ;;  %398 = vmatpush.msrb.mxu1 %v202_v54 }
  0x52   :  { %418 = vmatpush.msrb.mxu2 %v3093_v34  ;;  %444 = vmatpush.msrb.mxu3 %v222_v53 }
  0x53   :  { %399 = vmatpush.msrb.mxu1 %v199_v59  ;;  %373 = vmatpush.msrb.mxu0 %v201_v4 }
  0x54   :  { %419 = vmatpush.msrb.mxu2 %v3109_v37  ;;  %445 = vmatpush.msrb.mxu3 %v219_v57 }
  0x55   :  { %400 = vmatpush.msrb.mxu1 %v196_v62  ;;  %374 = vmatpush.msrb.mxu0 %v198_v5  ;;  %v258_v62 = vld [vmem:[%s4622_s5 + $0x68] sm:$0xff] }
  0x56   :  { %420 = vmatpush.msrb.mxu2 %v3127_v40  ;;  %446 = vmatpush.msrb.mxu3 %v216_v60  ;;  %v260_v60 = vld [vmem:[%s4622_s5 + $0x78] sm:$0xff] }
  0x57   :  { %556 = vmatpush.msra.mxu0 %v260_v60 }
  0x58   :  { %421 = vmatpush.msrb.mxu2 %v3158_v46  ;;  %447 = vmatpush.msrb.mxu3 %v213_v63  ;;  %v257_v63 = vld [vmem:[%s4622_s5 + $0x60] sm:$0xff] }
  0x5a   :  { %422 = vmatpush.msrb.mxu2 %v3172_v49  ;;  %448 = vmatpush.msrb.mxu3 %v210_v1  ;;  %v255_v1 = vld [vmem:[%s4622_s5 + $0x50] sm:$0xff] }
  0x5c   :  { %423 = vmatpush.msrb.mxu2 %v3188_v52  ;;  %449 = vmatpush.msrb.mxu3 %v207_v2  ;;  %v254_v2 = vld [vmem:[%s4622_s5 + $0x48] sm:$0xff] }
  0x5e   :  { %424 = vmatpush.msrb.mxu2 %v203_v58  ;;  %450 = vmatpush.msrb.mxu3 %v204_v3  ;;  %v253_v3 = vld [vmem:[%s4622_s5 + $0x40] sm:$0xff] }
  0x60   :  { %425 = vmatpush.msrb.mxu2 %v200_v61  ;;  %451 = vmatpush.msrb.mxu3 %v201_v4  ;;  %v259_v61 = vld [vmem:[%s4622_s5 + $0x70] sm:$0xff]  ;;  %v252_v4 = vld [vmem:[%s4622_s5 + $0x38] sm:$0xff] }
  0x61   :  { %557 = vmatpush.msra.mxu0 %v259_v61 }
  0x62   :  { %426 = vmatpush.msrb.mxu2 %v197_v0  ;;  %452 = vmatpush.msrb.mxu3 %v198_v5  ;;  %v256_v0 = vld [vmem:[%s4622_s5 + $0x58] sm:$0xff]  ;;  %v251_v5 = vld [vmem:[%s4622_s5 + $0x30] sm:$0xff] }
  0x63   :  { %558 = vmatpush.msra.mxu0 %v258_v62 }
  0x65   :  { %559 = vmatpush.msra.mxu0 %v257_v63 }
  0x67   :  { %560 = vmatpush.msra.mxu0 %v256_v0 }
  0x69   :  { %561 = vmatpush.msra.mxu0 %v255_v1 }
  0x6b   :  { %562 = vmatpush.msra.mxu0 %v254_v2 }
  0x6d   :  { %563 = vmatpush.msra.mxu0 %v253_v3 }
  0x6f   :  { %564 = vmatpush.msra.mxu0 %v252_v4 }
  0x71   :  { %565 = vmatpush.msra.mxu0 %v251_v5 }
  0xb3   :  { %v157_v7 = vpop.f32.mrf.mxu0  ;;  %v187_v8 = vpop.f32.mrf.mxu1 }
  0xb4   :  { %v3272_v9 = vadd.f32 %v157_v7, %v134_v6  ;;  %v3274_v10 = vadd.f32 %v187_v8, %v134_v6  ;;  %v250_v6 = vld [vmem:[%s4622_s5 + $0x28] sm:$0xff]  ;;  %v249_v8 = vld [vmem:[%s4622_s5 + $0x20] sm:$0xff] }
  0xb5   :  { %566 = vmatpush.msra.mxu0 %v250_v6 }
  0xb6   :  { %323 = vmatmul.f32.vlgmr.msra.gmra.mxu2 %v3272_v9  ;;  %349 = vmatmul.f32.vlgmr.msra.gmra.mxu3 %v3272_v9 }
  0xb7   :  { %375 = vmatmul.f32.vlgmr.msrb.gmra.mxu0 %v3272_v9  ;;  %401 = vmatmul.f32.vlgmr.msrb.gmra.mxu1 %v3274_v10 }
  0xb8   :  { %841 = vmatpush.msra.mxu3 %v260_v60  ;;  %567 = vmatpush.msra.mxu0 %v249_v8 }
  0xba   :  { %842 = vmatpush.msra.mxu3 %v259_v61 }
  0xbb   :  { %v160_v12 = vpop.f32.mrf.mxu0  ;;  %v190_v13 = vpop.f32.mrf.mxu1 }
  0xbc   :  { %v3283_v14 = vadd.f32 %v160_v12, %v135_v11  ;;  %v3285_v15 = vadd.f32 %v190_v13, %v135_v11  ;;  %843 = vmatpush.msra.mxu3 %v258_v62  ;;  %v248_v11 = vld [vmem:[%s4622_s5 + $0x18] sm:$0xff]  ;;  %v247_v12 = vld [vmem:[%s4622_s5 + $0x10] sm:$0xff]  ;;  %v246_v13 = vld [vmem:[%s4622_s5 + $0x8] sm:$0xff] }
  0xbd   :  { %568 = vmatpush.msra.mxu0 %v248_v11 }
  0xbe   :  { %326 = vmatmul.f32.gmra.mxu2 %v3283_v14  ;;  %352 = vmatmul.f32.gmra.mxu3 %v3283_v14 }
  0xbf   :  { %378 = vmatmul.f32.gmra.mxu0 %v3283_v14  ;;  %404 = vmatmul.f32.gmra.mxu1 %v3285_v15 }
  0xc0   :  { %844 = vmatpush.msra.mxu3 %v257_v63  ;;  %569 = vmatpush.msra.mxu0 %v247_v12 }
  0xc2   :  { %845 = vmatpush.msra.mxu3 %v256_v0  ;;  %570 = vmatpush.msra.mxu0 %v246_v13 }
  0xc3   :  { %v163_v17 = vpop.f32.mrf.mxu0  ;;  %v193_v18 = vpop.f32.mrf.mxu1 }
  0xc4   :  { %v3294_v19 = vadd.f32 %v163_v17, %v136_v16  ;;  %v3296_v20 = vadd.f32 %v193_v18, %v136_v16  ;;  %846 = vmatpush.msra.mxu3 %v255_v1 }
  0xc6   :  { %329 = vmatmul.f32.gmra.mxu2 %v3294_v19  ;;  %355 = vmatmul.f32.gmra.mxu3 %v3294_v19 }
  0xc7   :  { %381 = vmatmul.f32.gmra.mxu0 %v3294_v19  ;;  %407 = vmatmul.f32.gmra.mxu1 %v3296_v20 }
  0xc8   :  { %847 = vmatpush.msra.mxu3 %v254_v2 }
  0xca   :  { %848 = vmatpush.msra.mxu3 %v253_v3 }
  0xcc   :  { %849 = vmatpush.msra.mxu3 %v252_v4 }
  0xce   :  { %427 = vmatmul.f32.vlgmr.msrb.gmra.mxu2 %v3274_v10  ;;  %453 = vmatmul.f32.vlgmr.msrb.gmra.mxu3 %v3274_v10 }
  0xcf   :  { %850 = vmatpush.msra.mxu3 %v251_v5 }
  0xd1   :  { %851 = vmatpush.msra.mxu3 %v250_v6 }
  0xd3   :  { %852 = vmatpush.msra.mxu3 %v249_v8 }
  0xd5   :  { %853 = vmatpush.msra.mxu3 %v248_v11 }
  0xd6   :  { %430 = vmatmul.f32.gmra.mxu2 %v3285_v15  ;;  %456 = vmatmul.f32.gmra.mxu3 %v3285_v15 }
  0xd7   :  { %854 = vmatpush.msra.mxu3 %v247_v12 }
  0xd9   :  { %855 = vmatpush.msra.mxu3 %v246_v13 }
  0xde   :  { %433 = vmatmul.f32.gmra.mxu2 %v3296_v20  ;;  %459 = vmatmul.f32.gmra.mxu3 %v3296_v20 }
 0x134   :  { %v402_v39 = vpop.f32.mrf.mxu1 }
 0x135   :  { %v403_v43 = vadd.f32 %v402_v39, %v301_v22 }
 0x139   :  { %v324_v24 = vpop.f32.mrf.mxu2  ;;  %v350_v25 = vpop.f32.mrf.mxu3 }
 0x13a   :  { %v325_v26 = vadd.f32 %v324_v24, %v301_v22  ;;  %v351_v27 = vadd.f32 %v350_v25, %v302_v23 }
 0x13c   :  { %v463_v28 = vmul.f32 %v351_v27, %v325_v26  ;;  %v405_v46 = vpop.f32.mrf.mxu1  ;;  %v487_v48 = vmul.f32 %v403_v43, %v351_v27 }
 0x13d   :  { %v406_v51 = vadd.f32 %v405_v46, %v301_v22 }
 0x13e   :  { %466 = vadd.xlane.f32.xlu0 %v463_v28 }
 0x141   :  { %v327_v29 = vpop.f32.mrf.mxu2  ;;  %v353_v30 = vpop.f32.mrf.mxu3 }
 0x142   :  { %v328_v31 = vadd.f32 %v327_v29, %v301_v22  ;;  %v354_v32 = vadd.f32 %v353_v30, %v302_v23 }
 0x144   :  { %v464_v33 = vmul.f32 %v354_v32, %v328_v31  ;;  %v408_v54 = vpop.f32.mrf.mxu1  ;;  %v488_v57 = vmul.f32 %v406_v51, %v354_v32 }
 0x145   :  { %v409_v56 = vadd.f32 %v408_v54, %v301_v22 }
 0x146   :  { %468 = vadd.xlane.f32.xlu1 %v464_v33 }
 0x149   :  { %v330_v34 = vpop.f32.mrf.mxu2  ;;  %v356_v35 = vpop.f32.mrf.mxu3 }
 0x14a   :  { %v331_v36 = vadd.f32 %v330_v34, %v301_v22  ;;  %v357_v37 = vadd.f32 %v356_v35, %v302_v23 }
 0x14c   :  { %v465_v38 = vmul.f32 %v357_v37, %v331_v36  ;;  %v489_v58 = vmul.f32 %v409_v56, %v357_v37 }
 0x14e   :  { %470 = vadd.xlane.f32.xlu2 %v465_v38 }
 0x151   :  { %v428_v40 = vpop.f32.mrf.mxu2 }
 0x152   :  { %v429_v41 = vadd.f32 %v428_v40, %v302_v23 }
 0x154   :  { %v475_v42 = vmul.f32 %v429_v41, %v325_v26  ;;  %v499_v53 = vmul.f32 %v429_v41, %v403_v43 }
 0x156   :  { %478 = vadd.xlane.f32.xlu0 %v475_v42 }
 0x159   :  { %v431_v44 = vpop.f32.mrf.mxu2 }
 0x15a   :  { %v432_v45 = vadd.f32 %v431_v44, %v302_v23 }
 0x15c   :  { %v476_v47 = vmul.f32 %v432_v45, %v328_v31  ;;  %v500_v55 = vmul.f32 %v432_v45, %v406_v51 }
 0x15e   :  { %480 = vadd.xlane.f32.xlu1 %v476_v47  ;;  %490 = vadd.xlane.f32.xlu0 %v487_v48  ;;  %v376_v48 = vpop.f32.mrf.mxu0 }
 0x161   :  { %v434_v49 = vpop.f32.mrf.mxu2 }
 0x162   :  { %v435_v50 = vadd.f32 %v434_v49, %v302_v23  ;;  %v245_v23 = vld [vmem:[%s4622_s5] sm:$0xff]  ;;  %v454_v49 = vpop.f32.mrf.mxu3 }
 0x163   :  { %571 = vmatpush.msra.mxu0 %v245_v23  ;;  %856 = vmatpush.msra.mxu3 %v245_v23 }
 0x164   :  { %v477_v52 = vmul.f32 %v435_v50, %v331_v36  ;;  %v501_v59 = vmul.f32 %v435_v50, %v409_v56 }
 0x166   :  { %482 = vadd.xlane.f32.xlu2 %v477_v52  ;;  %502 = vadd.xlane.f32.xlu1 %v499_v53  ;;  %v3364_v52 = vperm.slane %v3311_v21, 2  ;;  %v379_v11 = vpop.f32.mrf.mxu0 }
 0x167   :  { %504 = vadd.xlane.f32.xlu0 %v500_v55 }
 0x168   :  { %v3367_v62 = vadd.f32 %v376_v48, %v3364_v52  ;;  %v3370_v5 = vadd.f32 %v454_v49, %v3364_v52 }
 0x16e   :  { %492 = vadd.xlane.f32.xlu2 %v488_v57  ;;  %494 = vadd.xlane.f32.xlu1 %v489_v58 }
 0x176   :  { %506 = vadd.xlane.f32.xlu2 %v501_v59 }
 0x1b1   :  { %v467_v7 = vpop.xlane.xlu0 %466 }
 0x1b2   :  { %v472_v18 = vmul.f32 0.24253562, %v467_v7 }
 0x1b9   :  { %v469_v16 = vpop.xlane.xlu1 %468 }
 0x1ba   :  { %v473_v31 = vmul.f32 0.24253562, %v469_v16  ;;  %v457_v16 = vpop.f32.mrf.mxu3 }
 0x1c1   :  { %v471_v29 = vpop.xlane.xlu2 %470 }
 0x1c2   :  { %v474_v41 = vmul.f32 0.24253562, %v471_v29  ;;  %v460_v48 = vpop.f32.mrf.mxu3 }
 0x1c9   :  { %v479_v17 = vpop.xlane.xlu0 %478 }
 0x1ca   :  { %v484_v22 = vmul.f32 0.24253562, %v479_v17 }
 0x1cc   :  { %v511_v24 = vmax.f32 %v472_v18, %v484_v22 }
 0x1ce   :  { %v514_v25 = vsub.f32 %v472_v18, %v511_v24  ;;  %v523_v26 = vsub.f32 %v484_v22, %v511_v24 }
 0x1d0   :  { %v517_v27 = vmul.f32 1.442695, %v514_v25  ;;  %v526_v28 = vmul.f32 1.442695, %v523_v26 }
 0x1d1   :  { %v481_v30 = vpop.xlane.xlu1 %480  ;;  %v491_v34 = vpop.xlane.xlu0 %490 }
 0x1d2   :  { %2632 = vpow2.f32 %v517_v27  ;;  %v485_v32 = vmul.f32 0.24253562, %v481_v30  ;;  %v496_v42 = vmul.f32 0.24253562, %v491_v34 }
 0x1d3   :  { %2634 = vpow2.f32 %v526_v28  ;;  %v380_v28 = vadd.f32 %v379_v11, %v3364_v52 }
 0x1d4   :  { %v512_v33 = vmax.f32 %v473_v31, %v485_v32 }
 0x1d6   :  { %v515_v35 = vsub.f32 %v473_v31, %v512_v33  ;;  %v524_v36 = vsub.f32 %v485_v32, %v512_v33 }
 0x1d8   :  { %v2633_v37 = vpop.eup %2632  ;;  %v519_v38 = vmul.f32 1.442695, %v515_v35  ;;  %v528_v39 = vmul.f32 1.442695, %v524_v36  ;;  %v458_v35 = vadd.f32 %v457_v16, %v3364_v52 }
 0x1d9   :  { %v2635_v40 = vpop.eup %2634  ;;  %v483_v43 = vpop.xlane.xlu2 %482 }
 0x1da   :  { %v503_v44 = vpop.xlane.xlu1 %502  ;;  %v532_v45 = vadd.f32 %v2635_v40, %v2633_v37  ;;  %2636 = vpow2.f32 %v519_v38  ;;  %v486_v46 = vmul.f32 0.24253562, %v483_v43  ;;  %v505_v57 = vpop.xlane.xlu0 %504 }
 0x1db   :  { %v508_v47 = vmul.f32 0.24253562, %v503_v44  ;;  %2638 = vpow2.f32 %v528_v39  ;;  %v509_v0 = vmul.f32 0.24253562, %v505_v57 }
 0x1dc   :  { %2640 = vrcp.f32 %v532_v45  ;;  %v513_v50 = vmax.f32 %v474_v41, %v486_v46  ;;  %v382_v45 = vpop.f32.mrf.mxu0 }
 0x1dd   :  { %v799_v51 = vmax.f32 %v496_v42, %v508_v47 }
 0x1de   :  { %v516_v53 = vsub.f32 %v474_v41, %v513_v50  ;;  %v525_v54 = vsub.f32 %v486_v46, %v513_v50 }
 0x1df   :  { %v802_v55 = vsub.f32 %v496_v42, %v799_v51  ;;  %v811_v56 = vsub.f32 %v508_v47, %v799_v51 }
 0x1e0   :  { %v2637_v58 = vpop.eup %2636  ;;  %v521_v59 = vmul.f32 1.442695, %v516_v53  ;;  %v530_v60 = vmul.f32 1.442695, %v525_v54  ;;  %v383_v54 = vadd.f32 %v382_v45, %v3364_v52 }
 0x1e1   :  { %v2639_v61 = vpop.eup %2638  ;;  %v805_v63 = vmul.f32 1.442695, %v802_v55  ;;  %v493_v1 = vpop.xlane.xlu2 %492  ;;  %v814_v21 = vmul.f32 1.442695, %v811_v56  ;;  %v461_v56 = vadd.f32 %v460_v48, %v3364_v52 }
 0x1e2   :  { %v2641_v2 = vpop.eup %2640  ;;  %v533_v3 = vadd.f32 %v2639_v61, %v2637_v58  ;;  %2642 = vpow2.f32 %v521_v59  ;;  %v497_v4 = vmul.f32 0.24253562, %v493_v1  ;;  %v495_v22 = vpop.xlane.xlu1 %494 }
 0x1e3   :  { %v544_v6 = vmul.f32 %v2641_v2, %v2635_v40  ;;  %2644 = vpow2.f32 %v530_v60  ;;  %v538_v7 = vmul.f32 %v2641_v2, %v2633_v37  ;;  %v498_v32 = vmul.f32 0.24253562, %v495_v22 }
 0x1e4   :  { %2646 = vrcp.f32 %v533_v3  ;;  %v800_v8 = vmax.f32 %v497_v4, %v509_v0 }
 0x1e5   :  { %2648 = vpow2.f32 %v805_v63  ;;  %v541_v12 = vmul.f32 %v538_v7, %v3367_v62  ;;  %v547_v13 = vmul.f32 %v544_v6, %v3370_v5 }
 0x1e6   :  { %2650 = vpow2.f32 %v814_v21  ;;  %v803_v17 = vsub.f32 %v497_v4, %v800_v8  ;;  %v812_v18 = vsub.f32 %v509_v0, %v800_v8 }
 0x1e7   :  { %v550_v23 = vadd.f32 %v547_v13, %v541_v12 }
 0x1e8   :  { %v2643_v24 = vpop.eup %2642  ;;  %v807_v25 = vmul.f32 1.442695, %v803_v17  ;;  %v816_v26 = vmul.f32 1.442695, %v812_v18 }
 0x1e9   :  { %v2645_v27 = vpop.eup %2644  ;;  %572 = vmatmul.f32.vlgmr.msra.gmra.mxu0 %v550_v23  ;;  %v507_v29 = vpop.xlane.xlu2 %506 }
 0x1ea   :  { %v2647_v30 = vpop.eup %2646  ;;  %v534_v31 = vadd.f32 %v2645_v27, %v2643_v24  ;;  %2652 = vpow2.f32 %v807_v25  ;;  %v510_v33 = vmul.f32 0.24253562, %v507_v29 }
 0x1eb   :  { %v2649_v34 = vpop.eup %2648  ;;  %2654 = vpow2.f32 %v816_v26  ;;  %v539_v36 = vmul.f32 %v2647_v30, %v2637_v58  ;;  %v545_v37 = vmul.f32 %v2647_v30, %v2639_v61 }
 0x1ec   :  { %v2651_v38 = vpop.eup %2650  ;;  %2656 = vrcp.f32 %v534_v31  ;;  %v801_v39 = vmax.f32 %v498_v32, %v510_v33 }
 0x1ed   :  { %v820_v40 = vadd.f32 %v2651_v38, %v2649_v34  ;;  %v542_v41 = vmul.f32 %v539_v36, %v380_v28  ;;  %v548_v42 = vmul.f32 %v545_v37, %v458_v35 }
 0x1ee   :  { %v804_v43 = vsub.f32 %v498_v32, %v801_v39  ;;  %v813_v44 = vsub.f32 %v510_v33, %v801_v39 }
 0x1ef   :  { %2658 = vrcp.f32 %v820_v40  ;;  %v551_v46 = vadd.f32 %v548_v42, %v542_v41  ;;  %v113_v41 = vlaneseq }
 0x1f0   :  { %v2653_v47 = vpop.eup %2652  ;;  %v809_v49 = vmul.f32 1.442695, %v804_v43  ;;  %v818_v50 = vmul.f32 1.442695, %v813_v44  ;;  %v2883_v44 = vmov 0.0  }
 0x1f1   :  { %v2655_v51 = vpop.eup %2654  ;;  %575 = vmatmul.f32.gmra.mxu0 %v551_v46  ;;  %v3389_v42 = vand.u32 127, %v113_v41 }
 0x1f2   :  { %v2657_v53 = vpop.eup %2656  ;;  %v821_v55 = vadd.f32 %v2655_v51, %v2653_v47  ;;  %2660 = vpow2.f32 %v809_v49 }
 0x1f3   :  { %2662 = vpow2.f32 %v818_v50  ;;  %v540_v57 = vmul.f32 %v2657_v53, %v2643_v24  ;;  %v546_v58 = vmul.f32 %v2657_v53, %v2645_v27  ;;  %vm115_vm0 = vcmp.lt.s32.totalorder %v3389_v42, 17 }
 0x1f4   :  { %2664 = vrcp.f32 %v821_v55  ;;  %v278_v55 = vld [vmem:[%s4626_s9 + $0x70] sm:$0xff] }
 0x1f5   :  { %v2659_v59 = vpop.eup %2658  ;;  %v543_v60 = vmul.f32 %v540_v57, %v383_v54  ;;  %v549_v61 = vmul.f32 %v546_v58, %v461_v56 }
 0x1f6   :  { %v832_v63 = vmul.f32 %v2659_v59, %v2651_v38  ;;  %v826_v0 = vmul.f32 %v2659_v59, %v2649_v34 }
 0x1f7   :  { %v552_v1 = vadd.f32 %v549_v61, %v543_v60 }
 0x1f8   :  { %v2661_v2 = vpop.eup %2660  ;;  %v829_v3 = vmul.f32 %v826_v0, %v3367_v62  ;;  %v835_v21 = vmul.f32 %v832_v63, %v3370_v5  ;;  %v2618_v5 = vld [vmem:[%s4623_s6] ss:$0 sm:$0xff] }
 0x1f9   :  { %v2663_v4 = vpop.eup %2662  ;;  %578 = vmatmul.f32.gmra.mxu0 %v552_v1 }
 0x1fa   :  { %v2665_v6 = vpop.eup %2664  ;;  %v822_v7 = vadd.f32 %v2663_v4, %v2661_v2  ;;  %v838_v52 = vadd.f32 %v835_v21, %v829_v3 }
 0x1fb   :  { %v827_v8 = vmul.f32 %v2665_v6, %v2653_v47  ;;  %v833_v11 = vmul.f32 %v2665_v6, %v2655_v51 }
 0x1fc   :  { %2666 = vrcp.f32 %v822_v7  ;;  %857 = vmatmul.f32.vlgmr.msra.gmra.mxu3 %v838_v52 }
 0x1fd   :  { %v830_v12 = vmul.f32 %v827_v8, %v380_v28  ;;  %v836_v13 = vmul.f32 %v833_v11, %v458_v35 }
 0x1ff   :  { %v839_v16 = vadd.f32 %v836_v13, %v830_v12  ;;  %v277_v12 = vld [vmem:[%s4626_s9 + $0x68] sm:$0xff]  ;;  %v276_v13 = vld [vmem:[%s4626_s9 + $0x60] sm:$0xff] }
 0x202   :  { %v2667_v17 = vpop.eup %2666 }
 0x203   :  { %v828_v18 = vmul.f32 %v2667_v17, %v2661_v2  ;;  %v834_v22 = vmul.f32 %v2667_v17, %v2663_v4  ;;  %v274_v17 = vld [vmem:[%s4626_s9 + $0x50] sm:$0xff] }
 0x204   :  { %860 = vmatmul.f32.gmra.mxu3 %v839_v16  ;;  %v275_v16 = vld [vmem:[%s4626_s9 + $0x58] sm:$0xff] }
 0x205   :  { %v831_v23 = vmul.f32 %v828_v18, %v383_v54  ;;  %v837_v62 = vmul.f32 %v834_v22, %v461_v56  ;;  %v279_v54 = vld [vmem:[%s4626_s9 + $0x78] sm:$0xff]  ;;  %v273_v18 = vld [vmem:[%s4626_s9 + $0x48] sm:$0xff]  ;;  %v272_v22 = vld [vmem:[%s4626_s9 + $0x40] sm:$0xff] }
 0x206   :  { %663 = vmatpush.msra.mxu1 %v279_v54  ;;  %939 = vmatpush.msrb.mxu0 %v279_v54 }
 0x207   :  { %v840_v24 = vadd.f32 %v837_v62, %v831_v23  ;;  %v271_v23 = vld [vmem:[%s4626_s9 + $0x38] sm:$0xff]  ;;  %v270_v62 = vld [vmem:[%s4626_s9 + $0x30] sm:$0xff] }
 0x208   :  { %664 = vmatpush.msra.mxu1 %v278_v55  ;;  %940 = vmatpush.msrb.mxu0 %v278_v55 }
 0x20a   :  { %665 = vmatpush.msra.mxu1 %v277_v12  ;;  %941 = vmatpush.msrb.mxu0 %v277_v12 }
 0x20c   :  { %863 = vmatmul.f32.gmra.mxu3 %v840_v24  ;;  %666 = vmatpush.msra.mxu1 %v276_v13  ;;  %v269_v24 = vld [vmem:[%s4626_s9 + $0x28] sm:$0xff] }
 0x20d   :  { %942 = vmatpush.msrb.mxu0 %v276_v13 }
 0x20e   :  { %667 = vmatpush.msra.mxu1 %v275_v16 }
 0x20f   :  { %943 = vmatpush.msrb.mxu0 %v275_v16  ;;  %v296_v16 = vld [vmem:[#allocation5 + $0x78] sm:$0xff] }
 0x210   :  { %668 = vmatpush.msra.mxu1 %v274_v17  ;;  %695 = vmatpush.msra.mxu2 %v296_v16 }
 0x211   :  { %944 = vmatpush.msrb.mxu0 %v274_v17  ;;  %v295_v17 = vld [vmem:[#allocation5 + $0x70] sm:$0xff] }
 0x212   :  { %669 = vmatpush.msra.mxu1 %v273_v18  ;;  %696 = vmatpush.msra.mxu2 %v295_v17 }
 0x213   :  { %945 = vmatpush.msrb.mxu0 %v273_v18 }
 0x214   :  { %670 = vmatpush.msra.mxu1 %v272_v22 }
 0x215   :  { %946 = vmatpush.msrb.mxu0 %v272_v22 }
 0x216   :  { %671 = vmatpush.msra.mxu1 %v271_v23 }
 0x217   :  { %947 = vmatpush.msrb.mxu0 %v271_v23  ;;  %v294_v23 = vld [vmem:[#allocation5 + $0x68] sm:$0xff] }
 0x218   :  { %672 = vmatpush.msra.mxu1 %v270_v62  ;;  %697 = vmatpush.msra.mxu2 %v294_v23 }
 0x219   :  { %948 = vmatpush.msrb.mxu0 %v270_v62 }
 0x21a   :  { %673 = vmatpush.msra.mxu1 %v269_v24 }
 0x21b   :  { %949 = vmatpush.msrb.mxu0 %v269_v24 }
 0x266   :  { %v573_v25 = vpop.f32.mrf.mxu0 }
 0x267   :  { %v574_v26 = vadd.f32 %v2618_v5, %v573_v25  ;;  %v267_v25 = vld [vmem:[%s4626_s9 + $0x18] sm:$0xff] }
 0x269   :  { %v582_v27 = vadd.f32 %v574_v26, %v3272_v9  ;;  %v266_v26 = vld [vmem:[%s4626_s9 + $0x10] sm:$0xff] }
 0x26b   :  { %585 = vadd.xlane.f32.xlu0 %v582_v27 }
 0x26e   :  { %v576_v28 = vpop.f32.mrf.mxu0 }
 0x26f   :  { %v577_v29 = vadd.f32 %v2618_v5, %v576_v28  ;;  %v264_v28 = vld [vmem:[%s4626_s9] sm:$0xff] }
 0x271   :  { %v583_v30 = vadd.f32 %v577_v29, %v3283_v14 }
 0x273   :  { %587 = vadd.xlane.f32.xlu1 %v583_v30 }
 0x276   :  { %v579_v31 = vpop.f32.mrf.mxu0 }
 0x277   :  { %v580_v32 = vadd.f32 %v2618_v5, %v579_v31 }
 0x279   :  { %v584_v33 = vadd.f32 %v580_v32, %v3294_v19 }
 0x27b   :  { %589 = vadd.xlane.f32.xlu2 %v584_v33 }
 0x27f   :  { %v858_v34 = vpop.f32.mrf.mxu3 }
 0x280   :  { %v859_v35 = vadd.f32 %v2618_v5, %v858_v34 }
 0x282   :  { %v867_v36 = vadd.f32 %v859_v35, %v3274_v10  ;;  %v3394_v10 = vsel %vm115_vm0, 1.0, %v2883_v44  ;;  %v3477_v44 = vld [vmem:[%s4624_s7] ss:$0 sm:$0xff] }
 0x283   :  { %4670 = vst [vmem:[#allocation12_spill] sm:$0xff] %v3394_v10 }
 0x284   :  { %870 = vadd.xlane.f32.xlu0 %v867_v36 }
 0x287   :  { %v861_v37 = vpop.f32.mrf.mxu3 }
 0x288   :  { %v862_v38 = vadd.f32 %v2618_v5, %v861_v37 }
 0x28a   :  { %v868_v9 = vadd.f32 %v862_v38, %v3285_v15 }
 0x28c   :  { %872 = vadd.xlane.f32.xlu1 %v868_v9 }
 0x28f   :  { %v864_v39 = vpop.f32.mrf.mxu3 }
 0x290   :  { %v865_v40 = vadd.f32 %v2618_v5, %v864_v39  ;;  %v268_v5 = vld [vmem:[%s4626_s9 + $0x20] sm:$0xff] }
 0x291   :  { %674 = vmatpush.msra.mxu1 %v268_v5  ;;  %950 = vmatpush.msrb.mxu0 %v268_v5 }
 0x292   :  { %v869_v14 = vadd.f32 %v865_v40, %v3296_v20 }
 0x293   :  { %675 = vmatpush.msra.mxu1 %v267_v25  ;;  %951 = vmatpush.msrb.mxu0 %v267_v25 }
 0x294   :  { %874 = vadd.xlane.f32.xlu2 %v869_v14 }
 0x295   :  { %676 = vmatpush.msra.mxu1 %v266_v26  ;;  %952 = vmatpush.msrb.mxu0 %v266_v26  ;;  %v293_v26 = vld [vmem:[#allocation5 + $0x60] sm:$0xff] }
 0x296   :  { %698 = vmatpush.msra.mxu2 %v293_v26 }
 0x2de   :  { %v586_v19 = vpop.xlane.xlu0 %585 }
 0x2df   :  { %v591_v43 = vmul.f32 0.05882353, %v586_v19 }
 0x2e1   :  { %v594_v45 = vsub.f32 %v582_v27, %v591_v43  ;;  %v265_v27 = vld [vmem:[%s4626_s9 + $0x8] sm:$0xff] }
 0x2e2   :  { %677 = vmatpush.msra.mxu1 %v265_v27  ;;  %953 = vmatpush.msrb.mxu0 %v265_v27 }
 0x2e3   :  { %v3397_v15 = vmul.f32 %v3394_v10, %v594_v45 }
 0x2e4   :  { %678 = vmatpush.msra.mxu1 %v264_v28  ;;  %954 = vmatpush.msrb.mxu0 %v264_v28 }
 0x2e5   :  { %v600_v20 = vmul.f32 %v3397_v15, %v3397_v15 }
 0x2e6   :  { %v588_v46 = vpop.xlane.xlu1 %587  ;;  %968 = vmatpush.msrb.mxu1 %v296_v16 }
 0x2e7   :  { %v592_v47 = vmul.f32 0.05882353, %v588_v46  ;;  %603 = vadd.xlane.f32.xlu0 %v600_v20 }
 0x2e8   :  { %969 = vmatpush.msrb.mxu1 %v295_v17 }
 0x2e9   :  { %v595_v48 = vsub.f32 %v583_v30, %v592_v47  ;;  %v3483_v47 = vld [vmem:[%s4625_s8] ss:$0 sm:$0xff] }
 0x2ea   :  { %970 = vmatpush.msrb.mxu1 %v294_v23 }
 0x2eb   :  { %v3402_v49 = vmul.f32 %v3394_v10, %v595_v48 }
 0x2ec   :  { %971 = vmatpush.msrb.mxu1 %v293_v26  ;;  %v2622_v26 = vld [vmem:[%s4629_s12] ss:$0 sm:$0xff] }
 0x2ed   :  { %v601_v50 = vmul.f32 %v3402_v49, %v3402_v49 }
 0x2ee   :  { %v590_v51 = vpop.xlane.xlu2 %589 }
 0x2ef   :  { %v593_v53 = vmul.f32 0.05882353, %v590_v51  ;;  %605 = vadd.xlane.f32.xlu1 %v601_v50 }
 0x2f1   :  { %v596_v56 = vsub.f32 %v584_v33, %v593_v53 }
 0x2f3   :  { %v3413_v57 = vmul.f32 %v3394_v10, %v596_v56 }
 0x2f5   :  { %v602_v58 = vmul.f32 %v3413_v57, %v3413_v57 }
 0x2f7   :  { %v871_v59 = vpop.xlane.xlu0 %870  ;;  %607 = vadd.xlane.f32.xlu2 %v602_v58 }
 0x2f8   :  { %v876_v60 = vmul.f32 0.05882353, %v871_v59 }
 0x2fa   :  { %v879_v61 = vsub.f32 %v867_v36, %v876_v60 }
 0x2fc   :  { %v3418_v63 = vmul.f32 %v3394_v10, %v879_v61 }
 0x2fe   :  { %v885_v0 = vmul.f32 %v3418_v63, %v3418_v63 }
 0x2ff   :  { %v873_v1 = vpop.xlane.xlu1 %872 }
 0x300   :  { %v877_v2 = vmul.f32 0.05882353, %v873_v1  ;;  %888 = vadd.xlane.f32.xlu0 %v885_v0 }
 0x302   :  { %v880_v3 = vsub.f32 %v868_v9, %v877_v2 }
 0x304   :  { %v3423_v21 = vmul.f32 %v3394_v10, %v880_v3 }
 0x306   :  { %v886_v4 = vmul.f32 %v3423_v21, %v3423_v21 }
 0x307   :  { %v875_v6 = vpop.xlane.xlu2 %874 }
 0x308   :  { %v878_v7 = vmul.f32 0.05882353, %v875_v6  ;;  %890 = vadd.xlane.f32.xlu1 %v886_v4 }
 0x30a   :  { %v881_v52 = vsub.f32 %v869_v14, %v878_v7 }
 0x30c   :  { %v3428_v8 = vmul.f32 %v3394_v10, %v881_v52 }
 0x30e   :  { %v887_v11 = vmul.f32 %v3428_v8, %v3428_v8 }
 0x310   :  { %892 = vadd.xlane.f32.xlu2 %v887_v11 }
 0x35a   :  { %v604_v29 = vpop.xlane.xlu0 %603 }
 0x35b   :  { %v609_v30 = vmul.f32 0.05882353, %v604_v29 }
 0x35d   :  { %v612_v31 = vadd.f32 1e-05, %v609_v30  ;;  %v292_v30 = vld [vmem:[#allocation5 + $0x58] sm:$0xff] }
 0x35e   :  { %699 = vmatpush.msra.mxu2 %v292_v30  ;;  %972 = vmatpush.msrb.mxu1 %v292_v30 }
 0x35f   :  { %2668 = vrsqrt.f32 %v612_v31  ;;  %vm621_vm2 = vweird.f32 %v612_v31 }
 0x362   :  { %v606_v32 = vpop.xlane.xlu1 %605 }
 0x363   :  { %v610_v33 = vmul.f32 0.05882353, %v606_v32 }
 0x365   :  { %v2669_v34 = vpop.eup %2668  ;;  %v613_v35 = vadd.f32 1e-05, %v610_v33  ;;  %v291_v33 = vld [vmem:[#allocation5 + $0x50] sm:$0xff] }
 0x366   :  { %v616_v36 = vmul.f32 %v2669_v34, %v612_v31  ;;  %vm622_vm1 = vweird.f32 %v2669_v34  ;;  %700 = vmatpush.msra.mxu2 %v291_v33  ;;  %973 = vmatpush.msrb.mxu1 %v291_v33 }
 0x367   :  { %2670 = vrsqrt.f32 %v613_v35  ;;  %vm623_vm3 = vmor %vm621_vm2, %vm622_vm1  ;;  %vm631_vm5 = vweird.f32 %v613_v35 }
 0x368   :  { %v617_v37 = vmul.f32 %v2669_v34, %v616_v36 }
 0x36a   :  { %v618_v38 = vmul.f32 0.5, %v617_v37  ;;  %v608_v9 = vpop.xlane.xlu2 %607  ;;  %v290_v37 = vld [vmem:[#allocation5 + $0x48] sm:$0xff] }
 0x36b   :  { %v611_v39 = vmul.f32 0.05882353, %v608_v9  ;;  %701 = vmatpush.msra.mxu2 %v290_v37  ;;  %974 = vmatpush.msrb.mxu1 %v290_v37 }
 0x36c   :  { %v619_v40 = vsub.f32 1.5, %v618_v38 }
 0x36d   :  { %v2671_v14 = vpop.eup %2670  ;;  %v614_v41 = vadd.f32 1e-05, %v611_v39  ;;  %v289_v39 = vld [vmem:[#allocation5 + $0x40] sm:$0xff] }
 0x36e   :  { %v620_v19 = vmul.f32 %v2669_v34, %v619_v40  ;;  %v626_v43 = vmul.f32 %v2671_v14, %v613_v35  ;;  %vm632_vm4 = vweird.f32 %v2671_v14  ;;  %702 = vmatpush.msra.mxu2 %v289_v39  ;;  %975 = vmatpush.msrb.mxu1 %v289_v39 }
 0x36f   :  { %2672 = vrsqrt.f32 %v614_v41  ;;  %vm633_vm6 = vmor %vm631_vm5, %vm632_vm4  ;;  %vm641_vm8 = vweird.f32 %v614_v41 }
 0x370   :  { %v624_v45 = vsel %vm623_vm3, %v2669_v34, %v620_v19  ;;  %v627_v20 = vmul.f32 %v2671_v14, %v626_v43  ;;  %v288_v19 = vld [vmem:[#allocation5 + $0x38] sm:$0xff] }
 0x371   :  { %v645_v46 = vmul.f32 %v624_v45, %v3397_v15  ;;  %v287_v45 = vld [vmem:[#allocation5 + $0x30] sm:$0xff]  ;;  %703 = vmatpush.msra.mxu2 %v288_v19  ;;  %976 = vmatpush.msrb.mxu1 %v288_v19 }
 0x372   :  { %v628_v48 = vmul.f32 0.5, %v627_v20 }
 0x373   :  { %v889_v50 = vpop.xlane.xlu0 %888  ;;  %v651_v51 = vmul.f32 %v3477_v44, %v645_v46  ;;  %704 = vmatpush.msra.mxu2 %v287_v45  ;;  %977 = vmatpush.msrb.mxu1 %v287_v45 }
 0x374   :  { %v629_v53 = vsub.f32 1.5, %v628_v48  ;;  %v894_v54 = vmul.f32 0.05882353, %v889_v50  ;;  %v286_v50 = vld [vmem:[#allocation5 + $0x28] sm:$0xff] }
 0x375   :  { %v2673_v55 = vpop.eup %2672  ;;  %v3487_v56 = vadd.f32 %v3483_v47, %v651_v51  ;;  %705 = vmatpush.msra.mxu2 %v286_v50  ;;  %978 = vmatpush.msrb.mxu1 %v286_v50  ;;  %v3545_v50 = vld [vmem:[%s4666_s22 + $0x2f0] sm:$0xff] }
 0x376   :  { %v630_v58 = vmul.f32 %v2671_v14, %v629_v53  ;;  %v636_v59 = vmul.f32 %v2673_v55, %v614_v41  ;;  %v897_v15 = vadd.f32 1e-05, %v894_v54  ;;  %vm642_vm7 = vweird.f32 %v2673_v55  ;;  %v285_v54 = vld [vmem:[#allocation5 + $0x20] sm:$0xff]  ;;  %1215 = vmatpush.msrb.mxu3 %v3545_v50 }
 0x377   :  { %679 = vmatmul.f32.vlgmr.msra.gmra.mxu1 %v3487_v56  ;;  %vm643_vm9 = vmor %vm641_vm8, %vm642_vm7  ;;  %706 = vmatpush.msra.mxu2 %v285_v54 }
 0x378   :  { %v637_v60 = vmul.f32 %v2673_v55, %v636_v59  ;;  %2674 = vrsqrt.f32 %v897_v15  ;;  %v634_v61 = vsel %vm633_vm6, %v2671_v14, %v630_v58  ;;  %vm906_vm11 = vweird.f32 %v897_v15  ;;  %v284_v59 = vld [vmem:[#allocation5 + $0x18] sm:$0xff]  ;;  %979 = vmatpush.msrb.mxu1 %v285_v54 }
 0x379   :  { %v646_v0 = vmul.f32 %v634_v61, %v3402_v49  ;;  %707 = vmatpush.msra.mxu2 %v284_v59  ;;  %v3557_v54 = vld [vmem:[%s4666_s22 + $0x2d8] sm:$0xff] }
 0x37a   :  { %v638_v1 = vmul.f32 0.5, %v637_v60  ;;  %980 = vmatpush.msrb.mxu1 %v284_v59  ;;  %1216 = vmatpush.msrb.mxu3 %v3557_v54 }
 0x37b   :  { %v891_v2 = vpop.xlane.xlu1 %890  ;;  %v652_v3 = vmul.f32 %v3477_v44, %v646_v0 }
 0x37c   :  { %v639_v4 = vsub.f32 1.5, %v638_v1  ;;  %v895_v6 = vmul.f32 0.05882353, %v891_v2  ;;  %v283_v1 = vld [vmem:[#allocation5 + $0x10] sm:$0xff]  ;;  %v282_v2 = vld [vmem:[#allocation5 + $0x8] sm:$0xff] }
 0x37d   :  { %v3493_v7 = vadd.f32 %v3483_v47, %v652_v3  ;;  %708 = vmatpush.msra.mxu2 %v283_v1  ;;  %981 = vmatpush.msrb.mxu1 %v283_v1  ;;  %v281_v3 = vld [vmem:[#allocation5] sm:$0xff]  ;;  %v3587_v1 = vld [vmem:[%s4666_s22 + $0x2a8] sm:$0xff] }
 0x37e   :  { %v2675_v52 = vpop.eup %2674  ;;  %v640_v11 = vmul.f32 %v2673_v55, %v639_v4  ;;  %v898_v12 = vadd.f32 1e-05, %v895_v6  ;;  %v2621_v4 = vld [vmem:[%s4627_s10] ss:$0 sm:$0xff] }
 0x37f   :  { %v901_v13 = vmul.f32 %v2675_v52, %v897_v15  ;;  %682 = vmatmul.f32.gmra.mxu1 %v3493_v7  ;;  %vm907_vm10 = vweird.f32 %v2675_v52  ;;  %709 = vmatpush.msra.mxu2 %v282_v2 }
 0x380   :  { %2676 = vrsqrt.f32 %v898_v12  ;;  %v644_v49 = vsel %vm643_vm9, %v2673_v55, %v640_v11  ;;  %vm908_vm12 = vmor %vm906_vm11, %vm907_vm10  ;;  %vm916_vm14 = vweird.f32 %v898_v12  ;;  %982 = vmatpush.msrb.mxu1 %v282_v2  ;;  %v2544_v2 = vld [vmem:[%s4666_s22 + $0x288] sm:$0xff] }
 0x381   :  { %v902_v18 = vmul.f32 %v2675_v52, %v901_v13  ;;  %v647_v22 = vmul.f32 %v644_v49, %v3413_v57  ;;  %710 = vmatpush.msra.mxu2 %v281_v3 }
 0x382   :  { %983 = vmatpush.msrb.mxu1 %v281_v3 }
 0x383   :  { %v903_v62 = vmul.f32 0.5, %v902_v18  ;;  %v893_v24 = vpop.xlane.xlu2 %892  ;;  %v653_v5 = vmul.f32 %v3477_v44, %v647_v22 }
 0x384   :  { %v896_v25 = vmul.f32 0.05882353, %v893_v24 }
 0x385   :  { %v904_v27 = vsub.f32 1.5, %v903_v62  ;;  %v3499_v28 = vadd.f32 %v3483_v47, %v653_v5 }
 0x386   :  { %v2677_v29 = vpop.eup %2676  ;;  %v899_v57 = vadd.f32 1e-05, %v896_v25 }
 0x387   :  { %v905_v31 = vmul.f32 %v2675_v52, %v904_v27  ;;  %v911_v32 = vmul.f32 %v2677_v29, %v898_v12  ;;  %685 = vmatmul.f32.gmra.mxu1 %v3499_v28  ;;  %vm917_vm13 = vweird.f32 %v2677_v29 }
 0x388   :  { %2678 = vrsqrt.f32 %v899_v57  ;;  %vm918_vm15 = vmor %vm916_vm14, %vm917_vm13  ;;  %vm926_vm2 = vweird.f32 %v899_v57 }
 0x389   :  { %v909_v34 = vsel %vm908_vm12, %v2675_v52, %v905_v31  ;;  %v912_v35 = vmul.f32 %v2677_v29, %v911_v32 }
 0x38a   :  { %v930_v36 = vmul.f32 %v909_v34, %v3418_v63 }
 0x38b   :  { %v913_v38 = vmul.f32 0.5, %v912_v35 }
 0x38c   :  { %v933_v9 = vmul.f32 %v3477_v44, %v930_v36 }
 0x38d   :  { %v914_v40 = vsub.f32 1.5, %v913_v38 }
 0x38e   :  { %v2679_v14 = vpop.eup %2678  ;;  %v3505_v41 = vadd.f32 %v3483_v47, %v933_v9 }
 0x38f   :  { %v915_v43 = vmul.f32 %v2677_v29, %v914_v40  ;;  %v921_v63 = vmul.f32 %v2679_v14, %v899_v57  ;;  %vm927_vm1 = vweird.f32 %v2679_v14 }
 0x390   :  { %955 = vmatmul.f32.vlgmr.msrb.gmra.mxu0 %v3505_v41  ;;  %vm928_vm3 = vmor %vm926_vm2, %vm927_vm1 }
 0x391   :  { %v922_v20 = vmul.f32 %v2679_v14, %v921_v63  ;;  %v919_v46 = vsel %vm918_vm15, %v2677_v29, %v915_v43 }
 0x392   :  { %v931_v48 = vmul.f32 %v919_v46, %v3423_v21 }
 0x393   :  { %v923_v51 = vmul.f32 0.5, %v922_v20 }
 0x394   :  { %v934_v53 = vmul.f32 %v3477_v44, %v931_v48  ;;  %v2556_v48 = vld [vmem:[%s4666_s22 + $0x2e8] sm:$0xff] }
 0x395   :  { %v924_v55 = vsub.f32 1.5, %v923_v51  ;;  %v2553_v51 = vld [vmem:[%s4666_s22 + $0x2d0] sm:$0xff]  ;;  %1189 = vmatpush.msrb.mxu2 %v2556_v48  ;;  %1267 = vmatpush.msra.mxu1 %v2556_v48  ;;  %v2514_v48 = vld [vmem:[%s4666_s22 + $0x198] sm:$0xff] }
 0x396   :  { %v3511_v58 = vadd.f32 %v3483_v47, %v934_v53 }
 0x397   :  { %v925_v15 = vmul.f32 %v2679_v14, %v924_v55  ;;  %v2550_v55 = vld [vmem:[%s4666_s22 + $0x2b8] sm:$0xff]  ;;  %1190 = vmatpush.msrb.mxu2 %v2553_v51  ;;  %1268 = vmatpush.msra.mxu1 %v2553_v51  ;;  %v3755_v51 = vld [vmem:[%s4666_s22 + $0x1a0] sm:$0xff] }
 0x398   :  { %958 = vmatmul.f32.gmra.mxu0 %v3511_v58 }
 0x399   :  { %v929_v21 = vsel %vm928_vm3, %v2679_v14, %v925_v15  ;;  %v3573_v15 = vld [vmem:[%s4666_s22 + $0x2c0] sm:$0xff]  ;;  %1191 = vmatpush.msrb.mxu2 %v2550_v55  ;;  %1269 = vmatpush.msra.mxu1 %v2550_v55  ;;  %v2525_v55 = vld [vmem:[%s4666_s22 + $0x1f0] sm:$0xff] }
 0x39a   :  { %v932_v60 = vmul.f32 %v929_v21, %v3428_v8  ;;  %v3578_v21 = vld [vmem:[%s4666_s22 + $0x2e0] sm:$0xff]  ;;  %1217 = vmatpush.msrb.mxu3 %v3573_v15 }
 0x39c   :  { %v935_v61 = vmul.f32 %v3477_v44, %v932_v60  ;;  %1218 = vmatpush.msrb.mxu3 %v3587_v1 }
 0x39e   :  { %v938_v0 = vadd.f32 %v3483_v47, %v935_v61  ;;  %v2547_v61 = vld [vmem:[%s4666_s22 + $0x2a0] sm:$0xff] }
 0x39f   :  { %1192 = vmatpush.msrb.mxu2 %v2547_v61  ;;  %1270 = vmatpush.msra.mxu1 %v2547_v61  ;;  %v2522_v61 = vld [vmem:[%s4666_s22 + $0x1d8] sm:$0xff] }
 0x3a0   :  { %961 = vmatmul.f32.gmra.mxu0 %v938_v0 }
 0x3a1   :  { %1193 = vmatpush.msrb.mxu2 %v2544_v2  ;;  %1271 = vmatpush.msra.mxu1 %v2544_v2  ;;  %v2516_v2 = vld [vmem:[%s4666_s22 + $0x1a8] sm:$0xff] }
 0x3f4   :  { %v680_v8 = vpop.f32.mrf.mxu1 }
 0x3f5   :  { %v681_v6 = vadd.f32 %v2621_v4, %v680_v8  ;;  %v3597_v8 = vld [vmem:[%s4666_s22 + $0x290] sm:$0xff] }
 0x3f6   :  { %1219 = vmatpush.msrb.mxu3 %v3597_v8 }
 0x3f7   :  { %v689_v52 = vmax.f32 %v681_v6, 0.0 }
 0x3f9   :  { %711 = vmatmul.f32.vlgmr.msra.gmra.mxu2 %v689_v52 }
 0x3fc   :  { %v683_v44 = vpop.f32.mrf.mxu1 }
 0x3fd   :  { %v684_v47 = vadd.f32 %v2621_v4, %v683_v44 }
 0x3ff   :  { %v690_v11 = vmax.f32 %v684_v47, 0.0 }
 0x401   :  { %714 = vmatmul.f32.gmra.mxu2 %v690_v11 }
 0x404   :  { %v686_v12 = vpop.f32.mrf.mxu1 }
 0x405   :  { %v687_v13 = vadd.f32 %v2621_v4, %v686_v12 }
 0x407   :  { %v691_v49 = vmax.f32 %v687_v13, 0.0 }
 0x409   :  { %717 = vmatmul.f32.gmra.mxu2 %v691_v49 }
 0x40d   :  { %v956_v16 = vpop.f32.mrf.mxu0 }
 0x40e   :  { %v957_v17 = vadd.f32 %v2621_v4, %v956_v16 }
 0x410   :  { %v965_v18 = vmax.f32 %v957_v17, 0.0 }
 0x412   :  { %984 = vmatmul.f32.vlgmr.msrb.gmra.mxu1 %v965_v18 }
 0x415   :  { %v959_v22 = vpop.f32.mrf.mxu0 }
 0x416   :  { %v960_v23 = vadd.f32 %v2621_v4, %v959_v22 }
 0x418   :  { %v966_v62 = vmax.f32 %v960_v23, 0.0 }
 0x41a   :  { %987 = vmatmul.f32.gmra.mxu1 %v966_v62 }
 0x41d   :  { %v962_v24 = vpop.f32.mrf.mxu0 }
 0x41e   :  { %v963_v5 = vadd.f32 %v2621_v4, %v962_v24 }
 0x420   :  { %v967_v25 = vmax.f32 %v963_v5, 0.0 }
 0x422   :  { %990 = vmatmul.f32.gmra.mxu1 %v967_v25  ;;  %v2541_v25 = vld [vmem:[%s4666_s22 + $0x270] sm:$0xff] }
 0x423   :  { %1194 = vmatpush.msrb.mxu2 %v2541_v25  ;;  %1272 = vmatpush.msra.mxu1 %v2541_v25 }
 0x47c   :  { %v712_v27 = vpop.f32.mrf.mxu2 }
 0x47d   :  { %v713_v29 = vadd.f32 %v2622_v26, %v712_v27  ;;  %v3635_v27 = vld [vmem:[%s4666_s22 + $0x2c8] sm:$0xff] }
 0x47f   :  { %v721_v57 = vadd.f32 %v713_v29, %v3487_v56  ;;  %v2538_v29 = vld [vmem:[%s4666_s22 + $0x258] sm:$0xff] }
 0x480   :  { %1195 = vmatpush.msrb.mxu2 %v2538_v29  ;;  %1273 = vmatpush.msra.mxu1 %v2538_v29 }
 0x481   :  { %724 = vadd.xlane.f32.xlu0 %v721_v57 }
 0x484   :  { %v715_v30 = vpop.f32.mrf.mxu2 }
 0x485   :  { %v716_v31 = vadd.f32 %v2622_v26, %v715_v30  ;;  %v3650_v30 = vld [vmem:[%s4666_s22 + $0x2b0] sm:$0xff] }
 0x487   :  { %v722_v32 = vadd.f32 %v716_v31, %v3493_v7  ;;  %v2535_v31 = vld [vmem:[%s4666_s22 + $0x240] sm:$0xff] }
 0x488   :  { %1196 = vmatpush.msrb.mxu2 %v2535_v31  ;;  %1274 = vmatpush.msra.mxu1 %v2535_v31 }
 0x489   :  { %726 = vadd.xlane.f32.xlu1 %v722_v32 }
 0x48c   :  { %v718_v33 = vpop.f32.mrf.mxu2 }
 0x48d   :  { %v719_v34 = vadd.f32 %v2622_v26, %v718_v33  ;;  %v3665_v33 = vld [vmem:[%s4666_s22 + $0x298] sm:$0xff] }
 0x48f   :  { %v985_v35 = vpop.f32.mrf.mxu1  ;;  %v723_v36 = vadd.f32 %v719_v34, %v3499_v28  ;;  %v2532_v34 = vld [vmem:[%s4666_s22 + $0x228] sm:$0xff] }
 0x490   :  { %v986_v37 = vadd.f32 %v2622_v26, %v985_v35  ;;  %v3674_v35 = vld [vmem:[%s4666_s22 + $0x230] sm:$0xff]  ;;  %1197 = vmatpush.msrb.mxu2 %v2532_v34  ;;  %1275 = vmatpush.msra.mxu1 %v2532_v34 }
 0x491   :  { %728 = vadd.xlane.f32.xlu2 %v723_v36 }
 0x492   :  { %v994_v38 = vadd.f32 %v986_v37, %v3505_v41  ;;  %v2529_v37 = vld [vmem:[%s4666_s22 + $0x210] sm:$0xff] }
 0x493   :  { %1198 = vmatpush.msrb.mxu2 %v2529_v37  ;;  %1276 = vmatpush.msra.mxu1 %v2529_v37 }
 0x494   :  { %997 = vadd.xlane.f32.xlu0 %v994_v38 }
 0x497   :  { %v988_v9 = vpop.f32.mrf.mxu1 }
 0x498   :  { %v989_v39 = vadd.f32 %v2622_v26, %v988_v9  ;;  %v3695_v9 = vld [vmem:[%s4666_s22 + $0x268] sm:$0xff] }
 0x49a   :  { %v3528_v56 = vadd.f32 %v989_v39, %v3511_v58  ;;  %v3565_v58 = vld [vmem:[%s4666_s22 + $0x2f8] sm:$0xff] }
 0x49b   :  { %1241 = vmatpush.msra.mxu0 %v3565_v58  ;;  %v2526_v39 = vld [vmem:[%s4666_s22 + $0x1f8] sm:$0xff] }
 0x49c   :  { %999 = vadd.xlane.f32.xlu1 %v3528_v56  ;;  %1199 = vmatpush.msrb.mxu2 %v2526_v39 }
 0x49d   :  { %1242 = vmatpush.msra.mxu0 %v3578_v21  ;;  %1277 = vmatpush.msra.mxu1 %v2526_v39 }
 0x49f   :  { %v991_v40 = vpop.f32.mrf.mxu1  ;;  %1243 = vmatpush.msra.mxu0 %v3635_v27 }
 0x4a0   :  { %v992_v7 = vadd.f32 %v2622_v26, %v991_v40  ;;  %v3629_v26 = vld [vmem:[%s4666_s22 + $0x278] sm:$0xff]  ;;  %v3710_v40 = vld [vmem:[%s4666_s22 + $0x250] sm:$0xff] }
 0x4a1   :  { %1220 = vmatpush.msrb.mxu3 %v3629_v26  ;;  %1244 = vmatpush.msra.mxu0 %v3650_v30 }
 0x4a2   :  { %v3531_v14 = vadd.f32 %v992_v7, %v938_v0  ;;  %v2523_v7 = vld [vmem:[%s4666_s22 + $0x1e0] sm:$0xff] }
 0x4a3   :  { %1245 = vmatpush.msra.mxu0 %v3665_v33  ;;  %1200 = vmatpush.msrb.mxu2 %v2523_v7 }
 0x4a4   :  { %1001 = vadd.xlane.f32.xlu2 %v3531_v14  ;;  %1278 = vmatpush.msra.mxu1 %v2523_v7 }
 0x4f4   :  { %v725_v19 = vpop.xlane.xlu0 %724 }
 0x4f5   :  { %v730_v28 = vmul.f32 0.05882353, %v725_v19  ;;  %v2534_v19 = vld [vmem:[%s4666_s22 + $0x238] sm:$0xff] }
 0x4f7   :  { %v733_v43 = vsub.f32 %v721_v57, %v730_v28  ;;  %v3644_v57 = vld [vmem:[%s4666_s22 + $0x260] sm:$0xff]  ;;  %v2520_v28 = vld [vmem:[%s4666_s22 + $0x1c8] sm:$0xff] }
 0x4f8   :  { %1221 = vmatpush.msrb.mxu3 %v3644_v57  ;;  %1201 = vmatpush.msrb.mxu2 %v2520_v28 }
 0x4f9   :  { %v3535_v63 = vmul.f32 %v3394_v10, %v733_v43  ;;  %v3731_v43 = vld [vmem:[%s4666_s22 + $0x1d0] sm:$0xff]  ;;  %1279 = vmatpush.msra.mxu1 %v2520_v28 }
 0x4fb   :  { %v739_v41 = vmul.f32 %v3535_v63, %v3535_v63 }
 0x4fc   :  { %v727_v45 = vpop.xlane.xlu1 %726 }
 0x4fd   :  { %v731_v20 = vmul.f32 0.05882353, %v727_v45  ;;  %742 = vadd.xlane.f32.xlu0 %v739_v41  ;;  %v2531_v41 = vld [vmem:[%s4666_s22 + $0x220] sm:$0xff]  ;;  %v2517_v45 = vld [vmem:[%s4666_s22 + $0x1b0] sm:$0xff] }
 0x4fe   :  { %1202 = vmatpush.msrb.mxu2 %v2517_v45  ;;  %1280 = vmatpush.msra.mxu1 %v2517_v45 }
 0x4ff   :  { %v734_v46 = vsub.f32 %v722_v32, %v731_v20  ;;  %v3659_v32 = vld [vmem:[%s4666_s22 + $0x248] sm:$0xff]  ;;  %v3743_v20 = vld [vmem:[%s4666_s22 + $0x1b8] sm:$0xff] }
 0x500   :  { %1222 = vmatpush.msrb.mxu3 %v3659_v32  ;;  %1203 = vmatpush.msrb.mxu2 %v2514_v48 }
 0x501   :  { %v3551_v53 = vmul.f32 %v3394_v10, %v734_v46  ;;  %v2528_v46 = vld [vmem:[%s4666_s22 + $0x208] sm:$0xff]  ;;  %1281 = vmatpush.msra.mxu1 %v2514_v48 }
 0x502   :  { %1223 = vmatpush.msrb.mxu3 %v3674_v35 }
 0x503   :  { %v740_v59 = vmul.f32 %v3551_v53, %v3551_v53 }
 0x504   :  { %v729_v60 = vpop.xlane.xlu2 %728 }
 0x505   :  { %v732_v0 = vmul.f32 0.05882353, %v729_v60  ;;  %744 = vadd.xlane.f32.xlu1 %v740_v59  ;;  %v2511_v59 = vld [vmem:[%s4666_s22 + $0x180] sm:$0xff]  ;;  %v3767_v60 = vld [vmem:[%s4666_s22 + $0x188] sm:$0xff] }
 0x506   :  { %1204 = vmatpush.msrb.mxu2 %v2511_v59  ;;  %1282 = vmatpush.msra.mxu1 %v2511_v59 }
 0x507   :  { %v735_v3 = vsub.f32 %v723_v36, %v732_v0  ;;  %v998_v4 = vpop.xlane.xlu0 %997  ;;  %v3680_v36 = vld [vmem:[%s4666_s22 + $0x280] sm:$0xff] }
 0x508   :  { %v1003_v6 = vmul.f32 0.05882353, %v998_v4  ;;  %1246 = vmatpush.msra.mxu0 %v3680_v36  ;;  %1293 = vmatpush.msra.mxu2 %v3545_v50  ;;  %v2519_v0 = vld [vmem:[%s4666_s22 + $0x1c0] sm:$0xff]  ;;  %v2513_v50 = vld [vmem:[%s4666_s22 + $0x190] sm:$0xff] }
 0x509   :  { %v3601_v52 = vmul.f32 %v3394_v10, %v735_v3 }
 0x50a   :  { %v1006_v44 = vsub.f32 %v994_v38, %v1003_v6  ;;  %v3689_v38 = vld [vmem:[%s4666_s22 + $0x218] sm:$0xff]  ;;  %1247 = vmatpush.msra.mxu0 %v3695_v9  ;;  %1294 = vmatpush.msra.mxu2 %v3557_v54 }
 0x50b   :  { %v741_v47 = vmul.f32 %v3601_v52, %v3601_v52  ;;  %1224 = vmatpush.msrb.mxu3 %v3689_v38 }
 0x50c   :  { %v3607_v11 = vmul.f32 %v3394_v10, %v1006_v44  ;;  %1248 = vmatpush.msra.mxu0 %v3710_v40  ;;  %1295 = vmatpush.msra.mxu2 %v3573_v15 }
 0x50d   :  { %746 = vadd.xlane.f32.xlu2 %v741_v47 }
 0x50e   :  { %v1012_v12 = vmul.f32 %v3607_v11, %v3607_v11  ;;  %1249 = vmatpush.msra.mxu0 %v2534_v19  ;;  %1296 = vmatpush.msra.mxu2 %v3587_v1 }
 0x50f   :  { %v1000_v13 = vpop.xlane.xlu1 %999 }
 0x510   :  { %v1004_v49 = vmul.f32 0.05882353, %v1000_v13  ;;  %1015 = vadd.xlane.f32.xlu0 %v1012_v12  ;;  %1250 = vmatpush.msra.mxu0 %v2531_v41 }
 0x511   :  { %1297 = vmatpush.msra.mxu2 %v3597_v8 }
 0x512   :  { %v1007_v16 = vsub.f32 %v3528_v56, %v1004_v49  ;;  %v3704_v56 = vld [vmem:[%s4666_s22 + $0x200] sm:$0xff]  ;;  %1251 = vmatpush.msra.mxu0 %v2528_v46 }
 0x513   :  { %1225 = vmatpush.msrb.mxu3 %v3704_v56  ;;  %1298 = vmatpush.msra.mxu2 %v3629_v26 }
 0x514   :  { %v3613_v17 = vmul.f32 %v3394_v10, %v1007_v16  ;;  %1252 = vmatpush.msra.mxu0 %v2525_v55 }
 0x515   :  { %1299 = vmatpush.msra.mxu2 %v3644_v57  ;;  %v3814_v57 = vld [vmem:[%s4631_s14] ss:$0 sm:$0xff] }
 0x516   :  { %v1013_v18 = vmul.f32 %v3613_v17, %v3613_v17  ;;  %1253 = vmatpush.msra.mxu0 %v2522_v61 }
 0x517   :  { %v1002_v22 = vpop.xlane.xlu2 %1001  ;;  %1300 = vmatpush.msra.mxu2 %v3659_v32 }
 0x518   :  { %v1005_v23 = vmul.f32 0.05882353, %v1002_v22  ;;  %1017 = vadd.xlane.f32.xlu1 %v1013_v18  ;;  %1254 = vmatpush.msra.mxu0 %v2519_v0 }
 0x519   :  { %1301 = vmatpush.msra.mxu2 %v3674_v35 }
 0x51a   :  { %v1008_v62 = vsub.f32 %v3531_v14, %v1005_v23  ;;  %v3719_v14 = vld [vmem:[%s4666_s22 + $0x1e8] sm:$0xff]  ;;  %1255 = vmatpush.msra.mxu0 %v2516_v2 }
 0x51b   :  { %1226 = vmatpush.msrb.mxu3 %v3719_v14  ;;  %1302 = vmatpush.msra.mxu2 %v3689_v38 }
 0x51c   :  { %v3619_v24 = vmul.f32 %v3394_v10, %v1008_v62  ;;  %1256 = vmatpush.msra.mxu0 %v2513_v50 }
 0x51d   :  { %1227 = vmatpush.msrb.mxu3 %v3731_v43  ;;  %1303 = vmatpush.msra.mxu2 %v3704_v56 }
 0x51e   :  { %v1014_v5 = vmul.f32 %v3619_v24, %v3619_v24 }
 0x51f   :  { %1228 = vmatpush.msrb.mxu3 %v3743_v20  ;;  %1304 = vmatpush.msra.mxu2 %v3719_v14 }
 0x520   :  { %1019 = vadd.xlane.f32.xlu2 %v1014_v5  ;;  %v3807_v5 = vld [vmem:[%s4630_s13] ss:$0 sm:$0xff] }
 0x521   :  { %1229 = vmatpush.msrb.mxu3 %v3755_v51  ;;  %1305 = vmatpush.msra.mxu2 %v3731_v43 }
 0x523   :  { %1230 = vmatpush.msrb.mxu3 %v3767_v60  ;;  %1306 = vmatpush.msra.mxu2 %v3743_v20 }
 0x525   :  { %1319 = vmatpush.msra.mxu3 %v3565_v58  ;;  %1307 = vmatpush.msra.mxu2 %v3755_v51 }
 0x527   :  { %1320 = vmatpush.msra.mxu3 %v3578_v21  ;;  %1308 = vmatpush.msra.mxu2 %v3767_v60 }
 0x529   :  { %1321 = vmatpush.msra.mxu3 %v3635_v27 }
 0x52b   :  { %1322 = vmatpush.msra.mxu3 %v3650_v30 }
 0x52d   :  { %1323 = vmatpush.msra.mxu3 %v3665_v33 }
 0x52f   :  { %1324 = vmatpush.msra.mxu3 %v3680_v36 }
 0x531   :  { %1325 = vmatpush.msra.mxu3 %v3695_v9 }
 0x533   :  { %1326 = vmatpush.msra.mxu3 %v3710_v40 }
 0x535   :  { %1327 = vmatpush.msra.mxu3 %v2534_v19 }
 0x537   :  { %1328 = vmatpush.msra.mxu3 %v2531_v41 }
 0x539   :  { %1329 = vmatpush.msra.mxu3 %v2528_v46 }
 0x53b   :  { %1330 = vmatpush.msra.mxu3 %v2525_v55 }
 0x53d   :  { %1331 = vmatpush.msra.mxu3 %v2522_v61 }
 0x53f   :  { %1332 = vmatpush.msra.mxu3 %v2519_v0 }
 0x541   :  { %1333 = vmatpush.msra.mxu3 %v2516_v2 }
 0x543   :  { %1334 = vmatpush.msra.mxu3 %v2513_v50 }
 0x570   :  { %v743_v58 = vpop.xlane.xlu0 %742 }
 0x571   :  { %v748_v54 = vmul.f32 0.05882353, %v743_v58 }
 0x573   :  { %v751_v21 = vadd.f32 1e-05, %v748_v54 }
 0x575   :  { %2680 = vrsqrt.f32 %v751_v21  ;;  %vm760_vm5 = vweird.f32 %v751_v21 }
 0x578   :  { %v745_v15 = vpop.xlane.xlu1 %744 }
 0x579   :  { %v749_v1 = vmul.f32 0.05882353, %v745_v15 }
 0x57b   :  { %v2681_v3 = vpop.eup %2680  ;;  %v752_v4 = vadd.f32 1e-05, %v749_v1 }
 0x57c   :  { %v755_v8 = vmul.f32 %v2681_v3, %v751_v21  ;;  %vm761_vm4 = vweird.f32 %v2681_v3 }
 0x57d   :  { %2682 = vrsqrt.f32 %v752_v4  ;;  %vm762_vm6 = vmor %vm760_vm5, %vm761_vm4  ;;  %vm770_vm8 = vweird.f32 %v752_v4 }
 0x57e   :  { %v756_v6 = vmul.f32 %v2681_v3, %v755_v8 }
 0x580   :  { %v757_v44 = vmul.f32 0.5, %v756_v6  ;;  %v747_v47 = vpop.xlane.xlu2 %746 }
 0x581   :  { %v750_v12 = vmul.f32 0.05882353, %v747_v47 }
 0x582   :  { %v758_v13 = vsub.f32 1.5, %v757_v44 }
 0x583   :  { %v2683_v49 = vpop.eup %2682  ;;  %v753_v16 = vadd.f32 1e-05, %v750_v12  ;;  %v1016_v18 = vpop.xlane.xlu0 %1015 }
 0x584   :  { %v759_v22 = vmul.f32 %v2681_v3, %v758_v13  ;;  %v765_v23 = vmul.f32 %v2683_v49, %v752_v4  ;;  %v1021_v62 = vmul.f32 0.05882353, %v1016_v18  ;;  %vm771_vm7 = vweird.f32 %v2683_v49 }
 0x585   :  { %2684 = vrsqrt.f32 %v753_v16  ;;  %vm772_vm9 = vmor %vm770_vm8, %vm771_vm7  ;;  %vm780_vm11 = vweird.f32 %v753_v16 }
 0x586   :  { %v763_v25 = vsel %vm762_vm6, %v2681_v3, %v759_v22  ;;  %v766_v26 = vmul.f32 %v2683_v49, %v765_v23  ;;  %v1024_v27 = vadd.f32 1e-05, %v1021_v62 }
 0x587   :  { %v784_v29 = vmul.f32 %v763_v25, %v3535_v63  ;;  %v3867_v25 = vld [vmem:[%s4669_s23 + $0x3] sm:$0x7]  ;;  %s2496_s23 = sshll.u32 %s4702_s18, 4  ;;  %s2497_s23 = int_to_ptr.hbm [resolvable:$true] %s2496_s23 }
 0x588   :  { %v767_v30 = vmul.f32 0.5, %v766_v26  ;;  %2686 = vrsqrt.f32 %v1024_v27  ;;  %vm1033_vm14 = vweird.f32 %v1024_v27 }
 0x589   :  { %v790_v31 = vmul.f32 %v3807_v5, %v784_v29 }
 0x58a   :  { %v768_v32 = vsub.f32 1.5, %v767_v30 }
 0x58b   :  { %v2685_v33 = vpop.eup %2684  ;;  %v1018_v34 = vpop.xlane.xlu1 %1017  ;;  %v3819_v35 = vadd.f32 %v3814_v57, %v790_v31 }
 0x58c   :  { %v769_v63 = vmul.f32 %v2683_v49, %v768_v32  ;;  %v775_v36 = vmul.f32 %v2685_v33, %v753_v16  ;;  %v1022_v37 = vmul.f32 0.05882353, %v1018_v34  ;;  %vm781_vm10 = vweird.f32 %v2685_v33 }
 0x58d   :  { %1205 = vmatmul.f32.vlgmr.msrb.gmra.mxu2 %v3819_v35  ;;  %1231 = vmatmul.f32.vlgmr.msrb.gmra.mxu3 %v3819_v35  ;;  %vm782_vm12 = vmor %vm780_vm11, %vm781_vm10 }
 0x58e   :  { %v2687_v38 = vpop.eup %2686  ;;  %v773_v9 = vsel %vm772_vm9, %v2683_v49, %v769_v63  ;;  %v776_v39 = vmul.f32 %v2685_v33, %v775_v36  ;;  %v1025_v56 = vadd.f32 1e-05, %v1022_v37  ;;  %1257 = vmatmul.f32.vlgmr.msra.gmra.mxu0 %v3819_v35 }
 0x58f   :  { %v785_v40 = vmul.f32 %v773_v9, %v3551_v53  ;;  %v1028_v7 = vmul.f32 %v2687_v38, %v1024_v27  ;;  %vm1034_vm13 = vweird.f32 %v2687_v38 }
 0x590   :  { %v777_v14 = vmul.f32 0.5, %v776_v39  ;;  %2688 = vrsqrt.f32 %v1025_v56  ;;  %vm1035_vm15 = vmor %vm1033_vm14, %vm1034_vm13  ;;  %vm1043_vm2 = vweird.f32 %v1025_v56 }
 0x591   :  { %v1029_v19 = vmul.f32 %v2687_v38, %v1028_v7  ;;  %v791_v28 = vmul.f32 %v3807_v5, %v785_v40 }
 0x592   :  { %v778_v43 = vsub.f32 1.5, %v777_v14 }
 0x593   :  { %v1030_v41 = vmul.f32 0.5, %v1029_v19  ;;  %v1020_v45 = vpop.xlane.xlu2 %1019  ;;  %v3827_v20 = vadd.f32 %v3814_v57, %v791_v28 }
 0x594   :  { %v779_v46 = vmul.f32 %v2685_v33, %v778_v43  ;;  %v1023_v48 = vmul.f32 0.05882353, %v1020_v45 }
 0x595   :  { %v1031_v51 = vsub.f32 1.5, %v1030_v41  ;;  %1208 = vmatmul.f32.gmra.mxu2 %v3827_v20  ;;  %1234 = vmatmul.f32.gmra.mxu3 %v3827_v20 }
 0x596   :  { %v2689_v53 = vpop.eup %2688  ;;  %v783_v55 = vsel %vm782_vm12, %v2685_v33, %v779_v46  ;;  %v1026_v59 = vadd.f32 1e-05, %v1023_v48  ;;  %1260 = vmatmul.f32.gmra.mxu0 %v3827_v20 }
 0x597   :  { %v786_v60 = vmul.f32 %v783_v55, %v3601_v52  ;;  %v1032_v61 = vmul.f32 %v2687_v38, %v1031_v51  ;;  %v1038_v0 = vmul.f32 %v2689_v53, %v1025_v56  ;;  %vm1044_vm1 = vweird.f32 %v2689_v53 }
 0x598   :  { %2690 = vrsqrt.f32 %v1026_v59  ;;  %vm1045_vm3 = vmor %vm1043_vm2, %vm1044_vm1  ;;  %vm1053_vm5 = vweird.f32 %v1026_v59 }
 0x599   :  { %v1036_v2 = vsel %vm1035_vm15, %v2687_v38, %v1032_v61  ;;  %v1039_v50 = vmul.f32 %v2689_v53, %v1038_v0  ;;  %v792_v58 = vmul.f32 %v3807_v5, %v786_v60 }
 0x59a   :  { %v1057_v54 = vmul.f32 %v1036_v2, %v3607_v11 }
 0x59b   :  { %v1040_v21 = vmul.f32 0.5, %v1039_v50  ;;  %v3836_v15 = vadd.f32 %v3814_v57, %v792_v58 }
 0x59c   :  { %v1060_v1 = vmul.f32 %v3807_v5, %v1057_v54  ;;  %v2575_v54 = vld [vmem:[%s4622_s5 + $0xf8] sm:$0xff] }
 0x59d   :  { %v1041_v3 = vsub.f32 1.5, %v1040_v21  ;;  %1211 = vmatmul.f32.gmra.mxu2 %v3836_v15  ;;  %1237 = vmatmul.f32.gmra.mxu3 %v3836_v15  ;;  %v2574_v21 = vld [vmem:[%s4622_s5 + $0xf0] sm:$0xff] }
 0x59e   :  { %v2691_v52 = vpop.eup %2690  ;;  %1263 = vmatmul.f32.gmra.mxu0 %v3836_v15  ;;  %v3843_v4 = vadd.f32 %v3814_v57, %v1060_v1  ;;  %1723 = vmatpush.msrb.mxu3 %v2575_v54  ;;  %v2573_v1 = vld [vmem:[%s4622_s5 + $0xe8] sm:$0xff] }
 0x59f   :  { %v1042_v8 = vmul.f32 %v2689_v53, %v1041_v3  ;;  %v1048_v11 = vmul.f32 %v2691_v52, %v1026_v59  ;;  %vm1054_vm4 = vweird.f32 %v2691_v52  ;;  %1438 = vmatpush.msrb.mxu0 %v2575_v54  ;;  %v2572_v3 = vld [vmem:[%s4622_s5 + $0xe0] sm:$0xff] }
 0x5a0   :  { %1283 = vmatmul.f32.vlgmr.msra.gmra.mxu1 %v3843_v4  ;;  %vm1055_vm6 = vmor %vm1053_vm5, %vm1054_vm4  ;;  %1724 = vmatpush.msrb.mxu3 %v2574_v21 }
 0x5a1   :  { %v1046_v6 = vsel %vm1045_vm3, %v2689_v53, %v1042_v8  ;;  %v1049_v44 = vmul.f32 %v2691_v52, %v1048_v11  ;;  %1439 = vmatpush.msrb.mxu0 %v2574_v21  ;;  %v2570_v8 = vld [vmem:[%s4622_s5 + $0xd0] sm:$0xff]  ;;  %v2569_v11 = vld [vmem:[%s4622_s5 + $0xc8] sm:$0xff] }
 0x5a2   :  { %v1058_v47 = vmul.f32 %v1046_v6, %v3613_v17  ;;  %1725 = vmatpush.msrb.mxu3 %v2573_v1  ;;  %v2568_v6 = vld [vmem:[%s4622_s5 + $0xc0] sm:$0xff] }
 0x5a3   :  { %v1050_v12 = vmul.f32 0.5, %v1049_v44  ;;  %1440 = vmatpush.msrb.mxu0 %v2573_v1  ;;  %v2567_v44 = vld [vmem:[%s4622_s5 + $0xb8] sm:$0xff] }
 0x5a4   :  { %v1061_v13 = vmul.f32 %v3807_v5, %v1058_v47  ;;  %1726 = vmatpush.msrb.mxu3 %v2572_v3  ;;  %v2566_v47 = vld [vmem:[%s4622_s5 + $0xb0] sm:$0xff] }
 0x5a5   :  { %v1051_v49 = vsub.f32 1.5, %v1050_v12  ;;  %1309 = vmatmul.f32.vlgmr.msra.gmra.mxu2 %v3843_v4  ;;  %1335 = vmatmul.f32.vlgmr.msra.gmra.mxu3 %v3843_v4  ;;  %v2565_v12 = vld [vmem:[%s4622_s5 + $0xa8] sm:$0xff] }
 0x5a6   :  { %v3851_v16 = vadd.f32 %v3814_v57, %v1061_v13  ;;  %1441 = vmatpush.msrb.mxu0 %v2572_v3  ;;  %v2564_v13 = vld [vmem:[%s4622_s5 + $0xa0] sm:$0xff] }
 0x5a7   :  { %v1052_v18 = vmul.f32 %v2691_v52, %v1051_v49  ;;  %v2563_v49 = vld [vmem:[%s4622_s5 + $0x98] sm:$0xff] }
 0x5a8   :  { %1286 = vmatmul.f32.gmra.mxu1 %v3851_v16 }
 0x5a9   :  { %v1056_v22 = vsel %vm1055_vm6, %v2691_v52, %v1052_v18  ;;  %v2571_v52 = vld [vmem:[%s4622_s5 + $0xd8] sm:$0xff]  ;;  %v2562_v18 = vld [vmem:[%s4622_s5 + $0x90] sm:$0xff] }
 0x5aa   :  { %v1059_v17 = vmul.f32 %v1056_v22, %v3619_v24  ;;  %v1183_v24 = vperm.slane %v3867_v25, 0  ;;  %1442 = vmatpush.msrb.mxu0 %v2571_v52  ;;  %1727 = vmatpush.msrb.mxu3 %v2571_v52 }
 0x5ac   :  { %v1062_v23 = vmul.f32 %v3807_v5, %v1059_v17  ;;  %v1184_v5 = vperm.slane %v3867_v25, 1  ;;  %1443 = vmatpush.msrb.mxu0 %v2570_v8  ;;  %1728 = vmatpush.msrb.mxu3 %v2570_v8  ;;  %v2561_v17 = vld [vmem:[%s4622_s5 + $0x88] sm:$0xff] }
 0x5ad   :  { %1312 = vmatmul.f32.gmra.mxu2 %v3851_v16  ;;  %1338 = vmatmul.f32.gmra.mxu3 %v3851_v16 }
 0x5ae   :  { %v3859_v62 = vadd.f32 %v3814_v57, %v1062_v23  ;;  %1444 = vmatpush.msrb.mxu0 %v2569_v11  ;;  %1729 = vmatpush.msrb.mxu3 %v2569_v11 }
 0x5b0   :  { %1289 = vmatmul.f32.gmra.mxu1 %v3859_v62  ;;  %1445 = vmatpush.msrb.mxu0 %v2568_v6 }
 0x5b1   :  { %1730 = vmatpush.msrb.mxu3 %v2568_v6 }
 0x5b2   :  { %1446 = vmatpush.msrb.mxu0 %v2567_v44 }
 0x5b3   :  { %1731 = vmatpush.msrb.mxu3 %v2567_v44 }
 0x5b4   :  { %1447 = vmatpush.msrb.mxu0 %v2566_v47 }
 0x5b5   :  { %1315 = vmatmul.f32.gmra.mxu2 %v3859_v62  ;;  %1341 = vmatmul.f32.gmra.mxu3 %v3859_v62 }
 0x5b6   :  { %1732 = vmatpush.msrb.mxu3 %v2566_v47  ;;  %1448 = vmatpush.msrb.mxu0 %v2565_v12 }
 0x5b8   :  { %1733 = vmatpush.msrb.mxu3 %v2565_v12  ;;  %1449 = vmatpush.msrb.mxu0 %v2564_v13 }
 0x5ba   :  { %1734 = vmatpush.msrb.mxu3 %v2564_v13  ;;  %1450 = vmatpush.msrb.mxu0 %v2563_v49 }
 0x5bc   :  { %1735 = vmatpush.msrb.mxu3 %v2563_v49  ;;  %1451 = vmatpush.msrb.mxu0 %v2562_v18 }
 0x5be   :  { %1736 = vmatpush.msrb.mxu3 %v2562_v18  ;;  %1452 = vmatpush.msrb.mxu0 %v2561_v17 }
 0x5c0   :  { %1737 = vmatpush.msrb.mxu3 %v2561_v17 }
 0x610   :  { %v1206_v26 = vpop.f32.mrf.mxu2  ;;  %v1232_v27 = vpop.f32.mrf.mxu3 }
 0x611   :  { %v1207_v29 = vadd.f32 %v1206_v26, %v1183_v24  ;;  %v1233_v57 = vadd.f32 %v1232_v27, %v1184_v5 }
 0x613   :  { %v1345_v30 = vmul.f32 %v1233_v57, %v1207_v29 }
 0x615   :  { %1348 = vadd.xlane.f32.xlu0 %v1345_v30 }
 0x618   :  { %v1209_v31 = vpop.f32.mrf.mxu2  ;;  %v1235_v32 = vpop.f32.mrf.mxu3 }
 0x619   :  { %v1210_v33 = vadd.f32 %v1209_v31, %v1183_v24  ;;  %v1236_v34 = vadd.f32 %v1235_v32, %v1184_v5 }
 0x61b   :  { %v1346_v63 = vmul.f32 %v1236_v34, %v1210_v33 }
 0x61d   :  { %v1284_v36 = vpop.f32.mrf.mxu1  ;;  %1350 = vadd.xlane.f32.xlu2 %v1346_v63 }
 0x61e   :  { %v1285_v37 = vadd.f32 %v1284_v36, %v1183_v24 }
 0x620   :  { %v1212_v38 = vpop.f32.mrf.mxu2  ;;  %v3871_v9 = vmul.f32 %v1285_v37, %v1233_v57  ;;  %v1238_v19 = vpop.f32.mrf.mxu3 }
 0x621   :  { %v1239_v45 = vadd.f32 %v1238_v19, %v1184_v5  ;;  %v1213_v48 = vadd.f32 %v1212_v38, %v1183_v24 }
 0x623   :  { %v1347_v60 = vmul.f32 %v1239_v45, %v1213_v48 }
 0x625   :  { %v1287_v39 = vpop.f32.mrf.mxu1 }
 0x626   :  { %v1288_v56 = vadd.f32 %v1287_v39, %v1183_v24 }
 0x628   :  { %v1310_v40 = vpop.f32.mrf.mxu2  ;;  %v3873_v7 = vmul.f32 %v1288_v56, %v1236_v34 }
 0x629   :  { %v1311_v14 = vadd.f32 %v1310_v40, %v1184_v5 }
 0x62b   :  { %v1357_v28 = vmul.f32 %v1311_v14, %v1207_v29  ;;  %v3875_v43 = vmul.f32 %v1311_v14, %v1285_v37 }
 0x62d   :  { %v1290_v41 = vpop.f32.mrf.mxu1  ;;  %1360 = vadd.xlane.f32.xlu1 %v1357_v28 }
 0x62e   :  { %v1291_v46 = vadd.f32 %v1290_v41, %v1183_v24  ;;  %v2560_v24 = vld [vmem:[%s4622_s5 + $0x80] sm:$0xff] }
 0x62f   :  { %1453 = vmatpush.msrb.mxu0 %v2560_v24  ;;  %1738 = vmatpush.msrb.mxu3 %v2560_v24 }
 0x630   :  { %v1313_v51 = vpop.f32.mrf.mxu2  ;;  %v3877_v53 = vmul.f32 %v1291_v46, %v1239_v45 }
 0x631   :  { %v1314_v55 = vadd.f32 %v1313_v51, %v1184_v5  ;;  %v1336_v51 = vpop.f32.mrf.mxu3 }
 0x633   :  { %v1358_v59 = vmul.f32 %v1314_v55, %v1210_v33  ;;  %v3879_v61 = vmul.f32 %v1314_v55, %v1288_v56 }
 0x635   :  { %1362 = vadd.xlane.f32.xlu0 %v1358_v59  ;;  %1352 = vadd.xlane.f32.xlu1 %v1347_v60  ;;  %v1185_v59 = vperm.slane %v3867_v25, 2 }
 0x637   :  { %v3934_v8 = vadd.f32 %v1336_v51, %v1185_v59 }
 0x638   :  { %v1316_v0 = vpop.f32.mrf.mxu2 }
 0x639   :  { %v1317_v2 = vadd.f32 %v1316_v0, %v1184_v5  ;;  %v1339_v12 = vpop.f32.mrf.mxu3 }
 0x63a   :  { %v3940_v24 = vadd.f32 %v1339_v12, %v1185_v59  ;;  %v2585_v12 = vld [vmem:[%s4626_s9 + $0xb0] sm:$0xff] }
 0x63b   :  { %v1359_v50 = vmul.f32 %v1317_v2, %v1213_v48  ;;  %v3881_v58 = vmul.f32 %v1317_v2, %v1291_v46  ;;  %v1258_v48 = vpop.f32.mrf.mxu0 }
 0x63c   :  { %v3932_v3 = vadd.f32 %v1258_v48, %v1185_v59 }
 0x63d   :  { %1364 = vadd.xlane.f32.xlu2 %v1359_v50 }
 0x643   :  { %v1261_v47 = vpop.f32.mrf.mxu0 }
 0x688   :  { %v1349_v22 = vpop.xlane.xlu0 %1348 }
 0x689   :  { %v1354_v5 = vmul.f32 0.24253562, %v1349_v22 }
 0x690   :  { %v1351_v30 = vpop.xlane.xlu2 %1350 }
 0x691   :  { %v1355_v34 = vmul.f32 0.24253562, %v1351_v30  ;;  %v1264_v30 = vpop.f32.mrf.mxu0 }
 0x6a0   :  { %v1361_v23 = vpop.xlane.xlu1 %1360 }
 0x6a1   :  { %v1366_v26 = vmul.f32 0.24253562, %v1361_v23  ;;  %v3938_v23 = vadd.f32 %v1261_v47, %v1185_v59  ;;  %v2591_v47 = vld [vmem:[%s4626_s9 + $0xe0] sm:$0xff] }
 0x6a3   :  { %v1393_v27 = vmax.f32 %v1354_v5, %v1366_v26 }
 0x6a5   :  { %v1396_v29 = vsub.f32 %v1354_v5, %v1393_v27  ;;  %v1405_v57 = vsub.f32 %v1366_v26, %v1393_v27 }
 0x6a7   :  { %v1399_v31 = vmul.f32 1.442695, %v1396_v29  ;;  %v1408_v32 = vmul.f32 1.442695, %v1405_v57 }
 0x6a8   :  { %v1363_v33 = vpop.xlane.xlu0 %1362  ;;  %v1353_v39 = vpop.xlane.xlu1 %1352 }
 0x6a9   :  { %2692 = vpow2.f32 %v1399_v31  ;;  %v1367_v63 = vmul.f32 0.24253562, %v1363_v33  ;;  %v1356_v45 = vmul.f32 0.24253562, %v1353_v39  ;;  %v1342_v31 = vpop.f32.mrf.mxu3  ;;  %v3944_v33 = vadd.f32 %v1264_v30, %v1185_v59 }
 0x6aa   :  { %2694 = vpow2.f32 %v1408_v32 }
 0x6ab   :  { %v1394_v36 = vmax.f32 %v1355_v34, %v1367_v63 }
 0x6ad   :  { %v1397_v37 = vsub.f32 %v1355_v34, %v1394_v36  ;;  %v1406_v38 = vsub.f32 %v1367_v63, %v1394_v36  ;;  %v3946_v34 = vadd.f32 %v1342_v31, %v1185_v59 }
 0x6af   :  { %v2693_v56 = vpop.eup %2692  ;;  %v1401_v40 = vmul.f32 1.442695, %v1397_v37  ;;  %v1410_v14 = vmul.f32 1.442695, %v1406_v38 }
 0x6b0   :  { %v2695_v19 = vpop.eup %2694  ;;  %v1365_v28 = vpop.xlane.xlu2 %1364 }
 0x6b1   :  { %v1414_v41 = vadd.f32 %v2695_v19, %v2693_v56  ;;  %2696 = vpow2.f32 %v1401_v40  ;;  %v1368_v46 = vmul.f32 0.24253562, %v1365_v28 }
 0x6b2   :  { %2698 = vpow2.f32 %v1410_v14 }
 0x6b3   :  { %2700 = vrcp.f32 %v1414_v41  ;;  %v1395_v55 = vmax.f32 %v1356_v45, %v1368_v46 }
 0x6b5   :  { %v1398_v60 = vsub.f32 %v1356_v45, %v1395_v55  ;;  %v1407_v0 = vsub.f32 %v1368_v46, %v1395_v55 }
 0x6b7   :  { %v2697_v2 = vpop.eup %2696  ;;  %v1403_v50 = vmul.f32 1.442695, %v1398_v60  ;;  %v1412_v54 = vmul.f32 1.442695, %v1407_v0 }
 0x6b8   :  { %v2699_v21 = vpop.eup %2698 }
 0x6b9   :  { %v2701_v1 = vpop.eup %2700  ;;  %v1415_v52 = vadd.f32 %v2699_v21, %v2697_v2  ;;  %2702 = vpow2.f32 %v1403_v50 }
 0x6ba   :  { %v1426_v11 = vmul.f32 %v2701_v1, %v2695_v19  ;;  %2704 = vpow2.f32 %v1412_v54  ;;  %v1420_v6 = vmul.f32 %v2701_v1, %v2693_v56  ;;  %v3953_v56 = vld [vmem:[%s4623_s6 + $0x1] ss:$0 sm:$0xff] }
 0x6bb   :  { %2706 = vrcp.f32 %v1415_v52 }
 0x6bc   :  { %v1423_v44 = vmul.f32 %v1420_v6, %v3932_v3  ;;  %v1429_v25 = vmul.f32 %v1426_v11, %v3934_v8 }
 0x6be   :  { %v1432_v13 = vadd.f32 %v1429_v25, %v1423_v44 }
 0x6bf   :  { %v2703_v49 = vpop.eup %2702 }
 0x6c0   :  { %v2705_v18 = vpop.eup %2704  ;;  %1454 = vmatmul.f32.vlgmr.msrb.gmra.mxu0 %v1432_v13  ;;  %v2584_v13 = vld [vmem:[%s4626_s9 + $0xa8] sm:$0xff] }
 0x6c1   :  { %v2707_v22 = vpop.eup %2706  ;;  %v1416_v17 = vadd.f32 %v2705_v18, %v2703_v49 }
 0x6c2   :  { %v1421_v5 = vmul.f32 %v2707_v22, %v2697_v2  ;;  %v1427_v26 = vmul.f32 %v2707_v22, %v2699_v21  ;;  %v2581_v22 = vld [vmem:[%s4626_s9 + $0x90] sm:$0xff] }
 0x6c3   :  { %2708 = vrcp.f32 %v1416_v17  ;;  %v2580_v17 = vld [vmem:[%s4626_s9 + $0x88] sm:$0xff] }
 0x6c4   :  { %v1424_v27 = vmul.f32 %v1421_v5, %v3938_v23  ;;  %v1430_v29 = vmul.f32 %v1427_v26, %v3940_v24  ;;  %v2579_v5 = vld [vmem:[%s4626_s9 + $0x80] sm:$0xff] }
 0x6c6   :  { %v1433_v57 = vadd.f32 %v1430_v29, %v1424_v27 }
 0x6c8   :  { %1457 = vmatmul.f32.gmra.mxu0 %v1433_v57 }
 0x6c9   :  { %v2709_v32 = vpop.eup %2708 }
 0x6ca   :  { %v1422_v63 = vmul.f32 %v2709_v32, %v2703_v49  ;;  %v1428_v36 = vmul.f32 %v2709_v32, %v2705_v18  ;;  %v2583_v49 = vld [vmem:[%s4626_s9 + $0xa0] sm:$0xff]  ;;  %v2582_v18 = vld [vmem:[%s4626_s9 + $0x98] sm:$0xff] }
 0x6cc   :  { %v1425_v37 = vmul.f32 %v1422_v63, %v3944_v33  ;;  %v1431_v38 = vmul.f32 %v1428_v36, %v3946_v34 }
 0x6ce   :  { %v1434_v39 = vadd.f32 %v1431_v38, %v1425_v37 }
 0x6d0   :  { %1460 = vmatmul.f32.gmra.mxu0 %v1434_v39 }
 0x73d   :  { %v1455_v40 = vpop.f32.mrf.mxu0 }
 0x73e   :  { %v1456_v14 = vadd.f32 %v3953_v56, %v1455_v40 }
 0x740   :  { %v1464_v19 = vadd.f32 %v1456_v14, %v3819_v35 }
 0x742   :  { %1467 = vadd.xlane.f32.xlu0 %v1464_v19 }
 0x745   :  { %v1458_v28 = vpop.f32.mrf.mxu0 }
 0x746   :  { %v1459_v41 = vadd.f32 %v3953_v56, %v1458_v28 }
 0x748   :  { %v1465_v45 = vadd.f32 %v1459_v41, %v3827_v20  ;;  %v2594_v20 = vld [vmem:[%s4626_s9 + $0xf8] sm:$0xff] }
 0x749   :  { %1545 = vmatpush.msrb.mxu1 %v2594_v20  ;;  %1821 = vmatpush.msra.mxu0 %v2594_v20 }
 0x74a   :  { %1469 = vadd.xlane.f32.xlu1 %v1465_v45 }
 0x74d   :  { %v1461_v46 = vpop.f32.mrf.mxu0 }
 0x74e   :  { %v1462_v48 = vadd.f32 %v3953_v56, %v1461_v46 }
 0x750   :  { %v1466_v51 = vadd.f32 %v1462_v48, %v3836_v15  ;;  %v2593_v15 = vld [vmem:[%s4626_s9 + $0xf0] sm:$0xff] }
 0x751   :  { %1546 = vmatpush.msrb.mxu1 %v2593_v15  ;;  %1822 = vmatpush.msra.mxu0 %v2593_v15 }
 0x752   :  { %1471 = vadd.xlane.f32.xlu2 %v1466_v51 }
 0x7b5   :  { %v1468_v55 = vpop.xlane.xlu0 %1467 }
 0x7b6   :  { %v1473_v59 = vmul.f32 0.05882353, %v1468_v55 }
 0x7b8   :  { %v1476_v60 = vsub.f32 %v1464_v19, %v1473_v59 }
 0x7ba   :  { %v3962_v0 = vmul.f32 %v3394_v10, %v1476_v60 }
 0x7bc   :  { %v1482_v35 = vmul.f32 %v3962_v0, %v3962_v0 }
 0x7bd   :  { %v1470_v2 = vpop.xlane.xlu1 %1469 }
 0x7be   :  { %v1474_v50 = vmul.f32 0.05882353, %v1470_v2  ;;  %1485 = vadd.xlane.f32.xlu0 %v1482_v35  ;;  %v4036_v35 = vld [vmem:[%s4624_s7 + $0x1] ss:$0 sm:$0xff] }
 0x7c0   :  { %v1477_v54 = vsub.f32 %v1465_v45, %v1474_v50 }
 0x7c2   :  { %v3973_v21 = vmul.f32 %v3394_v10, %v1477_v54 }
 0x7c4   :  { %v1483_v1 = vmul.f32 %v3973_v21, %v3973_v21 }
 0x7c5   :  { %v1472_v52 = vpop.xlane.xlu2 %1471 }
 0x7c6   :  { %v1475_v11 = vmul.f32 0.05882353, %v1472_v52  ;;  %1487 = vadd.xlane.f32.xlu1 %v1483_v1  ;;  %1372 = vadd.xlane.f32.xlu0 %v3871_v9  ;;  %v2592_v9 = vld [vmem:[%s4626_s9 + $0xe8] sm:$0xff]  ;;  %v4042_v52 = vld [vmem:[%s4625_s8 + $0x1] ss:$0 sm:$0xff] }
 0x7c7   :  { %1547 = vmatpush.msrb.mxu1 %v2592_v9  ;;  %1823 = vmatpush.msra.mxu0 %v2592_v9 }
 0x7c8   :  { %v1478_v6 = vsub.f32 %v1466_v51, %v1475_v11 }
 0x7c9   :  { %1548 = vmatpush.msrb.mxu1 %v2591_v47  ;;  %1824 = vmatpush.msra.mxu0 %v2591_v47 }
 0x7ca   :  { %v3979_v44 = vmul.f32 %v3394_v10, %v1478_v6 }
 0x7cc   :  { %v1484_v25 = vmul.f32 %v3979_v44, %v3979_v44 }
 0x7ce   :  { %1489 = vadd.xlane.f32.xlu2 %v1484_v25  ;;  %1384 = vadd.xlane.f32.xlu1 %v3875_v43  ;;  %v2589_v43 = vld [vmem:[%s4626_s9 + $0xd0] sm:$0xff] }
 0x7cf   :  { %1386 = vadd.xlane.f32.xlu0 %v3879_v61  ;;  %v2587_v61 = vld [vmem:[%s4626_s9 + $0xc0] sm:$0xff] }
 0x7d6   :  { %1374 = vadd.xlane.f32.xlu2 %v3873_v7  ;;  %1376 = vadd.xlane.f32.xlu1 %v3877_v53  ;;  %v2590_v7 = vld [vmem:[%s4626_s9 + $0xd8] sm:$0xff]  ;;  %v2588_v53 = vld [vmem:[%s4626_s9 + $0xc8] sm:$0xff] }
 0x7d7   :  { %1549 = vmatpush.msrb.mxu1 %v2590_v7  ;;  %1825 = vmatpush.msra.mxu0 %v2590_v7 }
 0x7d9   :  { %1550 = vmatpush.msrb.mxu1 %v2589_v43  ;;  %1826 = vmatpush.msra.mxu0 %v2589_v43 }
 0x7db   :  { %1551 = vmatpush.msrb.mxu1 %v2588_v53  ;;  %1827 = vmatpush.msra.mxu0 %v2588_v53 }
 0x7dd   :  { %1552 = vmatpush.msrb.mxu1 %v2587_v61  ;;  %1828 = vmatpush.msra.mxu0 %v2587_v61 }
 0x7de   :  { %1388 = vadd.xlane.f32.xlu2 %v3881_v58  ;;  %v2586_v58 = vld [vmem:[%s4626_s9 + $0xb8] sm:$0xff] }
 0x7df   :  { %1553 = vmatpush.msrb.mxu1 %v2586_v58  ;;  %1829 = vmatpush.msra.mxu0 %v2586_v58 }
 0x7e1   :  { %1554 = vmatpush.msrb.mxu1 %v2585_v12  ;;  %1830 = vmatpush.msra.mxu0 %v2585_v12 }
 0x7e3   :  { %1555 = vmatpush.msrb.mxu1 %v2584_v13  ;;  %1831 = vmatpush.msra.mxu0 %v2584_v13 }
 0x7e5   :  { %1556 = vmatpush.msrb.mxu1 %v2583_v49  ;;  %1832 = vmatpush.msra.mxu0 %v2583_v49 }
 0x7e7   :  { %1557 = vmatpush.msrb.mxu1 %v2582_v18  ;;  %1833 = vmatpush.msra.mxu0 %v2582_v18 }
 0x7e9   :  { %1558 = vmatpush.msrb.mxu1 %v2581_v22  ;;  %1834 = vmatpush.msra.mxu0 %v2581_v22 }
 0x7eb   :  { %1559 = vmatpush.msrb.mxu1 %v2580_v17  ;;  %1835 = vmatpush.msra.mxu0 %v2580_v17 }
 0x7ed   :  { %1560 = vmatpush.msrb.mxu1 %v2579_v5  ;;  %1836 = vmatpush.msra.mxu0 %v2579_v5 }
 0x831   :  { %v1486_v26 = vpop.xlane.xlu0 %1485 }
 0x832   :  { %v1491_v27 = vmul.f32 0.05882353, %v1486_v26 }
 0x834   :  { %v1494_v29 = vadd.f32 1e-05, %v1491_v27 }
 0x836   :  { %2710 = vrsqrt.f32 %v1494_v29  ;;  %vm1503_vm8 = vweird.f32 %v1494_v29 }
 0x839   :  { %v1488_v57 = vpop.xlane.xlu1 %1487  ;;  %v1373_v36 = vpop.xlane.xlu0 %1372 }
 0x83a   :  { %v1492_v30 = vmul.f32 0.05882353, %v1488_v57  ;;  %v1378_v14 = vmul.f32 0.24253562, %v1373_v36 }
 0x83c   :  { %v2711_v31 = vpop.eup %2710  ;;  %v1495_v32 = vadd.f32 1e-05, %v1492_v30 }
 0x83d   :  { %v1498_v63 = vmul.f32 %v2711_v31, %v1494_v29  ;;  %vm1504_vm7 = vweird.f32 %v2711_v31 }
 0x83e   :  { %2712 = vrsqrt.f32 %v1495_v32  ;;  %vm1505_vm9 = vmor %vm1503_vm8, %vm1504_vm7  ;;  %vm1513_vm11 = vweird.f32 %v1495_v32 }
 0x83f   :  { %v1499_v37 = vmul.f32 %v2711_v31, %v1498_v63  ;;  %v1174_v63 = vld [vmem:[#allocation5 + $0xf0] sm:$0xff] }
 0x841   :  { %v1500_v38 = vmul.f32 0.5, %v1499_v37  ;;  %v1490_v39 = vpop.xlane.xlu2 %1489  ;;  %v1385_v40 = vpop.xlane.xlu1 %1384 }
 0x842   :  { %v1493_v19 = vmul.f32 0.05882353, %v1490_v39  ;;  %v1390_v28 = vmul.f32 0.24253562, %v1385_v40  ;;  %v1387_v20 = vpop.xlane.xlu0 %1386  ;;  %v1173_v40 = vld [vmem:[#allocation5 + $0xe8] sm:$0xff] }
 0x843   :  { %v1501_v41 = vsub.f32 1.5, %v1500_v38  ;;  %v1391_v25 = vmul.f32 0.24253562, %v1387_v20  ;;  %v1170_v20 = vld [vmem:[#allocation5 + $0xd0] sm:$0xff] }
 0x844   :  { %v2713_v45 = vpop.eup %2712  ;;  %v4030_v46 = vadd.f32 1e-05, %v1493_v19  ;;  %v1681_v48 = vmax.f32 %v1378_v14, %v1390_v28 }
 0x845   :  { %v1502_v51 = vmul.f32 %v2711_v31, %v1501_v41  ;;  %v1508_v55 = vmul.f32 %v2713_v45, %v1495_v32  ;;  %vm1514_vm10 = vweird.f32 %v2713_v45  ;;  %v1175_v32 = vld [vmem:[#allocation5 + $0xf8] sm:$0xff] }
 0x846   :  { %2714 = vrsqrt.f32 %v4030_v46  ;;  %v1684_v59 = vsub.f32 %v1378_v14, %v1681_v48  ;;  %v1693_v60 = vsub.f32 %v1390_v28, %v1681_v48  ;;  %vm1515_vm12 = vmor %vm1513_vm11, %vm1514_vm10  ;;  %1577 = vmatpush.msrb.mxu2 %v1175_v32  ;;  %1850 = vmatpush.msra.mxu1 %v1175_v32  ;;  %vm1523_vm14 = vweird.f32 %v4030_v46  ;;  %v1172_v28 = vld [vmem:[#allocation5 + $0xe0] sm:$0xff]  ;;  %v1161_v32 = vld [vmem:[#allocation5 + $0x88] sm:$0xff] }
 0x847   :  { %v1506_v2 = vsel %vm1505_vm9, %v2711_v31, %v1502_v51  ;;  %v1509_v50 = vmul.f32 %v2713_v45, %v1508_v55  ;;  %v1171_v51 = vld [vmem:[#allocation5 + $0xd8] sm:$0xff] }
 0x848   :  { %v1527_v15 = vmul.f32 %v1506_v2, %v3962_v0  ;;  %v1687_v54 = vmul.f32 1.442695, %v1684_v59  ;;  %v1696_v1 = vmul.f32 1.442695, %v1693_v60  ;;  %1578 = vmatpush.msrb.mxu2 %v1174_v63  ;;  %1851 = vmatpush.msra.mxu1 %v1174_v63  ;;  %v1160_v63 = vld [vmem:[#allocation5 + $0x80] sm:$0xff] }
 0x849   :  { %v1510_v11 = vmul.f32 0.5, %v1509_v50  ;;  %v1375_v6 = vpop.xlane.xlu2 %1374  ;;  %v1377_v49 = vpop.xlane.xlu1 %1376 }
 0x84a   :  { %2716 = vpow2.f32 %v1687_v54  ;;  %v1379_v9 = vmul.f32 0.24253562, %v1375_v6  ;;  %v1533_v47 = vmul.f32 %v4036_v35, %v1527_v15  ;;  %v1380_v30 = vmul.f32 0.24253562, %v1377_v49  ;;  %1579 = vmatpush.msrb.mxu2 %v1173_v40  ;;  %1852 = vmatpush.msra.mxu1 %v1173_v40  ;;  %v1169_v6 = vld [vmem:[#allocation5 + $0xc8] sm:$0xff] }
 0x84b   :  { %v1511_v7 = vsub.f32 1.5, %v1510_v11  ;;  %2718 = vpow2.f32 %v1696_v1 }
 0x84c   :  { %v2715_v43 = vpop.eup %2714  ;;  %v1682_v53 = vmax.f32 %v1379_v9, %v1391_v25  ;;  %v4046_v0 = vadd.f32 %v4042_v52, %v1533_v47  ;;  %1580 = vmatpush.msrb.mxu2 %v1172_v28  ;;  %1853 = vmatpush.msra.mxu1 %v1172_v28  ;;  %v1168_v47 = vld [vmem:[#allocation5 + $0xc0] sm:$0xff] }
 0x84d   :  { %v1512_v61 = vmul.f32 %v2713_v45, %v1511_v7  ;;  %v1518_v58 = vmul.f32 %v2715_v43, %v4030_v46  ;;  %vm1524_vm13 = vweird.f32 %v2715_v43 }
 0x84e   :  { %v1685_v12 = vsub.f32 %v1379_v9, %v1682_v53  ;;  %v1694_v13 = vsub.f32 %v1391_v25, %v1682_v53  ;;  %1561 = vmatmul.f32.vlgmr.msrb.gmra.mxu1 %v4046_v0  ;;  %vm1525_vm15 = vmor %vm1523_vm14, %vm1524_vm13  ;;  %1581 = vmatpush.msrb.mxu2 %v1171_v51 }
 0x84f   :  { %v1519_v18 = vmul.f32 %v2715_v43, %v1518_v58  ;;  %v1516_v22 = vsel %vm1515_vm12, %v2713_v45, %v1512_v61  ;;  %1854 = vmatpush.msra.mxu1 %v1171_v51  ;;  %v1166_v58 = vld [vmem:[#allocation5 + $0xb0] sm:$0xff]  ;;  %v4082_v51 = vld [vmem:[%s4629_s12 + $0x1] ss:$0 sm:$0xff] }
 0x850   :  { %v2717_v17 = vpop.eup %2716  ;;  %v1689_v5 = vmul.f32 1.442695, %v1685_v12  ;;  %v1698_v26 = vmul.f32 1.442695, %v1694_v13  ;;  %v1528_v27 = vmul.f32 %v1516_v22, %v3973_v21  ;;  %1582 = vmatpush.msrb.mxu2 %v1170_v20 }
 0x851   :  { %v2719_v29 = vpop.eup %2718  ;;  %v1520_v57 = vmul.f32 0.5, %v1519_v18  ;;  %v1389_v31 = vpop.xlane.xlu2 %1388  ;;  %1855 = vmatpush.msra.mxu1 %v1170_v20 }
 0x852   :  { %v1702_v36 = vadd.f32 %v2719_v29, %v2717_v17  ;;  %2720 = vpow2.f32 %v1689_v5  ;;  %v1392_v37 = vmul.f32 0.24253562, %v1389_v31  ;;  %v1534_v38 = vmul.f32 %v4036_v35, %v1528_v27  ;;  %1583 = vmatpush.msrb.mxu2 %v1169_v6 }
 0x853   :  { %v1521_v39 = vsub.f32 1.5, %v1520_v57  ;;  %2722 = vpow2.f32 %v1698_v26  ;;  %1856 = vmatpush.msra.mxu1 %v1169_v6  ;;  %v1163_v26 = vld [vmem:[#allocation5 + $0x98] sm:$0xff] }
 0x854   :  { %2724 = vrcp.f32 %v1702_v36  ;;  %v1683_v14 = vmax.f32 %v1380_v30, %v1392_v37  ;;  %v4053_v21 = vadd.f32 %v4042_v52, %v1534_v38  ;;  %1584 = vmatpush.msrb.mxu2 %v1168_v47  ;;  %v4072_v36 = vld [vmem:[%s4627_s10 + $0x1] ss:$0 sm:$0xff] }
 0x855   :  { %v1522_v19 = vmul.f32 %v2715_v43, %v1521_v39  ;;  %1857 = vmatpush.msra.mxu1 %v1168_v47 }
 0x856   :  { %v1686_v41 = vsub.f32 %v1380_v30, %v1683_v14  ;;  %v1695_v45 = vsub.f32 %v1392_v37, %v1683_v14  ;;  %1564 = vmatmul.f32.gmra.mxu1 %v4053_v21 }
 0x857   :  { %v1526_v48 = vsel %vm1525_vm15, %v2715_v43, %v1522_v19  ;;  %v1167_v43 = vld [vmem:[#allocation5 + $0xb8] sm:$0xff] }
 0x858   :  { %v2721_v55 = vpop.eup %2720  ;;  %v1691_v59 = vmul.f32 1.442695, %v1686_v41  ;;  %v1700_v60 = vmul.f32 1.442695, %v1695_v45  ;;  %v1529_v2 = vmul.f32 %v1526_v48, %v3979_v44  ;;  %1585 = vmatpush.msrb.mxu2 %v1167_v43  ;;  %1858 = vmatpush.msra.mxu1 %v1167_v43 }
 0x859   :  { %v2723_v50 = vpop.eup %2722 }
 0x85a   :  { %v2725_v46 = vpop.eup %2724  ;;  %v1703_v15 = vadd.f32 %v2723_v50, %v2721_v55  ;;  %2726 = vpow2.f32 %v1691_v59  ;;  %v1535_v54 = vmul.f32 %v4036_v35, %v1529_v2  ;;  %1586 = vmatpush.msrb.mxu2 %v1166_v58  ;;  %1859 = vmatpush.msra.mxu1 %v1166_v58 }
 0x85b   :  { %v1714_v1 = vmul.f32 %v2725_v46, %v2719_v29  ;;  %2728 = vpow2.f32 %v1700_v60  ;;  %v1708_v11 = vmul.f32 %v2725_v46, %v2717_v17  ;;  %v1164_v17 = vld [vmem:[#allocation5 + $0xa0] sm:$0xff] }
 0x85c   :  { %2730 = vrcp.f32 %v1703_v15  ;;  %v4060_v25 = vadd.f32 %v4042_v52, %v1535_v54 }
 0x85d   :  { %v1711_v44 = vmul.f32 %v1708_v11, %v3932_v3  ;;  %v1717_v9 = vmul.f32 %v1714_v1, %v3934_v8  ;;  %v1165_v8 = vld [vmem:[#allocation5 + $0xa8] sm:$0xff] }
 0x85e   :  { %1567 = vmatmul.f32.gmra.mxu1 %v4060_v25  ;;  %1587 = vmatpush.msrb.mxu2 %v1165_v8 }
 0x85f   :  { %v1720_v7 = vadd.f32 %v1717_v9, %v1711_v44  ;;  %1860 = vmatpush.msra.mxu1 %v1165_v8 }
 0x860   :  { %v2727_v53 = vpop.eup %2726  ;;  %1588 = vmatpush.msrb.mxu2 %v1164_v17 }
 0x861   :  { %v2729_v61 = vpop.eup %2728  ;;  %1739 = vmatmul.f32.vlgmr.msrb.gmra.mxu3 %v1720_v7  ;;  %1861 = vmatpush.msra.mxu1 %v1164_v17 }
 0x862   :  { %v2731_v12 = vpop.eup %2730  ;;  %v1704_v13 = vadd.f32 %v2729_v61, %v2727_v53  ;;  %1589 = vmatpush.msrb.mxu2 %v1163_v26 }
 0x863   :  { %v1709_v3 = vmul.f32 %v2731_v12, %v2721_v55  ;;  %v1715_v49 = vmul.f32 %v2731_v12, %v2723_v50  ;;  %1862 = vmatpush.msra.mxu1 %v1163_v26 }
 0x864   :  { %2732 = vrcp.f32 %v1704_v13 }
 0x865   :  { %v1712_v18 = vmul.f32 %v1709_v3, %v3938_v23  ;;  %v1718_v22 = vmul.f32 %v1715_v49, %v3940_v24  ;;  %v1162_v24 = vld [vmem:[#allocation5 + $0x90] sm:$0xff] }
 0x866   :  { %1590 = vmatpush.msrb.mxu2 %v1162_v24  ;;  %1863 = vmatpush.msra.mxu1 %v1162_v24  ;;  %v4119_v24 = vld [vmem:[%s4632_s15 + $0x168] sm:$0xff] }
 0x867   :  { %v1721_v5 = vadd.f32 %v1718_v22, %v1712_v18 }
 0x868   :  { %1591 = vmatpush.msrb.mxu2 %v1161_v32  ;;  %1864 = vmatpush.msra.mxu1 %v1161_v32  ;;  %v4124_v32 = vld [vmem:[%s4632_s15 + $0x170] sm:$0xff] }
 0x869   :  { %1742 = vmatmul.f32.gmra.mxu3 %v1721_v5 }
 0x86a   :  { %v2733_v27 = vpop.eup %2732  ;;  %1592 = vmatpush.msrb.mxu2 %v1160_v63  ;;  %1865 = vmatpush.msra.mxu1 %v1160_v63  ;;  %v4129_v63 = vld [vmem:[%s4632_s15 + $0x150] sm:$0xff] }
 0x86b   :  { %v1710_v29 = vmul.f32 %v2733_v27, %v2727_v53  ;;  %v1716_v57 = vmul.f32 %v2733_v27, %v2729_v61  ;;  %4671 = vst [vmem:[#allocation13_spill] sm:$0xff] %v4129_v63  ;;  %2050 = vmatpush.msra.mxu3 %v4124_v32 }
 0x86c   :  { %2024 = vmatpush.msra.mxu2 %v4119_v24 }
 0x86d   :  { %v1713_v30 = vmul.f32 %v1710_v29, %v3944_v33  ;;  %v1719_v23 = vmul.f32 %v1716_v57, %v3946_v34 }
 0x86e   :  { %2025 = vmatpush.msra.mxu2 %v4129_v63 }
 0x86f   :  { %v1722_v31 = vadd.f32 %v1719_v23, %v1713_v30 }
 0x871   :  { %1745 = vmatmul.f32.gmra.mxu3 %v1722_v31 }
 0x8cb   :  { %v1562_v37 = vpop.f32.mrf.mxu1 }
 0x8cc   :  { %v1563_v33 = vadd.f32 %v4072_v36, %v1562_v37  ;;  %v4136_v37 = vld [vmem:[%s4632_s15 + $0x158] sm:$0xff] }
 0x8cd   :  { %2051 = vmatpush.msra.mxu3 %v4136_v37 }
 0x8ce   :  { %v1571_v34 = vmax.f32 %v1563_v33, 0.0 }
 0x8d0   :  { %1593 = vmatmul.f32.vlgmr.msrb.gmra.mxu2 %v1571_v34 }
 0x8d3   :  { %v1565_v38 = vpop.f32.mrf.mxu1 }
 0x8d4   :  { %v1566_v39 = vadd.f32 %v4072_v36, %v1565_v38 }
 0x8d6   :  { %v1572_v40 = vmax.f32 %v1566_v39, 0.0 }
 0x8d8   :  { %1596 = vmatmul.f32.gmra.mxu2 %v1572_v40 }
 0x8db   :  { %v1568_v14 = vpop.f32.mrf.mxu1 }
 0x8dc   :  { %v1569_v19 = vadd.f32 %v4072_v36, %v1568_v14 }
 0x8de   :  { %v1573_v28 = vmax.f32 %v1569_v19, 0.0 }
 0x8e0   :  { %1599 = vmatmul.f32.gmra.mxu2 %v1573_v28 }
 0x8e4   :  { %v1740_v41 = vpop.f32.mrf.mxu3 }
 0x8e5   :  { %v1741_v45 = vadd.f32 %v3953_v56, %v1740_v41 }
 0x8e7   :  { %v1749_v48 = vadd.f32 %v1741_v45, %v3843_v4 }
 0x8e9   :  { %1752 = vadd.xlane.f32.xlu1 %v1749_v48 }
 0x8ec   :  { %v1743_v60 = vpop.f32.mrf.mxu3 }
 0x8ed   :  { %v1744_v50 = vadd.f32 %v3953_v56, %v1743_v60 }
 0x8ef   :  { %v1750_v15 = vadd.f32 %v1744_v50, %v3851_v16  ;;  %v4152_v50 = vld [vmem:[%s4632_s15 + $0x138] sm:$0xff] }
 0x8f0   :  { %4672 = vst [vmem:[#allocation14_spill] sm:$0xff] %v4152_v50  ;;  %2026 = vmatpush.msra.mxu2 %v4152_v50 }
 0x8f4   :  { %v1746_v54 = vpop.f32.mrf.mxu3 }
 0x8f5   :  { %v1747_v11 = vadd.f32 %v3953_v56, %v1746_v54  ;;  %v4181_v54 = vld [vmem:[%s4632_s15 + $0x110] sm:$0xff] }
 0x8f7   :  { %v1751_v7 = vadd.f32 %v1747_v11, %v3859_v62  ;;  %v4193_v11 = vld [vmem:[%s4632_s15 + $0xf8] sm:$0xff] }
 0x953   :  { %v1594_v55 = vpop.f32.mrf.mxu2 }
 0x954   :  { %v1595_v59 = vadd.f32 %v4082_v51, %v1594_v55 }
 0x956   :  { %v1603_v2 = vadd.f32 %v1595_v59, %v4046_v0 }
 0x958   :  { %1606 = vadd.xlane.f32.xlu0 %v1603_v2 }
 0x95b   :  { %v1597_v20 = vpop.f32.mrf.mxu2 }
 0x95c   :  { %v1598_v46 = vadd.f32 %v4082_v51, %v1597_v20  ;;  %v1753_v1 = vpop.xlane.xlu1 %1752  ;;  %v4157_v20 = vld [vmem:[%s4632_s15 + $0x140] sm:$0xff] }
 0x95d   :  { %v1758_v6 = vmul.f32 0.05882353, %v1753_v1  ;;  %2052 = vmatpush.msra.mxu3 %v4157_v20  ;;  %v4188_v1 = vld [vmem:[%s4632_s15 + $0xf0] sm:$0xff] }
 0x95e   :  { %v1604_v4 = vadd.f32 %v1598_v46, %v4053_v21  ;;  %v4164_v46 = vld [vmem:[%s4632_s15 + $0x120] sm:$0xff]  ;;  %4675 = vst [vmem:[#allocation17_spill] sm:$0xff] %v4188_v1 }
 0x95f   :  { %v1761_v9 = vsub.f32 %v1749_v48, %v1758_v6  ;;  %4673 = vst [vmem:[#allocation15_spill] sm:$0xff] %v4164_v46  ;;  %2027 = vmatpush.msra.mxu2 %v4164_v46  ;;  %v4200_v6 = vld [vmem:[%s4632_s15 + $0xd8] sm:$0xff] }
 0x960   :  { %1608 = vadd.xlane.f32.xlu2 %v1604_v4  ;;  %1754 = vadd.xlane.f32.xlu0 %v1750_v15  ;;  %4676 = vst [vmem:[#allocation18_spill] sm:$0xff] %v4200_v6 }
 0x961   :  { %v1764_v21 = vmul.f32 %v3394_v10, %v1761_v9  ;;  %v4217_v9 = vld [vmem:[%s4632_s15 + $0xc8] sm:$0xff] }
 0x963   :  { %v1600_v44 = vpop.f32.mrf.mxu2  ;;  %v1767_v16 = vmul.f32 %v1764_v21, %v1764_v21 }
 0x964   :  { %v1601_v0 = vadd.f32 %v4082_v51, %v1600_v44  ;;  %v4205_v44 = vld [vmem:[%s4632_s15 + $0xe0] sm:$0xff] }
 0x966   :  { %v1605_v47 = vadd.f32 %v1601_v0, %v4060_v25  ;;  %v4212_v0 = vld [vmem:[%s4632_s15 + $0xc0] sm:$0xff] }
 0x967   :  { %4677 = vst [vmem:[#allocation19_spill] sm:$0xff] %v4212_v0 }
 0x968   :  { %1610 = vadd.xlane.f32.xlu1 %v1605_v47  ;;  %1756 = vadd.xlane.f32.xlu2 %v1751_v7 }
 0x970   :  { %1770 = vadd.xlane.f32.xlu1 %v1767_v16  ;;  %v4241_v16 = vld [vmem:[%s4632_s15 + $0x98] sm:$0xff] }
 0x9cb   :  { %v1607_v43 = vpop.xlane.xlu0 %1606 }
 0x9cc   :  { %v1612_v53 = vmul.f32 0.05882353, %v1607_v43  ;;  %v4248_v43 = vld [vmem:[%s4632_s15 + $0x78] sm:$0xff] }
 0x9cd   :  { %4680 = vst [vmem:[#allocation22_spill] sm:$0xff] %v4248_v43 }
 0x9ce   :  { %v1615_v61 = vsub.f32 %v1603_v2, %v1612_v53  ;;  %v4253_v53 = vld [vmem:[%s4632_s15 + $0x80] sm:$0xff] }
 0x9d0   :  { %v4096_v56 = vmul.f32 %v3394_v10, %v1615_v61  ;;  %v4260_v61 = vld [vmem:[%s4632_s15 + $0x60] sm:$0xff] }
 0x9d1   :  { %4681 = vst [vmem:[#allocation23_spill] sm:$0xff] %v4260_v61 }
 0x9d2   :  { %v1621_v58 = vmul.f32 %v4096_v56, %v4096_v56 }
 0x9d3   :  { %v1609_v12 = vpop.xlane.xlu2 %1608  ;;  %v1755_v13 = vpop.xlane.xlu0 %1754 }
 0x9d4   :  { %v1613_v25 = vmul.f32 0.05882353, %v1609_v12  ;;  %v1759_v3 = vmul.f32 0.05882353, %v1755_v13  ;;  %1624 = vadd.xlane.f32.xlu0 %v1621_v58  ;;  %v4265_v58 = vld [vmem:[%s4632_s15 + $0x68] sm:$0xff]  ;;  %v4277_v13 = vld [vmem:[%s4632_s15 + $0x50] sm:$0xff] }
 0x9d5   :  { %v4272_v12 = vld [vmem:[%s4632_s15 + $0x48] sm:$0xff] }
 0x9d6   :  { %v1616_v62 = vsub.f32 %v1604_v4, %v1613_v25  ;;  %v1762_v49 = vsub.f32 %v1750_v15, %v1759_v3  ;;  %v4169_v4 = vld [vmem:[%s4632_s15 + $0x128] sm:$0xff]  ;;  %4682 = vst [vmem:[#allocation24_spill] sm:$0xff] %v4272_v12  ;;  %v4282_v25 = vld [vmem:[%s4632_s15 + $0x178] sm:$0xff]  ;;  %v4290_v3 = vld [vmem:[%s4632_s15 + $0x30] sm:$0xff] }
 0x9d7   :  { %2053 = vmatpush.msra.mxu3 %v4169_v4  ;;  %v4176_v15 = vld [vmem:[%s4632_s15 + $0x108] sm:$0xff]  ;;  %2076 = vmatpush.msrb.mxu0 %v4282_v25  ;;  %4683 = vst [vmem:[#allocation25_spill] sm:$0xff] %v4290_v3 }
 0x9d8   :  { %v4101_v8 = vmul.f32 %v3394_v10, %v1616_v62  ;;  %v4104_v18 = vmul.f32 %v3394_v10, %v1762_v49  ;;  %4674 = vst [vmem:[#allocation16_spill] sm:$0xff] %v4176_v15  ;;  %2028 = vmatpush.msra.mxu2 %v4176_v15  ;;  %v4295_v62 = vld [vmem:[%s4632_s15 + $0x38] sm:$0xff]  ;;  %v4300_v49 = vld [vmem:[%s4632_s15 + $0x160] sm:$0xff] }
 0x9d9   :  { %2054 = vmatpush.msra.mxu3 %v4181_v54  ;;  %2077 = vmatpush.msrb.mxu0 %v4300_v49 }
 0x9da   :  { %v1622_v22 = vmul.f32 %v4101_v8, %v4101_v8  ;;  %v1768_v17 = vmul.f32 %v4104_v18, %v4104_v18  ;;  %2029 = vmatpush.msra.mxu2 %v4188_v1  ;;  %v4431_v1 = vld [vmem:[%s4631_s14 + $0x1] ss:$0 sm:$0xff] }
 0x9db   :  { %v1611_v5 = vpop.xlane.xlu1 %1610  ;;  %v1757_v26 = vpop.xlane.xlu2 %1756  ;;  %2055 = vmatpush.msra.mxu3 %v4193_v11 }
 0x9dc   :  { %v1614_v27 = vmul.f32 0.05882353, %v1611_v5  ;;  %v1760_v29 = vmul.f32 0.05882353, %v1757_v26  ;;  %1626 = vadd.xlane.f32.xlu2 %v1622_v22  ;;  %1772 = vadd.xlane.f32.xlu0 %v1768_v17  ;;  %v4308_v22 = vld [vmem:[%s4632_s15 + $0x18] sm:$0xff]  ;;  %v4313_v17 = vld [vmem:[%s4632_s15 + $0x20] sm:$0xff] }
 0x9dd   :  { %2030 = vmatpush.msra.mxu2 %v4200_v6  ;;  %2056 = vmatpush.msra.mxu3 %v4205_v44  ;;  %4684 = vst [vmem:[#allocation26_spill] sm:$0xff] %v4308_v22  ;;  %v4318_v5 = vld [vmem:[%s4632_s15 + $0x148] sm:$0xff]  ;;  %v4326_v26 = vld [vmem:[%s4632_s15] sm:$0xff] }
 0x9de   :  { %v1617_v57 = vsub.f32 %v1605_v47, %v1614_v27  ;;  %v1763_v30 = vsub.f32 %v1751_v7, %v1760_v29  ;;  %v4224_v47 = vld [vmem:[%s4632_s15 + $0xa8] sm:$0xff]  ;;  %v4229_v7 = vld [vmem:[%s4632_s15 + $0xb0] sm:$0xff]  ;;  %2078 = vmatpush.msrb.mxu0 %v4318_v5  ;;  %4685 = vst [vmem:[#allocation27_spill] sm:$0xff] %v4326_v26 }
 0x9df   :  { %2031 = vmatpush.msra.mxu2 %v4212_v0  ;;  %2057 = vmatpush.msra.mxu3 %v4217_v9  ;;  %4678 = vst [vmem:[#allocation20_spill] sm:$0xff] %v4224_v47  ;;  %v4331_v27 = vld [vmem:[%s4632_s15 + $0x8] sm:$0xff]  ;;  %v4336_v29 = vld [vmem:[%s4632_s15 + $0x130] sm:$0xff] }
 0x9e0   :  { %v4111_v23 = vmul.f32 %v3394_v10, %v1617_v57  ;;  %v4114_v31 = vmul.f32 %v3394_v10, %v1763_v30  ;;  %2079 = vmatpush.msrb.mxu0 %v4336_v29  ;;  %v4344_v57 = vld [vmem:[%s4632_s15 + $0x118] sm:$0xff]  ;;  %v4387_v10 = vld [vmem:[%s4632_s15 + $0x70] sm:$0xff] }
 0x9e1   :  { %2032 = vmatpush.msra.mxu2 %v4224_v47  ;;  %2058 = vmatpush.msra.mxu3 %v4229_v7 }
 0x9e2   :  { %v1623_v33 = vmul.f32 %v4111_v23, %v4111_v23  ;;  %v1769_v34 = vmul.f32 %v4114_v31, %v4114_v31  ;;  %2080 = vmatpush.msrb.mxu0 %v4344_v57 }
 0x9e3   :  { %v1771_v38 = vpop.xlane.xlu1 %1770  ;;  %2059 = vmatpush.msra.mxu3 %v4241_v16 }
 0x9e4   :  { %v1776_v39 = vmul.f32 0.05882353, %v1771_v38  ;;  %1628 = vadd.xlane.f32.xlu1 %v1623_v33  ;;  %1774 = vadd.xlane.f32.xlu2 %v1769_v34  ;;  %v4350_v34 = vld [vmem:[%s4632_s15 + $0x100] sm:$0xff] }
 0x9e5   :  { %2060 = vmatpush.msra.mxu3 %v4253_v53  ;;  %2081 = vmatpush.msrb.mxu0 %v4350_v34 }
 0x9e6   :  { %v1779_v40 = vadd.f32 1e-05, %v1776_v39  ;;  %v4356_v39 = vld [vmem:[%s4632_s15 + $0xe8] sm:$0xff] }
 0x9e7   :  { %2061 = vmatpush.msra.mxu3 %v4265_v58  ;;  %2082 = vmatpush.msrb.mxu0 %v4356_v39 }
 0x9e8   :  { %2734 = vrsqrt.f32 %v1779_v40  ;;  %vm1788_vm2 = vweird.f32 %v1779_v40 }
 0x9e9   :  { %2062 = vmatpush.msra.mxu3 %v4277_v13 }
 0x9eb   :  { %2063 = vmatpush.msra.mxu3 %v4295_v62 }
 0x9ed   :  { %2064 = vmatpush.msra.mxu3 %v4313_v17 }
 0x9ee   :  { %v2735_v14 = vpop.eup %2734 }
 0x9ef   :  { %v1783_v19 = vmul.f32 %v2735_v14, %v1779_v40  ;;  %vm1789_vm1 = vweird.f32 %v2735_v14  ;;  %2065 = vmatpush.msra.mxu3 %v4331_v27  ;;  %v4362_v40 = vld [vmem:[%s4632_s15 + $0xd0] sm:$0xff] }
 0x9f0   :  { %vm1790_vm3 = vmor %vm1788_vm2, %vm1789_vm1  ;;  %2083 = vmatpush.msrb.mxu0 %v4362_v40 }
 0x9f1   :  { %v1784_v28 = vmul.f32 %v2735_v14, %v1783_v19 }
 0x9f3   :  { %v1785_v41 = vmul.f32 0.5, %v1784_v28 }
 0x9f5   :  { %v1786_v45 = vsub.f32 1.5, %v1785_v41  ;;  %v4373_v41 = vld [vmem:[%s4632_s15 + $0xa0] sm:$0xff] }
 0x9f7   :  { %v1787_v48 = vmul.f32 %v2735_v14, %v1786_v45 }
 0x9f9   :  { %v1791_v55 = vsel %vm1790_vm3, %v2735_v14, %v1787_v48  ;;  %v4367_v14 = vld [vmem:[%s4632_s15 + $0xb8] sm:$0xff] }
 0x9fa   :  { %v1812_v59 = vmul.f32 %v1791_v55, %v1764_v21  ;;  %v4236_v21 = vld [vmem:[%s4632_s15 + $0x90] sm:$0xff]  ;;  %2084 = vmatpush.msrb.mxu0 %v4367_v14  ;;  %v4379_v55 = vld [vmem:[%s4632_s15 + $0x88] sm:$0xff] }
 0x9fb   :  { %4679 = vst [vmem:[#allocation21_spill] sm:$0xff] %v4236_v21  ;;  %2033 = vmatpush.msra.mxu2 %v4236_v21 }
 0x9fc   :  { %v1815_v60 = vmul.f32 %v4036_v35, %v1812_v59  ;;  %2085 = vmatpush.msrb.mxu0 %v4373_v41 }
 0x9fd   :  { %2034 = vmatpush.msra.mxu2 %v4248_v43 }
 0x9fe   :  { %v4146_v2 = vadd.f32 %v4042_v52, %v1815_v60  ;;  %2086 = vmatpush.msrb.mxu0 %v4379_v55 }
 0x9ff   :  { %2035 = vmatpush.msra.mxu2 %v4260_v61  ;;  %v4406_v61 = vld [vmem:[%s4632_s15 + $0x28] sm:$0xff] }
 0xa00   :  { %1837 = vmatmul.f32.vlgmr.msra.gmra.mxu0 %v4146_v2 }
 0xa01   :  { %2036 = vmatpush.msra.mxu2 %v4272_v12  ;;  %2087 = vmatpush.msrb.mxu0 %v4387_v10 }
 0xa03   :  { %2037 = vmatpush.msra.mxu2 %v4290_v3 }
 0xa05   :  { %2038 = vmatpush.msra.mxu2 %v4308_v22  ;;  %v4400_v22 = vld [vmem:[%s4632_s15 + $0x40] sm:$0xff] }
 0xa07   :  { %2039 = vmatpush.msra.mxu2 %v4326_v26 }
 0xa47   :  { %v1625_v30 = vpop.xlane.xlu0 %1624 }
 0xa48   :  { %v1630_v33 = vmul.f32 0.05882353, %v1625_v30 }
 0xa4a   :  { %v1633_v38 = vadd.f32 1e-05, %v1630_v33 }
 0xa4c   :  { %2736 = vrsqrt.f32 %v1633_v38  ;;  %vm1642_vm5 = vweird.f32 %v1633_v38 }
 0xa4f   :  { %v1627_v19 = vpop.xlane.xlu2 %1626  ;;  %v1773_v28 = vpop.xlane.xlu0 %1772 }
 0xa50   :  { %v1631_v45 = vmul.f32 0.05882353, %v1627_v19  ;;  %v1777_v48 = vmul.f32 0.05882353, %v1773_v28  ;;  %v4394_v28 = vld [vmem:[%s4632_s15 + $0x58] sm:$0xff] }
 0xa51   :  { %2088 = vmatpush.msrb.mxu0 %v4394_v28 }
 0xa52   :  { %v2737_v59 = vpop.eup %2736  ;;  %v1634_v60 = vadd.f32 1e-05, %v1631_v45  ;;  %v4381_v30 = vadd.f32 1e-05, %v1777_v48 }
 0xa53   :  { %v1637_v33 = vmul.f32 %v2737_v59, %v1633_v38  ;;  %vm1643_vm4 = vweird.f32 %v2737_v59  ;;  %2089 = vmatpush.msrb.mxu0 %v4400_v22 }
 0xa54   :  { %2738 = vrsqrt.f32 %v1634_v60  ;;  %vm1644_vm6 = vmor %vm1642_vm5, %vm1643_vm4  ;;  %vm1652_vm9 = vweird.f32 %v1634_v60  ;;  %vm1798_vm11 = vweird.f32 %v4381_v30  ;;  %vm2134_vm4 = vcmask 195584  }
 0xa55   :  { %v1638_v19 = vmul.f32 %v2737_v59, %v1637_v33  ;;  %2740 = vrsqrt.f32 %v4381_v30  ;;  %2090 = vmatpush.msrb.mxu0 %v4406_v61 }
 0xa57   :  { %v1639_v45 = vmul.f32 0.5, %v1638_v19  ;;  %v1629_v48 = vpop.xlane.xlu1 %1628  ;;  %v1775_v26 = vpop.xlane.xlu2 %1774 }
 0xa58   :  { %v1632_v3 = vmul.f32 0.05882353, %v1629_v48  ;;  %v1778_v12 = vmul.f32 0.05882353, %v1775_v26 }
 0xa59   :  { %v1640_v33 = vsub.f32 1.5, %v1639_v45  ;;  %v4416_v45 = vld [vmem:[%s4632_s15 + $0x10] sm:$0xff] }
 0xa5a   :  { %v2739_v43 = vpop.eup %2738  ;;  %v4408_v19 = vadd.f32 1e-05, %v1632_v3  ;;  %v4410_v21 = vadd.f32 1e-05, %v1778_v12  ;;  %v4423_v12 = vld [vmem:[%s4630_s13 + $0x1] ss:$0 sm:$0xff]  ;;  %2091 = vmatpush.msrb.mxu0 %v4416_v45 }
 0xa5b   :  { %v2741_v47 = vpop.eup %2740  ;;  %v1641_v0 = vmul.f32 %v2737_v59, %v1640_v33  ;;  %v1647_v26 = vmul.f32 %v2739_v43, %v1634_v60  ;;  %vm1653_vm7 = vweird.f32 %v2739_v43 }
 0xa5c   :  { %v1793_v48 = vmul.f32 %v2741_v47, %v4381_v30  ;;  %2742 = vrsqrt.f32 %v4408_v19  ;;  %2309 = vmatpush.msra.mxu0 %v4282_v25  ;;  %vm1799_vm8 = vweird.f32 %v2741_v47  ;;  %vm1654_vm10 = vmor %vm1652_vm9, %vm1653_vm7  ;;  %vm1662_vm15 = vweird.f32 %v4408_v19 }
 0xa5d   :  { %v1645_v3 = vsel %vm1644_vm6, %v2737_v59, %v1641_v0  ;;  %v1648_v38 = vmul.f32 %v2739_v43, %v1647_v26  ;;  %2744 = vrsqrt.f32 %v4410_v21  ;;  %vm1800_vm12 = vmor %vm1798_vm11, %vm1799_vm8  ;;  %vm1808_vm2 = vweird.f32 %v4410_v21 }
 0xa5e   :  { %v1666_v33 = vmul.f32 %v1645_v3, %v4096_v56  ;;  %v1794_v6 = vmul.f32 %v2741_v47, %v1793_v48  ;;  %2310 = vmatpush.msra.mxu0 %v4300_v49 }
 0xa5f   :  { %v1649_v15 = vmul.f32 0.5, %v1648_v38 }
 0xa60   :  { %v1795_v46 = vmul.f32 0.5, %v1794_v6  ;;  %v1672_v50 = vmul.f32 %v4423_v12, %v1666_v33  ;;  %2311 = vmatpush.msra.mxu0 %v4318_v5 }
 0xa61   :  { %v1650_v0 = vsub.f32 1.5, %v1649_v15 }
 0xa62   :  { %v2743_v59 = vpop.eup %2742  ;;  %v1796_v56 = vsub.f32 1.5, %v1795_v46  ;;  %v1678_v26 = vadd.f32 %v4431_v1, %v1672_v50  ;;  %2312 = vmatpush.msra.mxu0 %v4336_v29 }
 0xa63   :  { %v2745_v48 = vpop.eup %2744  ;;  %v1651_v3 = vmul.f32 %v2739_v43, %v1650_v0  ;;  %v1657_v63 = vmul.f32 %v2743_v59, %v4408_v19  ;;  %vm1663_vm13 = vweird.f32 %v2743_v59 }
 0xa64   :  { %v1797_v6 = vmul.f32 %v2741_v47, %v1796_v56  ;;  %v1803_v15 = vmul.f32 %v2745_v48, %v4410_v21  ;;  %2040 = vmatmul.f32.vlgmr.msra.gmra.mxu2 %v1678_v26  ;;  %2066 = vmatmul.f32.vlgmr.msra.gmra.mxu3 %v1678_v26  ;;  %vm1809_vm14 = vweird.f32 %v2745_v48  ;;  %vm1664_vm1 = vmor %vm1662_vm15, %vm1663_vm13 }
 0xa65   :  { %v1655_v25 = vsel %vm1654_vm10, %v2739_v43, %v1651_v3  ;;  %v1658_v46 = vmul.f32 %v2743_v59, %v1657_v63  ;;  %2313 = vmatpush.msra.mxu0 %v4344_v57  ;;  %vm1810_vm3 = vmor %vm1808_vm2, %vm1809_vm14 }
 0xa66   :  { %v1804_v50 = vmul.f32 %v2745_v48, %v1803_v15  ;;  %v1801_v49 = vsel %vm1800_vm12, %v2741_v47, %v1797_v6  ;;  %v1667_v60 = vmul.f32 %v1655_v25, %v4101_v8 }
 0xa67   :  { %v1659_v38 = vmul.f32 0.5, %v1658_v46  ;;  %v1813_v5 = vmul.f32 %v1801_v49, %v4104_v18  ;;  %2314 = vmatpush.msra.mxu0 %v4350_v34 }
 0xa68   :  { %v1805_v33 = vmul.f32 0.5, %v1804_v50  ;;  %v1673_v30 = vmul.f32 %v4423_v12, %v1667_v60 }
 0xa69   :  { %v1660_v0 = vsub.f32 1.5, %v1659_v38  ;;  %v1816_v43 = vmul.f32 %v4036_v35, %v1813_v5  ;;  %2315 = vmatpush.msra.mxu0 %v4356_v39 }
 0xa6a   :  { %v1806_v63 = vsub.f32 1.5, %v1805_v33  ;;  %v1679_v47 = vadd.f32 %v4431_v1, %v1673_v30 }
 0xa6b   :  { %v1661_v29 = vmul.f32 %v2743_v59, %v1660_v0  ;;  %v4452_v8 = vadd.f32 %v4042_v52, %v1816_v43  ;;  %2316 = vmatpush.msra.mxu0 %v4362_v40 }
 0xa6c   :  { %v1807_v18 = vmul.f32 %v2745_v48, %v1806_v63  ;;  %2043 = vmatmul.f32.gmra.mxu2 %v1679_v47  ;;  %2069 = vmatmul.f32.gmra.mxu3 %v1679_v47 }
 0xa6d   :  { %v1665_v57 = vsel %vm1664_vm1, %v2743_v59, %v1661_v29  ;;  %1840 = vmatmul.f32.gmra.mxu0 %v4452_v8 }
 0xa6e   :  { %v1811_v34 = vsel %vm1810_vm3, %v2745_v48, %v1807_v18  ;;  %v1668_v56 = vmul.f32 %v1665_v57, %v4111_v23  ;;  %2317 = vmatpush.msra.mxu0 %v4367_v14  ;;  %v1999_v57 = vld [vmem:[%s4634_s17 + $0x10] sm:$0xff] }
 0xa6f   :  { %v1814_v19 = vmul.f32 %v1811_v34, %v4114_v31  ;;  %2190 = vmatpush.msrb.mxu2 %v1999_v57 }
 0xa70   :  { %v1674_v3 = vmul.f32 %v4423_v12, %v1668_v56  ;;  %2318 = vmatpush.msra.mxu0 %v4373_v41 }
 0xa71   :  { %v1817_v39 = vmul.f32 %v4036_v35, %v1814_v19 }
 0xa72   :  { %v1680_v21 = vadd.f32 %v4431_v1, %v1674_v3  ;;  %2319 = vmatpush.msra.mxu0 %v4379_v55  ;;  %v1996_v55 = vld [vmem:[%s4633_s16] sm:$0x7] }
 0xa73   :  { %v4466_v59 = vadd.f32 %v4042_v52, %v1817_v39  ;;  %v4485_v46 = vperm.slane %v1996_v55, 0  ;;  %v4489_v38 = vperm.slane %v1996_v55, 2 }
 0xa74   :  { %2046 = vmatmul.f32.gmra.mxu2 %v1680_v21  ;;  %2072 = vmatmul.f32.gmra.mxu3 %v1680_v21 }
 0xa75   :  { %1843 = vmatmul.f32.gmra.mxu0 %v4466_v59 }
 0xa76   :  { %2320 = vmatpush.msra.mxu0 %v4387_v10 }
 0xa78   :  { %2321 = vmatpush.msra.mxu0 %v4394_v28 }
 0xa7a   :  { %2322 = vmatpush.msra.mxu0 %v4400_v22 }
 0xa7c   :  { %2323 = vmatpush.msra.mxu0 %v4406_v61 }
 0xa7d   :  { %2092 = vmatmul.f32.vlgmr.msrb.gmra.mxu0 %v1678_v26  ;;  %v1838_v35 = vpop.f32.mrf.mxu0  ;;  %v4481_v26 = vperm.slane %v1996_v55, 1 }
 0xa7e   :  { %v1839_v23 = vadd.f32 %v4072_v36, %v1838_v35  ;;  %2324 = vmatpush.msra.mxu0 %v4416_v45 }
 0xa80   :  { %v1847_v52 = vmax.f32 %v1839_v23, 0.0 }
 0xa82   :  { %1866 = vmatmul.f32.vlgmr.msra.gmra.mxu1 %v1847_v52 }
 0xa85   :  { %2095 = vmatmul.f32.gmra.mxu0 %v1679_v47 }
 0xa8d   :  { %2098 = vmatmul.f32.gmra.mxu0 %v1680_v21 }
 0xae7   :  { %v2067_v31 = vpop.f32.mrf.mxu3  ;;  %v2041_v15 = vpop.f32.mrf.mxu2 }
 0xae8   :  { %v2068_v50 = vadd.f32 %v2067_v31, %v4481_v26 }
 0xaea   :  { %v1841_v40 = vpop.f32.mrf.mxu0 }
 0xaeb   :  { %v1842_v10 = vadd.f32 %v4072_v36, %v1841_v40 }
 0xaed   :  { %v1848_v14 = vmax.f32 %v1842_v10, 0.0 }
 0xaef   :  { %1869 = vmatmul.f32.gmra.mxu1 %v1848_v14  ;;  %v2070_v41 = vpop.f32.mrf.mxu3  ;;  %v2044_v60 = vpop.f32.mrf.mxu2 }
 0xaf0   :  { %v2071_v25 = vadd.f32 %v2070_v41, %v4481_v26  ;;  %v2045_v33 = vadd.f32 %v2044_v60, %v4485_v46  ;;  %v4696_v60 = vld [vmem:[#allocation23_spill] sm:$0xff] }
 0xaf2   :  { %v1844_v22 = vpop.f32.mrf.mxu0 }
 0xaf3   :  { %v1845_v61 = vadd.f32 %v4072_v36, %v1844_v22  ;;  %v2042_v36 = vadd.f32 %v2041_v15, %v4485_v46  ;;  %v4691_v15 = vld [vmem:[#allocation18_spill] sm:$0xff] }
 0xaf5   :  { %v1849_v28 = vmax.f32 %v1845_v61, 0.0 }
 0xaf7   :  { %1872 = vmatmul.f32.gmra.mxu1 %v1849_v28  ;;  %v2073_v45 = vpop.f32.mrf.mxu3  ;;  %v2047_v63 = vpop.f32.mrf.mxu2 }
 0xaf8   :  { %v2074_v48 = vadd.f32 %v2073_v45, %v4481_v26  ;;  %v2048_v47 = vadd.f32 %v2047_v63, %v4485_v46  ;;  %v1997_v45 = vld [vmem:[%s4634_s17] sm:$0xff] }
 0xafa   :  { %v2093_v6 = vpop.f32.mrf.mxu0  ;;  %2115 = vmatpush.xpose.msrb.mxu1 %v2074_v48  ;;  %v4687_v48 = vld [vmem:[#allocation14_spill] sm:$0xff] }
 0xafb   :  { %v2094_v43 = vadd.f32 %v2093_v6, %v4489_v38  ;;  %v4690_v6 = vld [vmem:[#allocation17_spill] sm:$0xff] }
 0xafe   :  { %2116 = vmatpush.xpose.msrb.mxu1 %v2071_v25  ;;  %v4692_v25 = vld [vmem:[#allocation19_spill] sm:$0xff] }
 0xb02   :  { %v2096_v49 = vpop.f32.mrf.mxu0  ;;  %2117 = vmatpush.xpose.msrb.mxu1 %v2068_v50  ;;  %v4693_v50 = vld [vmem:[#allocation20_spill] sm:$0xff] }
 0xb03   :  { %v2097_v0 = vadd.f32 %v2096_v49, %v4489_v38  ;;  %v4694_v49 = vld [vmem:[#allocation21_spill] sm:$0xff] }
 0xb05   :  { %2118 = vmatmul.f32.vlgmr.msrb.gmra.mxu1 %v2042_v36 }
 0xb0a   :  { %v2099_v5 = vpop.f32.mrf.mxu0 }
 0xb0b   :  { %v2100_v30 = vadd.f32 %v2099_v5, %v4489_v38  ;;  %v4697_v5 = vld [vmem:[#allocation24_spill] sm:$0xff] }
 0xb0d   :  { %2225 = vmatpush.msrb.mxu3 %v2100_v30  ;;  %2121 = vmatmul.f32.gmra.mxu1 %v2045_v33  ;;  %v4698_v33 = vld [vmem:[#allocation25_spill] sm:$0xff] }
 0xb0f   :  { %2226 = vmatpush.msrb.mxu3 %v2097_v0 }
 0xb11   :  { %2227 = vmatpush.msrb.mxu3 %v2094_v43 }
 0xb13   :  { %2283 = vmatpush.msra.mxu3 %v4124_v32  ;;  %v1867_v32 = vpop.f32.mrf.mxu1 }
 0xb14   :  { %v1868_v21 = vadd.f32 %v4082_v51, %v1867_v32 }
 0xb15   :  { %2284 = vmatpush.msra.mxu3 %v4136_v37  ;;  %2124 = vmatmul.f32.gmra.mxu1 %v2048_v47  ;;  %v4699_v47 = vld [vmem:[#allocation26_spill] sm:$0xff] }
 0xb16   :  { %v1876_v40 = vadd.f32 %v1868_v21, %v4146_v2  ;;  %v1998_v2 = vld [vmem:[%s4634_s17 + $0x8] sm:$0xff] }
 0xb17   :  { %2285 = vmatpush.msra.mxu3 %v4157_v20  ;;  %2191 = vmatpush.msrb.mxu2 %v1998_v2 }
 0xb19   :  { %2286 = vmatpush.msra.mxu3 %v4169_v4  ;;  %2192 = vmatpush.msrb.mxu2 %v1997_v45 }
 0xb1b   :  { %2287 = vmatpush.msra.mxu3 %v4181_v54  ;;  %2257 = vmatpush.msra.mxu2 %v4119_v24  ;;  %v4695_v24 = vld [vmem:[#allocation22_spill] sm:$0xff] }
 0xb1d   :  { %2288 = vmatpush.msra.mxu3 %v4193_v11 }
 0xb1f   :  { %2289 = vmatpush.msra.mxu3 %v4205_v44 }
 0xb21   :  { %2290 = vmatpush.msra.mxu3 %v4217_v9 }
 0xb23   :  { %2291 = vmatpush.msra.mxu3 %v4229_v7 }
 0xb25   :  { %2292 = vmatpush.msra.mxu3 %v4241_v16 }
 0xb27   :  { %2293 = vmatpush.msra.mxu3 %v4253_v53 }
 0xb29   :  { %2294 = vmatpush.msra.mxu3 %v4265_v58 }
 0xb2b   :  { %2295 = vmatpush.msra.mxu3 %v4277_v13 }
 0xb2d   :  { %2296 = vmatpush.msra.mxu3 %v4295_v62 }
 0xb2f   :  { %2297 = vmatpush.msra.mxu3 %v4313_v17 }
 0xb31   :  { %2298 = vmatpush.msra.mxu3 %v4331_v27 }
 0xb6c   :  { %v1870_v37 = vpop.f32.mrf.mxu1 }
 0xb6d   :  { %v1871_v14 = vadd.f32 %v4082_v51, %v1870_v37 }
 0xb6f   :  { %v1877_v22 = vadd.f32 %v1871_v14, %v4452_v8  ;;  %v4686_v8 = vld [vmem:[#allocation13_spill] sm:$0xff] }
 0xb70   :  { %2258 = vmatpush.msra.mxu2 %v4686_v8 }
 0xb72   :  { %2259 = vmatpush.msra.mxu2 %v4687_v48 }
 0xb74   :  { %v1873_v20 = vpop.f32.mrf.mxu1 }
 0xb75   :  { %v1874_v61 = vadd.f32 %v4082_v51, %v1873_v20  ;;  %v4688_v51 = vld [vmem:[#allocation15_spill] sm:$0xff] }
 0xb76   :  { %2260 = vmatpush.msra.mxu2 %v4688_v51  ;;  %v4700_v20 = vld [vmem:[#allocation27_spill] sm:$0xff] }
 0xb77   :  { %v1878_v28 = vadd.f32 %v1874_v61, %v4466_v59  ;;  %v4689_v59 = vld [vmem:[#allocation16_spill] sm:$0xff] }
 0xb78   :  { %2261 = vmatpush.msra.mxu2 %v4689_v59  ;;  %v2013_v59 = vld [vmem:[#allocation7 + $0x68] sm:$0xff] }
 0xb7a   :  { %2262 = vmatpush.msra.mxu2 %v4690_v6 }
 0xb7c   :  { %2263 = vmatpush.msra.mxu2 %v4691_v15 }
 0xb7e   :  { %2264 = vmatpush.msra.mxu2 %v4692_v25  ;;  %v2012_v25 = vld [vmem:[#allocation7 + $0x60] sm:$0xff] }
 0xb80   :  { %2265 = vmatpush.msra.mxu2 %v4693_v50 }
 0xb82   :  { %v2119_v4 = vpop.f32.mrf.mxu1  ;;  %2266 = vmatpush.msra.mxu2 %v4694_v49 }
 0xb83   :  { %v2128_v54 = vmul.f32 0.24253562, %v2119_v4  ;;  %v4701_v4 = vld [vmem:[#allocation12_spill] sm:$0xff] }
 0xb84   :  { %2267 = vmatpush.msra.mxu2 %v4695_v24 }
 0xb85   :  { %v2131_v11 = vsel %vm115_vm0, %v2128_v54, -1e+30 }
 0xb86   :  { %v2135_v44 = vsel %vm2134_vm4, %v2131_v11, -inf  ;;  %2268 = vmatpush.msra.mxu2 %v4696_v60 }
 0xb87   :  { %2136 = vmax.xlane.f32.xlu0 %v2135_v44 }
 0xb88   :  { %2269 = vmatpush.msra.mxu2 %v4697_v5 }
 0xb8a   :  { %v2122_v9 = vpop.f32.mrf.mxu1  ;;  %2270 = vmatpush.msra.mxu2 %v4698_v33 }
 0xb8b   :  { %v2129_v7 = vmul.f32 0.24253562, %v2122_v9 }
 0xb8c   :  { %2271 = vmatpush.msra.mxu2 %v4699_v47  ;;  %v2009_v47 = vld [vmem:[#allocation7 + $0x48] sm:$0xff] }
 0xb8d   :  { %v2132_v16 = vsel %vm115_vm0, %v2129_v7, -1e+30 }
 0xb8e   :  { %v2138_v53 = vsel %vm2134_vm4, %v2132_v16, -inf  ;;  %2272 = vmatpush.msra.mxu2 %v4700_v20 }
 0xb8f   :  { %2139 = vmax.xlane.f32.xlu1 %v2138_v53 }
 0xb92   :  { %v2125_v58 = vpop.f32.mrf.mxu1 }
 0xb93   :  { %v2130_v13 = vmul.f32 0.24253562, %v2125_v58 }
 0xb95   :  { %v2133_v62 = vsel %vm115_vm0, %v2130_v13, -1e+30 }
 0xb96   :  { %v2141_v17 = vsel %vm2134_vm4, %v2133_v62, -inf }
 0xb97   :  { %2142 = vmax.xlane.f32.xlu2 %v2141_v17 }
 0xbfa   :  { %v2137_v27 = vpop.xlane.xlu0 %2136 }
 0xbfb   :  { %v2144_v29 = vsub.f32 %v2131_v11, %v2137_v27 }
 0xbfd   :  { %v2147_v18 = vmul.f32 1.442695, %v2144_v29 }
 0xbff   :  { %2746 = vpow2.f32 %v2147_v18 }
 0xc02   :  { %v2140_v34 = vpop.xlane.xlu1 %2139 }
 0xc03   :  { %v2145_v56 = vsub.f32 %v2132_v16, %v2140_v34 }
 0xc05   :  { %v2747_v19 = vpop.eup %2746  ;;  %v2149_v3 = vmul.f32 1.442695, %v2145_v56 }
 0xc06   :  { %v2153_v39 = vsel %vm2134_vm4, %v2747_v19, 0.0 }
 0xc07   :  { %2748 = vpow2.f32 %v2149_v3  ;;  %2154 = vadd.xlane.f32.xlu0 %v2153_v39 }
 0xc0a   :  { %v2143_v35 = vpop.xlane.xlu2 %2142 }
 0xc0b   :  { %v2146_v23 = vsub.f32 %v2133_v62, %v2143_v35 }
 0xc0d   :  { %v2749_v52 = vpop.eup %2748  ;;  %v2151_v31 = vmul.f32 1.442695, %v2146_v23 }
 0xc0e   :  { %v2156_v10 = vsel %vm2134_vm4, %v2749_v52, 0.0 }
 0xc0f   :  { %2750 = vpow2.f32 %v2151_v31  ;;  %1879 = vadd.xlane.f32.xlu0 %v1876_v40  ;;  %2157 = vadd.xlane.f32.xlu1 %v2156_v10 }
 0xc15   :  { %v2751_v41 = vpop.eup %2750 }
 0xc16   :  { %v2159_v55 = vsel %vm2134_vm4, %v2751_v41, 0.0 }
 0xc17   :  { %2160 = vadd.xlane.f32.xlu2 %v2159_v55  ;;  %1881 = vadd.xlane.f32.xlu1 %v1877_v22 }
 0xc1f   :  { %1883 = vadd.xlane.f32.xlu2 %v1878_v28 }
 0xc7a   :  { %v2155_v36 = vpop.xlane.xlu0 %2154 }
 0xc7b   :  { %2752 = vrcp.f32 %v2155_v36  ;;  %v2011_v36 = vld [vmem:[#allocation7 + $0x58] sm:$0xff] }
 0xc81   :  { %v2753_v30 = vpop.eup %2752 }
 0xc82   :  { %v2165_v0 = vmul.f32 %v2753_v30, %v2747_v19  ;;  %v1880_v43 = vpop.xlane.xlu0 %1879  ;;  %v2158_v63 = vpop.xlane.xlu1 %2157 }
 0xc83   :  { %v1885_v32 = vmul.f32 0.05882353, %v1880_v43  ;;  %2754 = vrcp.f32 %v2158_v63 }
 0xc84   :  { %2599 = vmatmul.msk.f32.vlgmr.msrb.gmra.mxu2 %vm2134_vm4, %v2165_v0  ;;  %v2010_v0 = vld [vmem:[#allocation7 + $0x50] sm:$0xff] }
 0xc85   :  { %v1888_v37 = vsub.f32 %v1876_v40, %v1885_v32  ;;  %2422 = vmatpush.msrb.mxu2 %v1999_v57 }
 0xc87   :  { %v1891_v54 = vmul.f32 %v4701_v4, %v1888_v37  ;;  %2423 = vmatpush.msrb.mxu2 %v1998_v2  ;;  %v2014_v2 = vld [vmem:[#allocation7 + $0x70] sm:$0xff] }
 0xc89   :  { %v2755_v11 = vpop.eup %2754  ;;  %v1894_v44 = vmul.f32 %v1891_v54, %v1891_v54  ;;  %2424 = vmatpush.msrb.mxu2 %v1997_v45 }
 0xc8a   :  { %v2161_v9 = vpop.xlane.xlu2 %2160  ;;  %v1882_v7 = vpop.xlane.xlu1 %1881  ;;  %v2166_v16 = vmul.f32 %v2755_v11, %v2749_v52 }
 0xc8b   :  { %2756 = vrcp.f32 %v2161_v9  ;;  %v1886_v53 = vmul.f32 0.05882353, %v1882_v7  ;;  %1897 = vadd.xlane.f32.xlu0 %v1894_v44  ;;  %v2007_v44 = vld [vmem:[#allocation7 + $0x38] sm:$0xff] }
 0xc8c   :  { %2600 = vmatmul.msk.f32.gmra.mxu2 %vm2134_vm4, %v2166_v16  ;;  %v2006_v16 = vld [vmem:[#allocation7 + $0x30] sm:$0xff] }
 0xc8d   :  { %v1889_v58 = vsub.f32 %v1877_v22, %v1886_v53 }
 0xc8f   :  { %v4559_v13 = vmul.f32 %v4701_v4, %v1889_v58  ;;  %v2005_v58 = vld [vmem:[#allocation7 + $0x28] sm:$0xff] }
 0xc91   :  { %v2757_v62 = vpop.eup %2756  ;;  %v1895_v17 = vmul.f32 %v4559_v13, %v4559_v13 }
 0xc92   :  { %v1884_v27 = vpop.xlane.xlu2 %1883  ;;  %v2167_v29 = vmul.f32 %v2757_v62, %v2751_v41 }
 0xc93   :  { %v1887_v18 = vmul.f32 0.05882353, %v1884_v27  ;;  %1899 = vadd.xlane.f32.xlu1 %v1895_v17  ;;  %v2004_v17 = vld [vmem:[#allocation7 + $0x20] sm:$0xff] }
 0xc94   :  { %2601 = vmatmul.msk.f32.gmra.mxu2 %vm2134_vm4, %v2167_v29  ;;  %v2003_v29 = vld [vmem:[#allocation7 + $0x18] sm:$0xff] }
 0xc95   :  { %v1890_v57 = vsub.f32 %v1878_v28, %v1887_v18  ;;  %v2015_v28 = vld [vmem:[#allocation7 + $0x78] sm:$0xff] }
 0xc96   :  { %2236 = vmatpush.msra.mxu1 %v2015_v28  ;;  %2468 = vmatpush.msrb.mxu0 %v2015_v28 }
 0xc97   :  { %v4565_v34 = vmul.f32 %v4701_v4, %v1890_v57  ;;  %v2008_v4 = vld [vmem:[#allocation7 + $0x40] sm:$0xff]  ;;  %v2002_v57 = vld [vmem:[#allocation7 + $0x10] sm:$0xff] }
 0xc98   :  { %2237 = vmatpush.msra.mxu1 %v2014_v2  ;;  %2469 = vmatpush.msrb.mxu0 %v2014_v2 }
 0xc99   :  { %v1896_v56 = vmul.f32 %v4565_v34, %v4565_v34 }
 0xc9a   :  { %2238 = vmatpush.msra.mxu1 %v2013_v59  ;;  %2470 = vmatpush.msrb.mxu0 %v2013_v59 }
 0xc9b   :  { %1901 = vadd.xlane.f32.xlu2 %v1896_v56  ;;  %v2001_v56 = vld [vmem:[#allocation7 + $0x8] sm:$0xff] }
 0xc9c   :  { %2239 = vmatpush.msra.mxu1 %v2012_v25  ;;  %2471 = vmatpush.msrb.mxu0 %v2012_v25 }
 0xc9e   :  { %2240 = vmatpush.msra.mxu1 %v2011_v36  ;;  %2472 = vmatpush.msrb.mxu0 %v2011_v36 }
 0xca0   :  { %2241 = vmatpush.msra.mxu1 %v2010_v0  ;;  %2473 = vmatpush.msrb.mxu0 %v2010_v0 }
 0xca2   :  { %2242 = vmatpush.msra.mxu1 %v2009_v47  ;;  %2474 = vmatpush.msrb.mxu0 %v2009_v47 }
 0xca4   :  { %2243 = vmatpush.msra.mxu1 %v2008_v4  ;;  %2475 = vmatpush.msrb.mxu0 %v2008_v4 }
 0xca6   :  { %2244 = vmatpush.msra.mxu1 %v2007_v44  ;;  %2476 = vmatpush.msrb.mxu0 %v2007_v44 }
 0xca8   :  { %2245 = vmatpush.msra.mxu1 %v2006_v16  ;;  %2477 = vmatpush.msrb.mxu0 %v2006_v16 }
 0xcaa   :  { %2246 = vmatpush.msra.mxu1 %v2005_v58  ;;  %2478 = vmatpush.msrb.mxu0 %v2005_v58 }
 0xcac   :  { %2247 = vmatpush.msra.mxu1 %v2004_v17  ;;  %2479 = vmatpush.msrb.mxu0 %v2004_v17 }
 0xcae   :  { %2248 = vmatpush.msra.mxu1 %v2003_v29  ;;  %2480 = vmatpush.msrb.mxu0 %v2003_v29 }
 0xcb0   :  { %2249 = vmatpush.msra.mxu1 %v2002_v57  ;;  %2481 = vmatpush.msrb.mxu0 %v2002_v57 }
 0xcb2   :  { %2250 = vmatpush.msra.mxu1 %v2001_v56  ;;  %2482 = vmatpush.msrb.mxu0 %v2001_v56 }
 0xcfe   :  { %v1898_v19 = vpop.xlane.xlu0 %1897 }
 0xcff   :  { %v1903_v3 = vmul.f32 0.05882353, %v1898_v19 }
 0xd01   :  { %v1906_v39 = vadd.f32 1e-05, %v1903_v3 }
 0xd03   :  { %2758 = vrsqrt.f32 %v1906_v39  ;;  %vm1915_vm6 = vweird.f32 %v1906_v39 }
 0xd06   :  { %v1900_v21 = vpop.xlane.xlu1 %1899 }
 0xd07   :  { %v1904_v35 = vmul.f32 0.05882353, %v1900_v21  ;;  %v2194_v23 = vpop.f32.mrf.mxu2 }
 0xd08   :  { %2602 = vmatmul.msk.f32.vlgmr.msrb.gmra.mxu3 %vm2134_vm4, %v2194_v23 }
 0xd09   :  { %v2759_v52 = vpop.eup %2758  ;;  %v1907_v31 = vadd.f32 1e-05, %v1904_v35 }
 0xd0a   :  { %v1910_v40 = vmul.f32 %v2759_v52, %v1906_v39  ;;  %vm1916_vm5 = vweird.f32 %v2759_v52 }
 0xd0b   :  { %2760 = vrsqrt.f32 %v1907_v31  ;;  %vm1917_vm7 = vmor %vm1915_vm6, %vm1916_vm5  ;;  %vm1925_vm9 = vweird.f32 %v1907_v31 }
 0xd0c   :  { %v1911_v10 = vmul.f32 %v2759_v52, %v1910_v40 }
 0xd0e   :  { %v1912_v14 = vmul.f32 0.5, %v1911_v10  ;;  %v1902_v41 = vpop.xlane.xlu2 %1901 }
 0xd0f   :  { %v1905_v22 = vmul.f32 0.05882353, %v1902_v41  ;;  %v2197_v55 = vpop.f32.mrf.mxu2 }
 0xd10   :  { %v1913_v61 = vsub.f32 1.5, %v1912_v14  ;;  %2603 = vmatmul.msk.f32.gmra.mxu3 %vm2134_vm4, %v2197_v55 }
 0xd11   :  { %v2761_v45 = vpop.eup %2760  ;;  %v1908_v8 = vadd.f32 1e-05, %v1905_v22 }
 0xd12   :  { %v1914_v48 = vmul.f32 %v2759_v52, %v1913_v61  ;;  %v1920_v51 = vmul.f32 %v2761_v45, %v1907_v31  ;;  %vm1926_vm8 = vweird.f32 %v2761_v45 }
 0xd13   :  { %2762 = vrsqrt.f32 %v1908_v8  ;;  %vm1927_vm10 = vmor %vm1925_vm9, %vm1926_vm8  ;;  %vm1935_vm12 = vweird.f32 %v1908_v8 }
 0xd14   :  { %v1918_v6 = vsel %vm1917_vm7, %v2759_v52, %v1914_v48  ;;  %v1921_v15 = vmul.f32 %v2761_v45, %v1920_v51 }
 0xd15   :  { %v1939_v50 = vmul.f32 %v1918_v6, %v1891_v54 }
 0xd16   :  { %v1922_v49 = vmul.f32 0.5, %v1921_v15 }
 0xd17   :  { %v1942_v24 = vmul.f32 %v4423_v12, %v1939_v50  ;;  %v2200_v60 = vpop.f32.mrf.mxu2 }
 0xd18   :  { %v1923_v5 = vsub.f32 1.5, %v1922_v49  ;;  %2604 = vmatmul.msk.f32.gmra.mxu3 %vm2134_vm4, %v2200_v60 }
 0xd19   :  { %v2763_v33 = vpop.eup %2762  ;;  %v1945_v30 = vadd.f32 %v4431_v1, %v1942_v24 }
 0xd1a   :  { %v1924_v43 = vmul.f32 %v2761_v45, %v1923_v5  ;;  %v1930_v63 = vmul.f32 %v2763_v33, %v1908_v8  ;;  %vm1936_vm11 = vweird.f32 %v2763_v33  ;;  %v4592_v8 = vld [vmem:[%s4636_s19] sm:$0x1]  ;;  %s2884_s19 = smov [#allocation8]  }
 0xd1b   :  { %2273 = vmatmul.f32.vlgmr.msra.gmra.mxu2 %v1945_v30  ;;  %2325 = vmatmul.f32.vlgmr.msra.gmra.mxu0 %v1945_v30  ;;  %vm1937_vm13 = vmor %vm1935_vm12, %vm1936_vm11  ;;  %s2494_s6 = sshll.u32 %s2884_s19, 4  ;;  %s2495_s6 = int_to_ptr.vmem [resolvable:$true] %s2494_s6 }
 0xd1c   :  { %v1928_v32 = vsel %vm1927_vm10, %v2761_v45, %v1924_v43  ;;  %v1931_v37 = vmul.f32 %v2763_v33, %v1930_v63 }
 0xd1d   :  { %v1940_v20 = vmul.f32 %v1928_v32, %v4559_v13 }
 0xd1e   :  { %v1932_v54 = vmul.f32 0.5, %v1931_v37 }
 0xd1f   :  { %v1943_v11 = vmul.f32 %v4423_v12, %v1940_v20 }
 0xd20   :  { %v1933_v9 = vsub.f32 1.5, %v1932_v54  ;;  %2299 = vmatmul.f32.vlgmr.msra.gmra.mxu3 %v1945_v30 }
 0xd21   :  { %v1946_v7 = vadd.f32 %v4431_v1, %v1943_v11 }
 0xd22   :  { %v1934_v53 = vmul.f32 %v2763_v33, %v1933_v9 }
 0xd23   :  { %2276 = vmatmul.f32.gmra.mxu2 %v1946_v7  ;;  %2328 = vmatmul.f32.gmra.mxu0 %v1946_v7 }
 0xd24   :  { %v1938_v13 = vsel %vm1937_vm13, %v2763_v33, %v1934_v53 }
 0xd25   :  { %v1941_v62 = vmul.f32 %v1938_v13, %v4565_v34  ;;  %v2000_v34 = vld [vmem:[#allocation7] sm:$0xff] }
 0xd26   :  { %2251 = vmatpush.msra.mxu1 %v2000_v34  ;;  %2483 = vmatpush.msrb.mxu0 %v2000_v34 }
 0xd27   :  { %v1944_v27 = vmul.f32 %v4423_v12, %v1941_v62 }
 0xd28   :  { %2302 = vmatmul.f32.gmra.mxu3 %v1946_v7 }
 0xd29   :  { %v1947_v18 = vadd.f32 %v4431_v1, %v1944_v27 }
 0xd2b   :  { %2279 = vmatmul.f32.gmra.mxu2 %v1947_v18  ;;  %2331 = vmatmul.f32.gmra.mxu0 %v1947_v18 }
 0xd30   :  { %2305 = vmatmul.f32.gmra.mxu3 %v1947_v18 }
 0xd8b   :  { %v2229_v12 = vpop.f32.mrf.mxu3 }
 0xd8c   :  { %2252 = vmatmul.f32.vlgmr.msra.gmra.mxu1 %v2229_v12 }
 0xd93   :  { %v2232_v19 = vpop.f32.mrf.mxu3 }
 0xd98   :  { %v2326_v1 = vpop.f32.mrf.mxu0 }
 0xd99   :  { %v2327_v40 = vadd.f32 %v2326_v1, %v4489_v38 }
 0xd9b   :  { %v2234_v3 = vpop.f32.mrf.mxu3 }
 0xd9e   :  { %v2274_v41 = vpop.f32.mrf.mxu2 }
 0xd9f   :  { %v2275_v61 = vadd.f32 %v2274_v41, %v4485_v46 }
 0xda0   :  { %v2329_v39 = vpop.f32.mrf.mxu0 }
 0xda1   :  { %v2330_v52 = vadd.f32 %v2329_v39, %v4489_v38 }
 0xda3   :  { %v2300_v21 = vpop.f32.mrf.mxu3 }
 0xda4   :  { %v2301_v55 = vadd.f32 %v2300_v21, %v4481_v26 }
 0xda6   :  { %v2277_v28 = vpop.f32.mrf.mxu2 }
 0xda7   :  { %v2278_v2 = vadd.f32 %v2277_v28, %v4485_v46 }
 0xda8   :  { %v2332_v35 = vpop.f32.mrf.mxu0 }
 0xda9   :  { %v2333_v23 = vadd.f32 %v2332_v35, %v4489_v38 }
 0xdab   :  { %v2303_v31 = vpop.f32.mrf.mxu3  ;;  %2457 = vmatpush.msrb.mxu3 %v2333_v23 }
 0xdac   :  { %v2304_v22 = vadd.f32 %v2303_v31, %v4481_v26 }
 0xdad   :  { %2458 = vmatpush.msrb.mxu3 %v2330_v52 }
 0xdae   :  { %v2280_v38 = vpop.f32.mrf.mxu2 }
 0xdaf   :  { %2459 = vmatpush.msrb.mxu3 %v2327_v40  ;;  %v2281_v45 = vadd.f32 %v2280_v38, %v4485_v46 }
 0xdb3   :  { %v2306_v10 = vpop.f32.mrf.mxu3 }
 0xdb4   :  { %v2307_v14 = vadd.f32 %v2306_v10, %v4481_v26 }
 0xdb6   :  { %2348 = vmatpush.xpose.msrb.mxu1 %v2307_v14 }
 0xdba   :  { %2349 = vmatpush.xpose.msrb.mxu1 %v2304_v22 }
 0xdbe   :  { %2350 = vmatpush.xpose.msrb.mxu1 %v2301_v55 }
 0xdc1   :  { %2351 = vmatmul.f32.vlgmr.msrb.gmra.mxu1 %v2275_v61 }
 0xdc9   :  { %2354 = vmatmul.f32.gmra.mxu1 %v2278_v2 }
 0xdd1   :  { %2357 = vmatmul.f32.gmra.mxu1 %v2281_v45 }
 0xe09   :  { %v2253_v48 = vpop.f32.mrf.mxu1 }
 0xe0a   :  { %v2254_v26 = vadd.f32 %v2253_v48, %v4592_v8 }
 0xe0c   :  { %2256 = vst [vmem:[#allocation8] sm:$0x1] %v2254_v26 }
 0xe3e   :  { %v2352_v51 = vpop.f32.mrf.mxu1 }
 0xe3f   :  { %v2361_v59 = vmul.f32 0.24253562, %v2352_v51 }
 0xe41   :  { %v2364_v6 = vsel %vm115_vm0, %v2361_v59, -1e+30 }
 0xe42   :  { %v2367_v15 = vsel %vm2134_vm4, %v2364_v6, -inf }
 0xe43   :  { %2368 = vmax.xlane.f32.xlu0 %v2367_v15 }
 0xe46   :  { %v2355_v25 = vpop.f32.mrf.mxu1 }
 0xe47   :  { %v2362_v46 = vmul.f32 0.24253562, %v2355_v25 }
 0xe49   :  { %v2365_v50 = vsel %vm115_vm0, %v2362_v46, -1e+30 }
 0xe4a   :  { %v2370_v49 = vsel %vm2134_vm4, %v2365_v50, -inf }
 0xe4b   :  { %2371 = vmax.xlane.f32.xlu2 %v2370_v49 }
 0xe4e   :  { %v2358_v36 = vpop.f32.mrf.mxu1 }
 0xe4f   :  { %v2363_v24 = vmul.f32 0.24253562, %v2358_v36 }
 0xe51   :  { %v2366_v60 = vsel %vm115_vm0, %v2363_v24, -1e+30 }
 0xe52   :  { %v2373_v5 = vsel %vm2134_vm4, %v2366_v60, -inf }
 0xe53   :  { %2374 = vmax.xlane.f32.xlu0 %v2373_v5 }
 0xeb6   :  { %v2369_v33 = vpop.xlane.xlu0 %2368 }
 0xeb7   :  { %v2376_v30 = vsub.f32 %v2364_v6, %v2369_v33 }
 0xeb9   :  { %v2379_v0 = vmul.f32 1.442695, %v2376_v30 }
 0xebb   :  { %2764 = vpow2.f32 %v2379_v0 }
 0xebe   :  { %v2372_v43 = vpop.xlane.xlu2 %2371 }
 0xebf   :  { %v2377_v63 = vsub.f32 %v2365_v50, %v2372_v43 }
 0xec1   :  { %v2765_v47 = vpop.eup %2764  ;;  %v2381_v32 = vmul.f32 1.442695, %v2377_v63 }
 0xec2   :  { %v2385_v37 = vsel %vm2134_vm4, %v2765_v47, 0.0 }
 0xec3   :  { %2766 = vpow2.f32 %v2381_v32  ;;  %2386 = vadd.xlane.f32.xlu1 %v2385_v37 }
 0xec6   :  { %v2375_v20 = vpop.xlane.xlu0 %2374 }
 0xec7   :  { %v2378_v4 = vsub.f32 %v2366_v60, %v2375_v20 }
 0xec9   :  { %v2767_v54 = vpop.eup %2766  ;;  %v2383_v42 = vmul.f32 1.442695, %v2378_v4 }
 0xeca   :  { %v2388_v11 = vsel %vm2134_vm4, %v2767_v54, 0.0 }
 0xecb   :  { %2768 = vpow2.f32 %v2383_v42  ;;  %2389 = vadd.xlane.f32.xlu1 %v2388_v11 }
 0xed1   :  { %v2769_v44 = vpop.eup %2768 }
 0xed2   :  { %v2391_v9 = vsel %vm2134_vm4, %v2769_v44, 0.0 }
 0xed3   :  { %2392 = vadd.xlane.f32.xlu2 %v2391_v9 }
 0xf36   :  { %v2387_v7 = vpop.xlane.xlu1 %2386 }
 0xf37   :  { %2770 = vrcp.f32 %v2387_v7 }
 0xf3d   :  { %v2771_v16 = vpop.eup %2770 }
 0xf3e   :  { %v2397_v53 = vmul.f32 %v2771_v16, %v2765_v47  ;;  %v2390_v58 = vpop.xlane.xlu1 %2389 }
 0xf3f   :  { %2772 = vrcp.f32 %v2390_v58 }
 0xf40   :  { %2605 = vmatmul.msk.f32.vlgmr.msrb.gmra.mxu2 %vm2134_vm4, %v2397_v53 }
 0xf45   :  { %v2773_v13 = vpop.eup %2772 }
 0xf46   :  { %v2398_v62 = vmul.f32 %v2773_v13, %v2767_v54  ;;  %v2393_v17 = vpop.xlane.xlu2 %2392 }
 0xf47   :  { %2774 = vrcp.f32 %v2393_v17 }
 0xf48   :  { %2606 = vmatmul.msk.f32.gmra.mxu2 %vm2134_vm4, %v2398_v62 }
 0xf4d   :  { %v2775_v27 = vpop.eup %2774 }
 0xf4e   :  { %v2399_v29 = vmul.f32 %v2775_v27, %v2769_v44 }
 0xf50   :  { %2607 = vmatmul.msk.f32.gmra.mxu2 %vm2134_vm4, %v2399_v29 }
 0xfc3   :  { %v2426_v18 = vpop.f32.mrf.mxu2 }
 0xfc4   :  { %2608 = vmatmul.msk.f32.vlgmr.msrb.gmra.mxu3 %vm2134_vm4, %v2426_v18 }
 0xfcb   :  { %v2429_v57 = vpop.f32.mrf.mxu2 }
 0xfcc   :  { %2609 = vmatmul.msk.f32.gmra.mxu3 %vm2134_vm4, %v2429_v57 }
 0xfd3   :  { %v2432_v56 = vpop.f32.mrf.mxu2 }
 0xfd4   :  { %2610 = vmatmul.msk.f32.gmra.mxu3 %vm2134_vm4, %v2432_v56 }
0x1047   :  { %v2461_v34 = vpop.f32.mrf.mxu3 }
0x1048   :  { %2484 = vmatmul.f32.vlgmr.msrb.gmra.mxu0 %v2461_v34 }
0x104f   :  { %v2464_v12 = vpop.f32.mrf.mxu3 }
0x1057   :  { %v2466_v19 = vpop.f32.mrf.mxu3 }
0x10c5   :  { %v2485_v1 = vpop.f32.mrf.mxu0 }
0x10c6   :  { %v2486_v3 = vadd.f32 %v2485_v1, %v4592_v8 }
0x10c8   :  { %2488 = vst [vmem:[#allocation8 + $0x1] sm:$0x1] %v2486_v3 }
0x10c9   :  { %2499 = dma.vmem_to_hbm [thread:$0]  %s2495_s6, 32, %s2497_s23, [#allocation4]  }
0x10ca   :  { %2876 = dma.done.wait [#allocation4], 32  }
0x10cb   :  { %2877 = vsyncadd [#allocation4], 4294967264 }
0x10cc   :  { %2504 = vsyncpa [#allocation3], 1 }
0x10cd   :  { %2505 = vsyncpa [#allocation6], 1 }
0x10ce   :  { %2506 = vsyncpa [#allocation4], 1 }

</bundles_post_ra>
